<compile_context>
chip_gen: v6e
topology: v6e:2x2x1
jax: 0.10.0
libtpu: 0.0.40
codegen_flags: <defaults>
</compile_context>

<pallas_src>
import functools

import jax
import jax.numpy as jnp
from jax import lax
from jax.experimental import pallas as pl
from jax.experimental.pallas import tpu as pltpu


# ---------------------------------------------------------------------------
# Fused kernel: one grid step = one (batch element, q-row tile), all heads.
#   xq : (1, Tq,  C)   query-side tokens
#   xkv: (1, Nkv, C)   key/value-side tokens (== xq source when sr_ratio == 1)
#   wq/wk/wv : (heads, C, d)   per-head projection slabs
#   bq/bk/bv : (heads, 1, d)   per-head biases (zeros when qkv_bias=False)
#   wp : (heads, d, C)         per-head slice of the output projection
#   bp : (1, C)
#   out: (1, Tq, C)
# ---------------------------------------------------------------------------
def _fused_attn_kernel(xq_ref, xkv_ref, wq_ref, bq_ref, wk_ref, bk_ref,
                       wv_ref, bv_ref, wp_ref, bp_ref, o_ref,
                       *, num_heads, scale):
    xq = xq_ref[0].astype(jnp.float32)       # (Tq,  C)
    xkv = xkv_ref[0].astype(jnp.float32)     # (Nkv, C)
    tq, c = xq.shape

    acc = jnp.zeros((tq, c), jnp.float32)
    # Statically unrolled per-head loop (num_heads is small for PVT).
    for h in range(num_heads):
        qh = jnp.dot(xq, wq_ref[h].astype(jnp.float32),
                     preferred_element_type=jnp.float32)
        qh = qh + bq_ref[h].astype(jnp.float32)                      # (Tq, d)
        kh = jnp.dot(xkv, wk_ref[h].astype(jnp.float32),
                     preferred_element_type=jnp.float32)
        kh = kh + bk_ref[h].astype(jnp.float32)                      # (Nkv, d)
        vh = jnp.dot(xkv, wv_ref[h].astype(jnp.float32),
                     preferred_element_type=jnp.float32)
        vh = vh + bv_ref[h].astype(jnp.float32)                      # (Nkv, d)

        # scores (Tq, Nkv): contract head_dim (last dim of both) on the MXU.
        s = lax.dot_general(qh, kh, (((1,), (1,)), ((), ())),
                            preferred_element_type=jnp.float32) * scale
        s = s - jnp.max(s, axis=-1, keepdims=True)
        p = jnp.exp(s)
        p = p / jnp.sum(p, axis=-1, keepdims=True)                   # softmax

        ctx = jnp.dot(p, vh, preferred_element_type=jnp.float32)     # (Tq, d)

        # Fused output projection: this head's contribution to proj(ctx).
        acc = acc + jnp.dot(ctx, wp_ref[h].astype(jnp.float32),
                            preferred_element_type=jnp.float32)      # (Tq, C)

    o_ref[0] = (acc + bp_ref[...].astype(jnp.float32)).astype(o_ref.dtype)


# ---------------------------------------------------------------------------
# Full PVT Attention forward
# ---------------------------------------------------------------------------
def pvt_attention(x, H, W, params, *, num_heads, sr_ratio=1):
    B, N, C = x.shape
    assert C % num_heads == 0
    d = C // num_heads
    scale = d ** (-0.5)
    dtype = x.dtype

    # ----- kv source (optionally spatially reduced) -------------------------
    if sr_ratio > 1:
        # TODO(synk): strided spatial-reduction Conv2d + LayerNorm kept in
        # plain JAX (layout plumbing; module-default / tested sr_ratio=1 path
        # never executes it).
        x_img = x.transpose(0, 2, 1).reshape(B, C, H, W)
        x_sr = lax.conv_general_dilated(
            x_img, params["w_sr"], window_strides=(sr_ratio, sr_ratio),
            padding="VALID", dimension_numbers=("NCHW", "OIHW", "NCHW"))
        x_sr = x_sr + params["b_sr"][None, :, None, None]
        x_kv = x_sr.reshape(B, C, -1).transpose(0, 2, 1)
        mu = jnp.mean(x_kv, axis=-1, keepdims=True)
        var = jnp.var(x_kv, axis=-1, keepdims=True)
        x_kv = (x_kv - mu) / jnp.sqrt(var + 1e-5)
        x_kv = (x_kv * params["g_ln"] + params["b_ln"]).astype(dtype)
    else:
        x_kv = x
    Nkv = x_kv.shape[1]

    # ----- per-head weight slabs (tiny, pure layout in the wrapper) ---------
    # Lets the kernel index the head axis on the *leading* dim of the weight
    # Refs instead of transposing activations or lane-slicing inside VMEM.
    wq_r = params["wq"].reshape(C, num_heads, d).transpose(1, 0, 2)   # (h,C,d)
    wkv_r = params["wkv"].reshape(C, 2, num_heads, d)
    wk_r = wkv_r[:, 0].transpose(1, 0, 2)                             # (h,C,d)
    wv_r = wkv_r[:, 1].transpose(1, 0, 2)                             # (h,C,d)
    wp_r = params["wproj"].reshape(num_heads, d, C)                   # (h,d,C)

    def _head_bias(b):
        if b is None:
            return jnp.zeros((num_heads, 1, d), dtype)
        return b.reshape(num_heads, 1, d).astype(dtype)

    bq_r = _head_bias(params.get("bq"))
    if params.get("bkv") is None:
        bk_r = jnp.zeros((num_heads, 1, d), dtype)
        bv_r = jnp.zeros((num_heads, 1, d), dtype)
    else:
        bkv_r = params["bkv"].reshape(2, num_heads, 1, d).astype(dtype)
        bk_r, bv_r = bkv_r[0], bkv_r[1]
    bp_r = params["bproj"].reshape(1, C).astype(dtype)

    # ----- grid: batch x query-row tiles, both independent ("parallel") -----
    # K/V are (re)computed per q-tile; for typical PVT configs there is a
    # single q-tile so nothing is recomputed.
    # TODO(synk): very large N with sr_ratio=1 would want a flash-style
    # streaming softmax over the key axis instead of a resident (Tq, Nkv) tile.
    if N > 256 and N % 256 == 0:
        tq = 256
    else:
        tq = N
    grid = (B, N // tq)

    kernel = functools.partial(_fused_attn_kernel, num_heads=num_heads,
                               scale=scale)
    w_map = lambda b, i: (0, 0, 0)

    return pl.pallas_call(
        kernel,
        out_shape=jax.ShapeDtypeStruct((B, N, C), dtype),
        grid_spec=pltpu.PrefetchScalarGridSpec(
            num_scalar_prefetch=0,
            grid=grid,
            in_specs=[
                pl.BlockSpec((1, tq, C), lambda b, i: (b, i, 0)),      # xq
                pl.BlockSpec((1, Nkv, C), lambda b, i: (b, 0, 0)),     # xkv
                pl.BlockSpec((num_heads, C, d), w_map),                # wq
                pl.BlockSpec((num_heads, 1, d), w_map),                # bq
                pl.BlockSpec((num_heads, C, d), w_map),                # wk
                pl.BlockSpec((num_heads, 1, d), w_map),                # bk
                pl.BlockSpec((num_heads, C, d), w_map),                # wv
                pl.BlockSpec((num_heads, 1, d), w_map),                # bv
                pl.BlockSpec((num_heads, d, C), w_map),                # wproj
                pl.BlockSpec((1, C), lambda b, i: (0, 0)),             # bproj
            ],
            out_specs=pl.BlockSpec((1, tq, C), lambda b, i: (b, i, 0)),
        ),
        compiler_params=pltpu.CompilerParams(
            dimension_semantics=("parallel", "parallel")),
    )(x, x_kv, wq_r, bq_r, wk_r, bk_r, wv_r, bv_r, wp_r, bp_r)


# ---------------------------------------------------------------------------
# Pure-JAX reference mirroring the PyTorch forward (sr_ratio == 1 path)
# ---------------------------------------------------------------------------
def _reference(x, params, *, num_heads):
    B, N, C = x.shape
    d = C // num_heads
    scale = d ** (-0.5)

    q = x @ params["wq"]
    if params.get("bq") is not None:
        q = q + params["bq"]
    q = q.reshape(B, N, num_heads, d).transpose(0, 2, 1, 3)

    kv = x @ params["wkv"]
    if params.get("bkv") is not None:
        kv = kv + params["bkv"]
    kv = kv.reshape(B, N, 2, num_heads, d)
    k = kv[:, :, 0].transpose(0, 2, 1, 3)
    v = kv[:, :, 1].transpose(0, 2, 1, 3)

    attn = jnp.einsum("bhqd,bhkd->bhqk", q, k) * scale
    attn = jax.nn.softmax(attn, axis=-1)
    o = jnp.einsum("bhqk,bhkd->bhqd", attn, v)
    o = o.transpose(0, 2, 1, 3).reshape(B, N, C)
    return o @ params["wproj"] + params["bproj"]


if __name__ == "__main__":
    key = jax.random.PRNGKey(0)
    kx, kq, kkv, kp = jax.random.split(key, 4)

    B, H, W = 2, 8, 8
    N = H * W                          # 64 tokens
    dim, num_heads, sr_ratio = 64, 8, 1    # head_dim = 8

    x = jax.random.normal(kx, (B, N, dim), dtype=jnp.float32)
    std = 0.1
    params = {
        "wq": std * jax.random.normal(kq, (dim, dim), dtype=jnp.float32),
        "bq": None,                    # qkv_bias=False (module default)
        "wkv": std * jax.random.normal(kkv, (dim, 2 * dim), dtype=jnp.float32),
        "bkv": None,
        "wproj": std * jax.random.normal(kp, (dim, dim), dtype=jnp.float32),
        "bproj": jnp.zeros((dim,), jnp.float32),
    }

    out = pvt_attention(x, H, W, params, num_heads=num_heads,
                        sr_ratio=sr_ratio)
    out = jax.block_until_ready(out)
    assert out.shape == (B, N, dim)

    with jax.default_matmul_precision("highest"):
        ref = _reference(x, params, num_heads=num_heads)
    ref = jax.block_until_ready(ref)

    err = jnp.max(jnp.abs(out - ref))
    assert jnp.allclose(out, ref, atol=2e-3, rtol=2e-3), f"max abs err {err}"

    print("KERNEL_OK")
</pallas_src>

<mosaic_0001>
module attributes {stable_mosaic.version = 11 : i64} {
  func.func @_fused_attn_kernel(%arg0: i32, %arg1: i32, %arg2: memref<1x64x64xf32, #tpu.memory_space<vmem>>, %arg3: memref<1x64x64xf32, #tpu.memory_space<vmem>>, %arg4: memref<8x64x8xf32, #tpu.memory_space<vmem>>, %arg5: memref<8x1x8xf32, #tpu.memory_space<vmem>>, %arg6: memref<8x64x8xf32, #tpu.memory_space<vmem>>, %arg7: memref<8x1x8xf32, #tpu.memory_space<vmem>>, %arg8: memref<8x64x8xf32, #tpu.memory_space<vmem>>, %arg9: memref<8x1x8xf32, #tpu.memory_space<vmem>>, %arg10: memref<8x8x64xf32, #tpu.memory_space<vmem>>, %arg11: memref<1x64xf32, #tpu.memory_space<vmem>>, %arg12: memref<1x64x64xf32, #tpu.memory_space<vmem>>) attributes {dimension_semantics = [#tpu.dimension_semantics<parallel>, #tpu.dimension_semantics<parallel>], iteration_bounds = array<i64: 2, 1>, scalar_prefetch = 0 : i64, scratch_operands = 0 : i64, tpu.core_type = #tpu.core_type<tc>, window_params = [{transform_indices = @transform_0, window_bounds = array<i64: 1, 64, 64>}, {transform_indices = @transform_1, window_bounds = array<i64: 1, 64, 64>}, {pipeline_mode = #tpu.pipeline_mode<synchronous>, transform_indices = @transform_2, window_bounds = array<i64: 8, 64, 8>}, {pipeline_mode = #tpu.pipeline_mode<synchronous>, transform_indices = @transform_3, window_bounds = array<i64: 8, 1, 8>}, {pipeline_mode = #tpu.pipeline_mode<synchronous>, transform_indices = @transform_4, window_bounds = array<i64: 8, 64, 8>}, {pipeline_mode = #tpu.pipeline_mode<synchronous>, transform_indices = @transform_5, window_bounds = array<i64: 8, 1, 8>}, {pipeline_mode = #tpu.pipeline_mode<synchronous>, transform_indices = @transform_6, window_bounds = array<i64: 8, 64, 8>}, {pipeline_mode = #tpu.pipeline_mode<synchronous>, transform_indices = @transform_7, window_bounds = array<i64: 8, 1, 8>}, {pipeline_mode = #tpu.pipeline_mode<synchronous>, transform_indices = @transform_8, window_bounds = array<i64: 8, 8, 64>}, {pipeline_mode = #tpu.pipeline_mode<synchronous>, transform_indices = @transform_9, window_bounds = array<i64: 1, 64>}, {transform_indices = @transform_10, window_bounds = array<i64: 1, 64, 64>}]} {
    %c0 = arith.constant 0 : index
    %c0_0 = arith.constant 0 : index
    %c0_1 = arith.constant 0 : index
    %0 = vector.load %arg2[%c0, %c0_0, %c0_1] : memref<1x64x64xf32, #tpu.memory_space<vmem>>, vector<1x64x64xf32>
    %1 = vector.shape_cast %0 : vector<1x64x64xf32> to vector<64x64xf32>
    %c0_2 = arith.constant 0 : index
    %c0_3 = arith.constant 0 : index
    %c0_4 = arith.constant 0 : index
    %2 = vector.load %arg3[%c0_2, %c0_3, %c0_4] : memref<1x64x64xf32, #tpu.memory_space<vmem>>, vector<1x64x64xf32>
    %3 = vector.shape_cast %2 : vector<1x64x64xf32> to vector<64x64xf32>
    %cst = arith.constant 0.000000e+00 : f32
    %4 = vector.broadcast %cst : f32 to vector<64x64xf32>
    %c0_5 = arith.constant 0 : index
    %c0_6 = arith.constant 0 : index
    %c0_7 = arith.constant 0 : index
    %5 = vector.load %arg4[%c0_5, %c0_6, %c0_7] : memref<8x64x8xf32, #tpu.memory_space<vmem>>, vector<1x64x8xf32>
    %6 = vector.shape_cast %5 : vector<1x64x8xf32> to vector<64x8xf32>
    %cst_8 = arith.constant dense<0.000000e+00> : vector<64x8xf32>
    %7 = tpu.matmul %1, %6, %cst_8 {dimension_numbers = #tpu.dot_dimension_numbers<[1], [0], [0], [1], [0, 0, 1, 1], [], []>} : vector<64x64xf32>, vector<64x8xf32>, vector<64x8xf32> -> vector<64x8xf32>
    %c0_9 = arith.constant 0 : index
    %c0_10 = arith.constant 0 : index
    %c0_11 = arith.constant 0 : index
    %8 = vector.load %arg5[%c0_9, %c0_10, %c0_11] : memref<8x1x8xf32, #tpu.memory_space<vmem>>, vector<1x1x8xf32>
    %9 = vector.shape_cast %8 : vector<1x1x8xf32> to vector<1x8xf32>
    %10 = vector.broadcast %9 : vector<1x8xf32> to vector<64x8xf32>
    %11 = arith.addf %7, %10 : vector<64x8xf32>
    %c0_12 = arith.constant 0 : index
    %c0_13 = arith.constant 0 : index
    %c0_14 = arith.constant 0 : index
    %12 = vector.load %arg6[%c0_12, %c0_13, %c0_14] : memref<8x64x8xf32, #tpu.memory_space<vmem>>, vector<1x64x8xf32>
    %13 = vector.shape_cast %12 : vector<1x64x8xf32> to vector<64x8xf32>
    %cst_15 = arith.constant dense<0.000000e+00> : vector<64x8xf32>
    %14 = tpu.matmul %3, %13, %cst_15 {dimension_numbers = #tpu.dot_dimension_numbers<[1], [0], [0], [1], [0, 0, 1, 1], [], []>} : vector<64x64xf32>, vector<64x8xf32>, vector<64x8xf32> -> vector<64x8xf32>
    %c0_16 = arith.constant 0 : index
    %c0_17 = arith.constant 0 : index
    %c0_18 = arith.constant 0 : index
    %15 = vector.load %arg7[%c0_16, %c0_17, %c0_18] : memref<8x1x8xf32, #tpu.memory_space<vmem>>, vector<1x1x8xf32>
    %16 = vector.shape_cast %15 : vector<1x1x8xf32> to vector<1x8xf32>
    %17 = vector.broadcast %16 : vector<1x8xf32> to vector<64x8xf32>
    %18 = arith.addf %14, %17 : vector<64x8xf32>
    %c0_19 = arith.constant 0 : index
    %c0_20 = arith.constant 0 : index
    %c0_21 = arith.constant 0 : index
    %19 = vector.load %arg8[%c0_19, %c0_20, %c0_21] : memref<8x64x8xf32, #tpu.memory_space<vmem>>, vector<1x64x8xf32>
    %20 = vector.shape_cast %19 : vector<1x64x8xf32> to vector<64x8xf32>
    %cst_22 = arith.constant dense<0.000000e+00> : vector<64x8xf32>
    %21 = tpu.matmul %3, %20, %cst_22 {dimension_numbers = #tpu.dot_dimension_numbers<[1], [0], [0], [1], [0, 0, 1, 1], [], []>} : vector<64x64xf32>, vector<64x8xf32>, vector<64x8xf32> -> vector<64x8xf32>
    %c0_23 = arith.constant 0 : index
    %c0_24 = arith.constant 0 : index
    %c0_25 = arith.constant 0 : index
    %22 = vector.load %arg9[%c0_23, %c0_24, %c0_25] : memref<8x1x8xf32, #tpu.memory_space<vmem>>, vector<1x1x8xf32>
    %23 = vector.shape_cast %22 : vector<1x1x8xf32> to vector<1x8xf32>
    %24 = vector.broadcast %23 : vector<1x8xf32> to vector<64x8xf32>
    %25 = arith.addf %21, %24 : vector<64x8xf32>
    %cst_26 = arith.constant dense<0.000000e+00> : vector<64x64xf32>
    %26 = tpu.matmul %11, %18, %cst_26 {dimension_numbers = #tpu.dot_dimension_numbers<[1], [1], [0], [0], [0, 0, 1, 0], [], []>} : vector<64x8xf32>, vector<64x8xf32>, vector<64x64xf32> -> vector<64x64xf32>
    %cst_27 = arith.constant 0.353553385 : f32
    %27 = vector.broadcast %cst_27 : f32 to vector<64x64xf32>
    %28 = arith.mulf %26, %27 : vector<64x64xf32>
    %cst_28 = arith.constant dense<0xFF800000> : vector<64xf32>
    %29 = vector.multi_reduction <maximumf>, %28, %cst_28 [1] : vector<64x64xf32> to vector<64xf32>
    %30 = vector.shape_cast %29 : vector<64xf32> to vector<64x1xf32>
    %31 = vector.broadcast %30 : vector<64x1xf32> to vector<64x64xf32>
    %32 = arith.subf %28, %31 : vector<64x64xf32>
    %33 = math.exp %32 : vector<64x64xf32>
    %cst_29 = arith.constant dense<0.000000e+00> : vector<64xf32>
    %34 = vector.multi_reduction <add>, %33, %cst_29 [1] : vector<64x64xf32> to vector<64xf32>
    %35 = vector.shape_cast %34 : vector<64xf32> to vector<64x1xf32>
    %36 = vector.broadcast %35 : vector<64x1xf32> to vector<64x64xf32>
    %37 = arith.divf %33, %36 : vector<64x64xf32>
    %cst_30 = arith.constant dense<0.000000e+00> : vector<64x8xf32>
    %38 = tpu.matmul %37, %25, %cst_30 {dimension_numbers = #tpu.dot_dimension_numbers<[1], [0], [0], [1], [0, 0, 1, 1], [], []>} : vector<64x64xf32>, vector<64x8xf32>, vector<64x8xf32> -> vector<64x8xf32>
    %c0_31 = arith.constant 0 : index
    %c0_32 = arith.constant 0 : index
    %c0_33 = arith.constant 0 : index
    %39 = vector.load %arg10[%c0_31, %c0_32, %c0_33] : memref<8x8x64xf32, #tpu.memory_space<vmem>>, vector<1x8x64xf32>
    %40 = vector.shape_cast %39 : vector<1x8x64xf32> to vector<8x64xf32>
    %cst_34 = arith.constant dense<0.000000e+00> : vector<64x64xf32>
    %41 = tpu.matmul %38, %40, %cst_34 {dimension_numbers = #tpu.dot_dimension_numbers<[1], [0], [0], [1], [0, 0, 1, 1], [], []>} : vector<64x8xf32>, vector<8x64xf32>, vector<64x64xf32> -> vector<64x64xf32>
    %42 = arith.addf %4, %41 : vector<64x64xf32>
    %c1 = arith.constant 1 : index
    %c0_35 = arith.constant 0 : index
    %c0_36 = arith.constant 0 : index
    %43 = vector.load %arg4[%c1, %c0_35, %c0_36] : memref<8x64x8xf32, #tpu.memory_space<vmem>>, vector<1x64x8xf32>
    %44 = vector.shape_cast %43 : vector<1x64x8xf32> to vector<64x8xf32>
    %cst_37 = arith.constant dense<0.000000e+00> : vector<64x8xf32>
    %45 = tpu.matmul %1, %44, %cst_37 {dimension_numbers = #tpu.dot_dimension_numbers<[1], [0], [0], [1], [0, 0, 1, 1], [], []>} : vector<64x64xf32>, vector<64x8xf32>, vector<64x8xf32> -> vector<64x8xf32>
    %c1_38 = arith.constant 1 : index
    %c0_39 = arith.constant 0 : index
    %c0_40 = arith.constant 0 : index
    %46 = vector.load %arg5[%c1_38, %c0_39, %c0_40] : memref<8x1x8xf32, #tpu.memory_space<vmem>>, vector<1x1x8xf32>
    %47 = vector.shape_cast %46 : vector<1x1x8xf32> to vector<1x8xf32>
    %48 = vector.broadcast %47 : vector<1x8xf32> to vector<64x8xf32>
    %49 = arith.addf %45, %48 : vector<64x8xf32>
    %c1_41 = arith.constant 1 : index
    %c0_42 = arith.constant 0 : index
    %c0_43 = arith.constant 0 : index
    %50 = vector.load %arg6[%c1_41, %c0_42, %c0_43] : memref<8x64x8xf32, #tpu.memory_space<vmem>>, vector<1x64x8xf32>
    %51 = vector.shape_cast %50 : vector<1x64x8xf32> to vector<64x8xf32>
    %cst_44 = arith.constant dense<0.000000e+00> : vector<64x8xf32>
    %52 = tpu.matmul %3, %51, %cst_44 {dimension_numbers = #tpu.dot_dimension_numbers<[1], [0], [0], [1], [0, 0, 1, 1], [], []>} : vector<64x64xf32>, vector<64x8xf32>, vector<64x8xf32> -> vector<64x8xf32>
    %c1_45 = arith.constant 1 : index
    %c0_46 = arith.constant 0 : index
    %c0_47 = arith.constant 0 : index
    %53 = vector.load %arg7[%c1_45, %c0_46, %c0_47] : memref<8x1x8xf32, #tpu.memory_space<vmem>>, vector<1x1x8xf32>
    %54 = vector.shape_cast %53 : vector<1x1x8xf32> to vector<1x8xf32>
    %55 = vector.broadcast %54 : vector<1x8xf32> to vector<64x8xf32>
    %56 = arith.addf %52, %55 : vector<64x8xf32>
    %c1_48 = arith.constant 1 : index
    %c0_49 = arith.constant 0 : index
    %c0_50 = arith.constant 0 : index
    %57 = vector.load %arg8[%c1_48, %c0_49, %c0_50] : memref<8x64x8xf32, #tpu.memory_space<vmem>>, vector<1x64x8xf32>
    %58 = vector.shape_cast %57 : vector<1x64x8xf32> to vector<64x8xf32>
    %cst_51 = arith.constant dense<0.000000e+00> : vector<64x8xf32>
    %59 = tpu.matmul %3, %58, %cst_51 {dimension_numbers = #tpu.dot_dimension_numbers<[1], [0], [0], [1], [0, 0, 1, 1], [], []>} : vector<64x64xf32>, vector<64x8xf32>, vector<64x8xf32> -> vector<64x8xf32>
    %c1_52 = arith.constant 1 : index
    %c0_53 = arith.constant 0 : index
    %c0_54 = arith.constant 0 : index
    %60 = vector.load %arg9[%c1_52, %c0_53, %c0_54] : memref<8x1x8xf32, #tpu.memory_space<vmem>>, vector<1x1x8xf32>
    %61 = vector.shape_cast %60 : vector<1x1x8xf32> to vector<1x8xf32>
    %62 = vector.broadcast %61 : vector<1x8xf32> to vector<64x8xf32>
    %63 = arith.addf %59, %62 : vector<64x8xf32>
    %cst_55 = arith.constant dense<0.000000e+00> : vector<64x64xf32>
    %64 = tpu.matmul %49, %56, %cst_55 {dimension_numbers = #tpu.dot_dimension_numbers<[1], [1], [0], [0], [0, 0, 1, 0], [], []>} : vector<64x8xf32>, vector<64x8xf32>, vector<64x64xf32> -> vector<64x64xf32>
    %cst_56 = arith.constant 0.353553385 : f32
    %65 = vector.broadcast %cst_56 : f32 to vector<64x64xf32>
    %66 = arith.mulf %64, %65 : vector<64x64xf32>
    %cst_57 = arith.constant dense<0xFF800000> : vector<64xf32>
    %67 = vector.multi_reduction <maximumf>, %66, %cst_57 [1] : vector<64x64xf32> to vector<64xf32>
    %68 = vector.shape_cast %67 : vector<64xf32> to vector<64x1xf32>
    %69 = vector.broadcast %68 : vector<64x1xf32> to vector<64x64xf32>
    %70 = arith.subf %66, %69 : vector<64x64xf32>
    %71 = math.exp %70 : vector<64x64xf32>
    %cst_58 = arith.constant dense<0.000000e+00> : vector<64xf32>
    %72 = vector.multi_reduction <add>, %71, %cst_58 [1] : vector<64x64xf32> to vector<64xf32>
    %73 = vector.shape_cast %72 : vector<64xf32> to vector<64x1xf32>
    %74 = vector.broadcast %73 : vector<64x1xf32> to vector<64x64xf32>
    %75 = arith.divf %71, %74 : vector<64x64xf32>
    %cst_59 = arith.constant dense<0.000000e+00> : vector<64x8xf32>
    %76 = tpu.matmul %75, %63, %cst_59 {dimension_numbers = #tpu.dot_dimension_numbers<[1], [0], [0], [1], [0, 0, 1, 1], [], []>} : vector<64x64xf32>, vector<64x8xf32>, vector<64x8xf32> -> vector<64x8xf32>
    %c1_60 = arith.constant 1 : index
    %c0_61 = arith.constant 0 : index
    %c0_62 = arith.constant 0 : index
    %77 = vector.load %arg10[%c1_60, %c0_61, %c0_62] : memref<8x8x64xf32, #tpu.memory_space<vmem>>, vector<1x8x64xf32>
    %78 = vector.shape_cast %77 : vector<1x8x64xf32> to vector<8x64xf32>
    %cst_63 = arith.constant dense<0.000000e+00> : vector<64x64xf32>
    %79 = tpu.matmul %76, %78, %cst_63 {dimension_numbers = #tpu.dot_dimension_numbers<[1], [0], [0], [1], [0, 0, 1, 1], [], []>} : vector<64x8xf32>, vector<8x64xf32>, vector<64x64xf32> -> vector<64x64xf32>
    %80 = arith.addf %42, %79 : vector<64x64xf32>
    %c2 = arith.constant 2 : index
    %c0_64 = arith.constant 0 : index
    %c0_65 = arith.constant 0 : index
    %81 = vector.load %arg4[%c2, %c0_64, %c0_65] : memref<8x64x8xf32, #tpu.memory_space<vmem>>, vector<1x64x8xf32>
    %82 = vector.shape_cast %81 : vector<1x64x8xf32> to vector<64x8xf32>
    %cst_66 = arith.constant dense<0.000000e+00> : vector<64x8xf32>
    %83 = tpu.matmul %1, %82, %cst_66 {dimension_numbers = #tpu.dot_dimension_numbers<[1], [0], [0], [1], [0, 0, 1, 1], [], []>} : vector<64x64xf32>, vector<64x8xf32>, vector<64x8xf32> -> vector<64x8xf32>
    %c2_67 = arith.constant 2 : index
    %c0_68 = arith.constant 0 : index
    %c0_69 = arith.constant 0 : index
    %84 = vector.load %arg5[%c2_67, %c0_68, %c0_69] : memref<8x1x8xf32, #tpu.memory_space<vmem>>, vector<1x1x8xf32>
    %85 = vector.shape_cast %84 : vector<1x1x8xf32> to vector<1x8xf32>
    %86 = vector.broadcast %85 : vector<1x8xf32> to vector<64x8xf32>
    %87 = arith.addf %83, %86 : vector<64x8xf32>
    %c2_70 = arith.constant 2 : index
    %c0_71 = arith.constant 0 : index
    %c0_72 = arith.constant 0 : index
    %88 = vector.load %arg6[%c2_70, %c0_71, %c0_72] : memref<8x64x8xf32, #tpu.memory_space<vmem>>, vector<1x64x8xf32>
    %89 = vector.shape_cast %88 : vector<1x64x8xf32> to vector<64x8xf32>
    %cst_73 = arith.constant dense<0.000000e+00> : vector<64x8xf32>
    %90 = tpu.matmul %3, %89, %cst_73 {dimension_numbers = #tpu.dot_dimension_numbers<[1], [0], [0], [1], [0, 0, 1, 1], [], []>} : vector<64x64xf32>, vector<64x8xf32>, vector<64x8xf32> -> vector<64x8xf32>
    %c2_74 = arith.constant 2 : index
    %c0_75 = arith.constant 0 : index
    %c0_76 = arith.constant 0 : index
    %91 = vector.load %arg7[%c2_74, %c0_75, %c0_76] : memref<8x1x8xf32, #tpu.memory_space<vmem>>, vector<1x1x8xf32>
    %92 = vector.shape_cast %91 : vector<1x1x8xf32> to vector<1x8xf32>
    %93 = vector.broadcast %92 : vector<1x8xf32> to vector<64x8xf32>
    %94 = arith.addf %90, %93 : vector<64x8xf32>
    %c2_77 = arith.constant 2 : index
    %c0_78 = arith.constant 0 : index
    %c0_79 = arith.constant 0 : index
    %95 = vector.load %arg8[%c2_77, %c0_78, %c0_79] : memref<8x64x8xf32, #tpu.memory_space<vmem>>, vector<1x64x8xf32>
    %96 = vector.shape_cast %95 : vector<1x64x8xf32> to vector<64x8xf32>
    %cst_80 = arith.constant dense<0.000000e+00> : vector<64x8xf32>
    %97 = tpu.matmul %3, %96, %cst_80 {dimension_numbers = #tpu.dot_dimension_numbers<[1], [0], [0], [1], [0, 0, 1, 1], [], []>} : vector<64x64xf32>, vector<64x8xf32>, vector<64x8xf32> -> vector<64x8xf32>
    %c2_81 = arith.constant 2 : index
    %c0_82 = arith.constant 0 : index
    %c0_83 = arith.constant 0 : index
    %98 = vector.load %arg9[%c2_81, %c0_82, %c0_83] : memref<8x1x8xf32, #tpu.memory_space<vmem>>, vector<1x1x8xf32>
    %99 = vector.shape_cast %98 : vector<1x1x8xf32> to vector<1x8xf32>
    %100 = vector.broadcast %99 : vector<1x8xf32> to vector<64x8xf32>
    %101 = arith.addf %97, %100 : vector<64x8xf32>
    %cst_84 = arith.constant dense<0.000000e+00> : vector<64x64xf32>
    %102 = tpu.matmul %87, %94, %cst_84 {dimension_numbers = #tpu.dot_dimension_numbers<[1], [1], [0], [0], [0, 0, 1, 0], [], []>} : vector<64x8xf32>, vector<64x8xf32>, vector<64x64xf32> -> vector<64x64xf32>
    %cst_85 = arith.constant 0.353553385 : f32
    %103 = vector.broadcast %cst_85 : f32 to vector<64x64xf32>
    %104 = arith.mulf %102, %103 : vector<64x64xf32>
    %cst_86 = arith.constant dense<0xFF800000> : vector<64xf32>
    %105 = vector.multi_reduction <maximumf>, %104, %cst_86 [1] : vector<64x64xf32> to vector<64xf32>
    %106 = vector.shape_cast %105 : vector<64xf32> to vector<64x1xf32>
    %107 = vector.broadcast %106 : vector<64x1xf32> to vector<64x64xf32>
    %108 = arith.subf %104, %107 : vector<64x64xf32>
    %109 = math.exp %108 : vector<64x64xf32>
    %cst_87 = arith.constant dense<0.000000e+00> : vector<64xf32>
    %110 = vector.multi_reduction <add>, %109, %cst_87 [1] : vector<64x64xf32> to vector<64xf32>
    %111 = vector.shape_cast %110 : vector<64xf32> to vector<64x1xf32>
    %112 = vector.broadcast %111 : vector<64x1xf32> to vector<64x64xf32>
    %113 = arith.divf %109, %112 : vector<64x64xf32>
    %cst_88 = arith.constant dense<0.000000e+00> : vector<64x8xf32>
    %114 = tpu.matmul %113, %101, %cst_88 {dimension_numbers = #tpu.dot_dimension_numbers<[1], [0], [0], [1], [0, 0, 1, 1], [], []>} : vector<64x64xf32>, vector<64x8xf32>, vector<64x8xf32> -> vector<64x8xf32>
    %c2_89 = arith.constant 2 : index
    %c0_90 = arith.constant 0 : index
    %c0_91 = arith.constant 0 : index
    %115 = vector.load %arg10[%c2_89, %c0_90, %c0_91] : memref<8x8x64xf32, #tpu.memory_space<vmem>>, vector<1x8x64xf32>
    %116 = vector.shape_cast %115 : vector<1x8x64xf32> to vector<8x64xf32>
    %cst_92 = arith.constant dense<0.000000e+00> : vector<64x64xf32>
    %117 = tpu.matmul %114, %116, %cst_92 {dimension_numbers = #tpu.dot_dimension_numbers<[1], [0], [0], [1], [0, 0, 1, 1], [], []>} : vector<64x8xf32>, vector<8x64xf32>, vector<64x64xf32> -> vector<64x64xf32>
    %118 = arith.addf %80, %117 : vector<64x64xf32>
    %c3 = arith.constant 3 : index
    %c0_93 = arith.constant 0 : index
    %c0_94 = arith.constant 0 : index
    %119 = vector.load %arg4[%c3, %c0_93, %c0_94] : memref<8x64x8xf32, #tpu.memory_space<vmem>>, vector<1x64x8xf32>
    %120 = vector.shape_cast %119 : vector<1x64x8xf32> to vector<64x8xf32>
    %cst_95 = arith.constant dense<0.000000e+00> : vector<64x8xf32>
    %121 = tpu.matmul %1, %120, %cst_95 {dimension_numbers = #tpu.dot_dimension_numbers<[1], [0], [0], [1], [0, 0, 1, 1], [], []>} : vector<64x64xf32>, vector<64x8xf32>, vector<64x8xf32> -> vector<64x8xf32>
    %c3_96 = arith.constant 3 : index
    %c0_97 = arith.constant 0 : index
    %c0_98 = arith.constant 0 : index
    %122 = vector.load %arg5[%c3_96, %c0_97, %c0_98] : memref<8x1x8xf32, #tpu.memory_space<vmem>>, vector<1x1x8xf32>
    %123 = vector.shape_cast %122 : vector<1x1x8xf32> to vector<1x8xf32>
    %124 = vector.broadcast %123 : vector<1x8xf32> to vector<64x8xf32>
    %125 = arith.addf %121, %124 : vector<64x8xf32>
    %c3_99 = arith.constant 3 : index
    %c0_100 = arith.constant 0 : index
    %c0_101 = arith.constant 0 : index
    %126 = vector.load %arg6[%c3_99, %c0_100, %c0_101] : memref<8x64x8xf32, #tpu.memory_space<vmem>>, vector<1x64x8xf32>
    %127 = vector.shape_cast %126 : vector<1x64x8xf32> to vector<64x8xf32>
    %cst_102 = arith.constant dense<0.000000e+00> : vector<64x8xf32>
    %128 = tpu.matmul %3, %127, %cst_102 {dimension_numbers = #tpu.dot_dimension_numbers<[1], [0], [0], [1], [0, 0, 1, 1], [], []>} : vector<64x64xf32>, vector<64x8xf32>, vector<64x8xf32> -> vector<64x8xf32>
    %c3_103 = arith.constant 3 : index
    %c0_104 = arith.constant 0 : index
    %c0_105 = arith.constant 0 : index
    %129 = vector.load %arg7[%c3_103, %c0_104, %c0_105] : memref<8x1x8xf32, #tpu.memory_space<vmem>>, vector<1x1x8xf32>
    %130 = vector.shape_cast %129 : vector<1x1x8xf32> to vector<1x8xf32>
    %131 = vector.broadcast %130 : vector<1x8xf32> to vector<64x8xf32>
    %132 = arith.addf %128, %131 : vector<64x8xf32>
    %c3_106 = arith.constant 3 : index
    %c0_107 = arith.constant 0 : index
    %c0_108 = arith.constant 0 : index
    %133 = vector.load %arg8[%c3_106, %c0_107, %c0_108] : memref<8x64x8xf32, #tpu.memory_space<vmem>>, vector<1x64x8xf32>
    %134 = vector.shape_cast %133 : vector<1x64x8xf32> to vector<64x8xf32>
    %cst_109 = arith.constant dense<0.000000e+00> : vector<64x8xf32>
    %135 = tpu.matmul %3, %134, %cst_109 {dimension_numbers = #tpu.dot_dimension_numbers<[1], [0], [0], [1], [0, 0, 1, 1], [], []>} : vector<64x64xf32>, vector<64x8xf32>, vector<64x8xf32> -> vector<64x8xf32>
    %c3_110 = arith.constant 3 : index
    %c0_111 = arith.constant 0 : index
    %c0_112 = arith.constant 0 : index
    %136 = vector.load %arg9[%c3_110, %c0_111, %c0_112] : memref<8x1x8xf32, #tpu.memory_space<vmem>>, vector<1x1x8xf32>
    %137 = vector.shape_cast %136 : vector<1x1x8xf32> to vector<1x8xf32>
    %138 = vector.broadcast %137 : vector<1x8xf32> to vector<64x8xf32>
    %139 = arith.addf %135, %138 : vector<64x8xf32>
    %cst_113 = arith.constant dense<0.000000e+00> : vector<64x64xf32>
    %140 = tpu.matmul %125, %132, %cst_113 {dimension_numbers = #tpu.dot_dimension_numbers<[1], [1], [0], [0], [0, 0, 1, 0], [], []>} : vector<64x8xf32>, vector<64x8xf32>, vector<64x64xf32> -> vector<64x64xf32>
    %cst_114 = arith.constant 0.353553385 : f32
    %141 = vector.broadcast %cst_114 : f32 to vector<64x64xf32>
    %142 = arith.mulf %140, %141 : vector<64x64xf32>
    %cst_115 = arith.constant dense<0xFF800000> : vector<64xf32>
    %143 = vector.multi_reduction <maximumf>, %142, %cst_115 [1] : vector<64x64xf32> to vector<64xf32>
    %144 = vector.shape_cast %143 : vector<64xf32> to vector<64x1xf32>
    %145 = vector.broadcast %144 : vector<64x1xf32> to vector<64x64xf32>
    %146 = arith.subf %142, %145 : vector<64x64xf32>
    %147 = math.exp %146 : vector<64x64xf32>
    %cst_116 = arith.constant dense<0.000000e+00> : vector<64xf32>
    %148 = vector.multi_reduction <add>, %147, %cst_116 [1] : vector<64x64xf32> to vector<64xf32>
    %149 = vector.shape_cast %148 : vector<64xf32> to vector<64x1xf32>
    %150 = vector.broadcast %149 : vector<64x1xf32> to vector<64x64xf32>
    %151 = arith.divf %147, %150 : vector<64x64xf32>
    %cst_117 = arith.constant dense<0.000000e+00> : vector<64x8xf32>
    %152 = tpu.matmul %151, %139, %cst_117 {dimension_numbers = #tpu.dot_dimension_numbers<[1], [0], [0], [1], [0, 0, 1, 1], [], []>} : vector<64x64xf32>, vector<64x8xf32>, vector<64x8xf32> -> vector<64x8xf32>
    %c3_118 = arith.constant 3 : index
    %c0_119 = arith.constant 0 : index
    %c0_120 = arith.constant 0 : index
    %153 = vector.load %arg10[%c3_118, %c0_119, %c0_120] : memref<8x8x64xf32, #tpu.memory_space<vmem>>, vector<1x8x64xf32>
    %154 = vector.shape_cast %153 : vector<1x8x64xf32> to vector<8x64xf32>
    %cst_121 = arith.constant dense<0.000000e+00> : vector<64x64xf32>
    %155 = tpu.matmul %152, %154, %cst_121 {dimension_numbers = #tpu.dot_dimension_numbers<[1], [0], [0], [1], [0, 0, 1, 1], [], []>} : vector<64x8xf32>, vector<8x64xf32>, vector<64x64xf32> -> vector<64x64xf32>
    %156 = arith.addf %118, %155 : vector<64x64xf32>
    %c4 = arith.constant 4 : index
    %c0_122 = arith.constant 0 : index
    %c0_123 = arith.constant 0 : index
    %157 = vector.load %arg4[%c4, %c0_122, %c0_123] : memref<8x64x8xf32, #tpu.memory_space<vmem>>, vector<1x64x8xf32>
    %158 = vector.shape_cast %157 : vector<1x64x8xf32> to vector<64x8xf32>
    %cst_124 = arith.constant dense<0.000000e+00> : vector<64x8xf32>
    %159 = tpu.matmul %1, %158, %cst_124 {dimension_numbers = #tpu.dot_dimension_numbers<[1], [0], [0], [1], [0, 0, 1, 1], [], []>} : vector<64x64xf32>, vector<64x8xf32>, vector<64x8xf32> -> vector<64x8xf32>
    %c4_125 = arith.constant 4 : index
    %c0_126 = arith.constant 0 : index
    %c0_127 = arith.constant 0 : index
    %160 = vector.load %arg5[%c4_125, %c0_126, %c0_127] : memref<8x1x8xf32, #tpu.memory_space<vmem>>, vector<1x1x8xf32>
    %161 = vector.shape_cast %160 : vector<1x1x8xf32> to vector<1x8xf32>
    %162 = vector.broadcast %161 : vector<1x8xf32> to vector<64x8xf32>
    %163 = arith.addf %159, %162 : vector<64x8xf32>
    %c4_128 = arith.constant 4 : index
    %c0_129 = arith.constant 0 : index
    %c0_130 = arith.constant 0 : index
    %164 = vector.load %arg6[%c4_128, %c0_129, %c0_130] : memref<8x64x8xf32, #tpu.memory_space<vmem>>, vector<1x64x8xf32>
    %165 = vector.shape_cast %164 : vector<1x64x8xf32> to vector<64x8xf32>
    %cst_131 = arith.constant dense<0.000000e+00> : vector<64x8xf32>
    %166 = tpu.matmul %3, %165, %cst_131 {dimension_numbers = #tpu.dot_dimension_numbers<[1], [0], [0], [1], [0, 0, 1, 1], [], []>} : vector<64x64xf32>, vector<64x8xf32>, vector<64x8xf32> -> vector<64x8xf32>
    %c4_132 = arith.constant 4 : index
    %c0_133 = arith.constant 0 : index
    %c0_134 = arith.constant 0 : index
    %167 = vector.load %arg7[%c4_132, %c0_133, %c0_134] : memref<8x1x8xf32, #tpu.memory_space<vmem>>, vector<1x1x8xf32>
    %168 = vector.shape_cast %167 : vector<1x1x8xf32> to vector<1x8xf32>
    %169 = vector.broadcast %168 : vector<1x8xf32> to vector<64x8xf32>
    %170 = arith.addf %166, %169 : vector<64x8xf32>
    %c4_135 = arith.constant 4 : index
    %c0_136 = arith.constant 0 : index
    %c0_137 = arith.constant 0 : index
    %171 = vector.load %arg8[%c4_135, %c0_136, %c0_137] : memref<8x64x8xf32, #tpu.memory_space<vmem>>, vector<1x64x8xf32>
    %172 = vector.shape_cast %171 : vector<1x64x8xf32> to vector<64x8xf32>
    %cst_138 = arith.constant dense<0.000000e+00> : vector<64x8xf32>
    %173 = tpu.matmul %3, %172, %cst_138 {dimension_numbers = #tpu.dot_dimension_numbers<[1], [0], [0], [1], [0, 0, 1, 1], [], []>} : vector<64x64xf32>, vector<64x8xf32>, vector<64x8xf32> -> vector<64x8xf32>
    %c4_139 = arith.constant 4 : index
    %c0_140 = arith.constant 0 : index
    %c0_141 = arith.constant 0 : index
    %174 = vector.load %arg9[%c4_139, %c0_140, %c0_141] : memref<8x1x8xf32, #tpu.memory_space<vmem>>, vector<1x1x8xf32>
    %175 = vector.shape_cast %174 : vector<1x1x8xf32> to vector<1x8xf32>
    %176 = vector.broadcast %175 : vector<1x8xf32> to vector<64x8xf32>
    %177 = arith.addf %173, %176 : vector<64x8xf32>
    %cst_142 = arith.constant dense<0.000000e+00> : vector<64x64xf32>
    %178 = tpu.matmul %163, %170, %cst_142 {dimension_numbers = #tpu.dot_dimension_numbers<[1], [1], [0], [0], [0, 0, 1, 0], [], []>} : vector<64x8xf32>, vector<64x8xf32>, vector<64x64xf32> -> vector<64x64xf32>
    %cst_143 = arith.constant 0.353553385 : f32
    %179 = vector.broadcast %cst_143 : f32 to vector<64x64xf32>
    %180 = arith.mulf %178, %179 : vector<64x64xf32>
    %cst_144 = arith.constant dense<0xFF800000> : vector<64xf32>
    %181 = vector.multi_reduction <maximumf>, %180, %cst_144 [1] : vector<64x64xf32> to vector<64xf32>
    %182 = vector.shape_cast %181 : vector<64xf32> to vector<64x1xf32>
    %183 = vector.broadcast %182 : vector<64x1xf32> to vector<64x64xf32>
    %184 = arith.subf %180, %183 : vector<64x64xf32>
    %185 = math.exp %184 : vector<64x64xf32>
    %cst_145 = arith.constant dense<0.000000e+00> : vector<64xf32>
    %186 = vector.multi_reduction <add>, %185, %cst_145 [1] : vector<64x64xf32> to vector<64xf32>
    %187 = vector.shape_cast %186 : vector<64xf32> to vector<64x1xf32>
    %188 = vector.broadcast %187 : vector<64x1xf32> to vector<64x64xf32>
    %189 = arith.divf %185, %188 : vector<64x64xf32>
    %cst_146 = arith.constant dense<0.000000e+00> : vector<64x8xf32>
    %190 = tpu.matmul %189, %177, %cst_146 {dimension_numbers = #tpu.dot_dimension_numbers<[1], [0], [0], [1], [0, 0, 1, 1], [], []>} : vector<64x64xf32>, vector<64x8xf32>, vector<64x8xf32> -> vector<64x8xf32>
    %c4_147 = arith.constant 4 : index
    %c0_148 = arith.constant 0 : index
    %c0_149 = arith.constant 0 : index
    %191 = vector.load %arg10[%c4_147, %c0_148, %c0_149] : memref<8x8x64xf32, #tpu.memory_space<vmem>>, vector<1x8x64xf32>
    %192 = vector.shape_cast %191 : vector<1x8x64xf32> to vector<8x64xf32>
    %cst_150 = arith.constant dense<0.000000e+00> : vector<64x64xf32>
    %193 = tpu.matmul %190, %192, %cst_150 {dimension_numbers = #tpu.dot_dimension_numbers<[1], [0], [0], [1], [0, 0, 1, 1], [], []>} : vector<64x8xf32>, vector<8x64xf32>, vector<64x64xf32> -> vector<64x64xf32>
    %194 = arith.addf %156, %193 : vector<64x64xf32>
    %c5 = arith.constant 5 : index
    %c0_151 = arith.constant 0 : index
    %c0_152 = arith.constant 0 : index
    %195 = vector.load %arg4[%c5, %c0_151, %c0_152] : memref<8x64x8xf32, #tpu.memory_space<vmem>>, vector<1x64x8xf32>
    %196 = vector.shape_cast %195 : vector<1x64x8xf32> to vector<64x8xf32>
    %cst_153 = arith.constant dense<0.000000e+00> : vector<64x8xf32>
    %197 = tpu.matmul %1, %196, %cst_153 {dimension_numbers = #tpu.dot_dimension_numbers<[1], [0], [0], [1], [0, 0, 1, 1], [], []>} : vector<64x64xf32>, vector<64x8xf32>, vector<64x8xf32> -> vector<64x8xf32>
    %c5_154 = arith.constant 5 : index
    %c0_155 = arith.constant 0 : index
    %c0_156 = arith.constant 0 : index
    %198 = vector.load %arg5[%c5_154, %c0_155, %c0_156] : memref<8x1x8xf32, #tpu.memory_space<vmem>>, vector<1x1x8xf32>
    %199 = vector.shape_cast %198 : vector<1x1x8xf32> to vector<1x8xf32>
    %200 = vector.broadcast %199 : vector<1x8xf32> to vector<64x8xf32>
    %201 = arith.addf %197, %200 : vector<64x8xf32>
    %c5_157 = arith.constant 5 : index
    %c0_158 = arith.constant 0 : index
    %c0_159 = arith.constant 0 : index
    %202 = vector.load %arg6[%c5_157, %c0_158, %c0_159] : memref<8x64x8xf32, #tpu.memory_space<vmem>>, vector<1x64x8xf32>
    %203 = vector.shape_cast %202 : vector<1x64x8xf32> to vector<64x8xf32>
    %cst_160 = arith.constant dense<0.000000e+00> : vector<64x8xf32>
    %204 = tpu.matmul %3, %203, %cst_160 {dimension_numbers = #tpu.dot_dimension_numbers<[1], [0], [0], [1], [0, 0, 1, 1], [], []>} : vector<64x64xf32>, vector<64x8xf32>, vector<64x8xf32> -> vector<64x8xf32>
    %c5_161 = arith.constant 5 : index
    %c0_162 = arith.constant 0 : index
    %c0_163 = arith.constant 0 : index
    %205 = vector.load %arg7[%c5_161, %c0_162, %c0_163] : memref<8x1x8xf32, #tpu.memory_space<vmem>>, vector<1x1x8xf32>
    %206 = vector.shape_cast %205 : vector<1x1x8xf32> to vector<1x8xf32>
    %207 = vector.broadcast %206 : vector<1x8xf32> to vector<64x8xf32>
    %208 = arith.addf %204, %207 : vector<64x8xf32>
    %c5_164 = arith.constant 5 : index
    %c0_165 = arith.constant 0 : index
    %c0_166 = arith.constant 0 : index
    %209 = vector.load %arg8[%c5_164, %c0_165, %c0_166] : memref<8x64x8xf32, #tpu.memory_space<vmem>>, vector<1x64x8xf32>
    %210 = vector.shape_cast %209 : vector<1x64x8xf32> to vector<64x8xf32>
    %cst_167 = arith.constant dense<0.000000e+00> : vector<64x8xf32>
    %211 = tpu.matmul %3, %210, %cst_167 {dimension_numbers = #tpu.dot_dimension_numbers<[1], [0], [0], [1], [0, 0, 1, 1], [], []>} : vector<64x64xf32>, vector<64x8xf32>, vector<64x8xf32> -> vector<64x8xf32>
    %c5_168 = arith.constant 5 : index
    %c0_169 = arith.constant 0 : index
    %c0_170 = arith.constant 0 : index
    %212 = vector.load %arg9[%c5_168, %c0_169, %c0_170] : memref<8x1x8xf32, #tpu.memory_space<vmem>>, vector<1x1x8xf32>
    %213 = vector.shape_cast %212 : vector<1x1x8xf32> to vector<1x8xf32>
    %214 = vector.broadcast %213 : vector<1x8xf32> to vector<64x8xf32>
    %215 = arith.addf %211, %214 : vector<64x8xf32>
    %cst_171 = arith.constant dense<0.000000e+00> : vector<64x64xf32>
    %216 = tpu.matmul %201, %208, %cst_171 {dimension_numbers = #tpu.dot_dimension_numbers<[1], [1], [0], [0], [0, 0, 1, 0], [], []>} : vector<64x8xf32>, vector<64x8xf32>, vector<64x64xf32> -> vector<64x64xf32>
    %cst_172 = arith.constant 0.353553385 : f32
    %217 = vector.broadcast %cst_172 : f32 to vector<64x64xf32>
    %218 = arith.mulf %216, %217 : vector<64x64xf32>
    %cst_173 = arith.constant dense<0xFF800000> : vector<64xf32>
    %219 = vector.multi_reduction <maximumf>, %218, %cst_173 [1] : vector<64x64xf32> to vector<64xf32>
    %220 = vector.shape_cast %219 : vector<64xf32> to vector<64x1xf32>
    %221 = vector.broadcast %220 : vector<64x1xf32> to vector<64x64xf32>
    %222 = arith.subf %218, %221 : vector<64x64xf32>
    %223 = math.exp %222 : vector<64x64xf32>
    %cst_174 = arith.constant dense<0.000000e+00> : vector<64xf32>
    %224 = vector.multi_reduction <add>, %223, %cst_174 [1] : vector<64x64xf32> to vector<64xf32>
    %225 = vector.shape_cast %224 : vector<64xf32> to vector<64x1xf32>
    %226 = vector.broadcast %225 : vector<64x1xf32> to vector<64x64xf32>
    %227 = arith.divf %223, %226 : vector<64x64xf32>
    %cst_175 = arith.constant dense<0.000000e+00> : vector<64x8xf32>
    %228 = tpu.matmul %227, %215, %cst_175 {dimension_numbers = #tpu.dot_dimension_numbers<[1], [0], [0], [1], [0, 0, 1, 1], [], []>} : vector<64x64xf32>, vector<64x8xf32>, vector<64x8xf32> -> vector<64x8xf32>
    %c5_176 = arith.constant 5 : index
    %c0_177 = arith.constant 0 : index
    %c0_178 = arith.constant 0 : index
    %229 = vector.load %arg10[%c5_176, %c0_177, %c0_178] : memref<8x8x64xf32, #tpu.memory_space<vmem>>, vector<1x8x64xf32>
    %230 = vector.shape_cast %229 : vector<1x8x64xf32> to vector<8x64xf32>
    %cst_179 = arith.constant dense<0.000000e+00> : vector<64x64xf32>
    %231 = tpu.matmul %228, %230, %cst_179 {dimension_numbers = #tpu.dot_dimension_numbers<[1], [0], [0], [1], [0, 0, 1, 1], [], []>} : vector<64x8xf32>, vector<8x64xf32>, vector<64x64xf32> -> vector<64x64xf32>
    %232 = arith.addf %194, %231 : vector<64x64xf32>
    %c6 = arith.constant 6 : index
    %c0_180 = arith.constant 0 : index
    %c0_181 = arith.constant 0 : index
    %233 = vector.load %arg4[%c6, %c0_180, %c0_181] : memref<8x64x8xf32, #tpu.memory_space<vmem>>, vector<1x64x8xf32>
    %234 = vector.shape_cast %233 : vector<1x64x8xf32> to vector<64x8xf32>
    %cst_182 = arith.constant dense<0.000000e+00> : vector<64x8xf32>
    %235 = tpu.matmul %1, %234, %cst_182 {dimension_numbers = #tpu.dot_dimension_numbers<[1], [0], [0], [1], [0, 0, 1, 1], [], []>} : vector<64x64xf32>, vector<64x8xf32>, vector<64x8xf32> -> vector<64x8xf32>
    %c6_183 = arith.constant 6 : index
    %c0_184 = arith.constant 0 : index
    %c0_185 = arith.constant 0 : index
    %236 = vector.load %arg5[%c6_183, %c0_184, %c0_185] : memref<8x1x8xf32, #tpu.memory_space<vmem>>, vector<1x1x8xf32>
    %237 = vector.shape_cast %236 : vector<1x1x8xf32> to vector<1x8xf32>
    %238 = vector.broadcast %237 : vector<1x8xf32> to vector<64x8xf32>
    %239 = arith.addf %235, %238 : vector<64x8xf32>
    %c6_186 = arith.constant 6 : index
    %c0_187 = arith.constant 0 : index
    %c0_188 = arith.constant 0 : index
    %240 = vector.load %arg6[%c6_186, %c0_187, %c0_188] : memref<8x64x8xf32, #tpu.memory_space<vmem>>, vector<1x64x8xf32>
    %241 = vector.shape_cast %240 : vector<1x64x8xf32> to vector<64x8xf32>
    %cst_189 = arith.constant dense<0.000000e+00> : vector<64x8xf32>
    %242 = tpu.matmul %3, %241, %cst_189 {dimension_numbers = #tpu.dot_dimension_numbers<[1], [0], [0], [1], [0, 0, 1, 1], [], []>} : vector<64x64xf32>, vector<64x8xf32>, vector<64x8xf32> -> vector<64x8xf32>
    %c6_190 = arith.constant 6 : index
    %c0_191 = arith.constant 0 : index
    %c0_192 = arith.constant 0 : index
    %243 = vector.load %arg7[%c6_190, %c0_191, %c0_192] : memref<8x1x8xf32, #tpu.memory_space<vmem>>, vector<1x1x8xf32>
    %244 = vector.shape_cast %243 : vector<1x1x8xf32> to vector<1x8xf32>
    %245 = vector.broadcast %244 : vector<1x8xf32> to vector<64x8xf32>
    %246 = arith.addf %242, %245 : vector<64x8xf32>
    %c6_193 = arith.constant 6 : index
    %c0_194 = arith.constant 0 : index
    %c0_195 = arith.constant 0 : index
    %247 = vector.load %arg8[%c6_193, %c0_194, %c0_195] : memref<8x64x8xf32, #tpu.memory_space<vmem>>, vector<1x64x8xf32>
    %248 = vector.shape_cast %247 : vector<1x64x8xf32> to vector<64x8xf32>
    %cst_196 = arith.constant dense<0.000000e+00> : vector<64x8xf32>
    %249 = tpu.matmul %3, %248, %cst_196 {dimension_numbers = #tpu.dot_dimension_numbers<[1], [0], [0], [1], [0, 0, 1, 1], [], []>} : vector<64x64xf32>, vector<64x8xf32>, vector<64x8xf32> -> vector<64x8xf32>
    %c6_197 = arith.constant 6 : index
    %c0_198 = arith.constant 0 : index
    %c0_199 = arith.constant 0 : index
    %250 = vector.load %arg9[%c6_197, %c0_198, %c0_199] : memref<8x1x8xf32, #tpu.memory_space<vmem>>, vector<1x1x8xf32>
    %251 = vector.shape_cast %250 : vector<1x1x8xf32> to vector<1x8xf32>
    %252 = vector.broadcast %251 : vector<1x8xf32> to vector<64x8xf32>
    %253 = arith.addf %249, %252 : vector<64x8xf32>
    %cst_200 = arith.constant dense<0.000000e+00> : vector<64x64xf32>
    %254 = tpu.matmul %239, %246, %cst_200 {dimension_numbers = #tpu.dot_dimension_numbers<[1], [1], [0], [0], [0, 0, 1, 0], [], []>} : vector<64x8xf32>, vector<64x8xf32>, vector<64x64xf32> -> vector<64x64xf32>
    %cst_201 = arith.constant 0.353553385 : f32
    %255 = vector.broadcast %cst_201 : f32 to vector<64x64xf32>
    %256 = arith.mulf %254, %255 : vector<64x64xf32>
    %cst_202 = arith.constant dense<0xFF800000> : vector<64xf32>
    %257 = vector.multi_reduction <maximumf>, %256, %cst_202 [1] : vector<64x64xf32> to vector<64xf32>
    %258 = vector.shape_cast %257 : vector<64xf32> to vector<64x1xf32>
    %259 = vector.broadcast %258 : vector<64x1xf32> to vector<64x64xf32>
    %260 = arith.subf %256, %259 : vector<64x64xf32>
    %261 = math.exp %260 : vector<64x64xf32>
    %cst_203 = arith.constant dense<0.000000e+00> : vector<64xf32>
    %262 = vector.multi_reduction <add>, %261, %cst_203 [1] : vector<64x64xf32> to vector<64xf32>
    %263 = vector.shape_cast %262 : vector<64xf32> to vector<64x1xf32>
    %264 = vector.broadcast %263 : vector<64x1xf32> to vector<64x64xf32>
    %265 = arith.divf %261, %264 : vector<64x64xf32>
    %cst_204 = arith.constant dense<0.000000e+00> : vector<64x8xf32>
    %266 = tpu.matmul %265, %253, %cst_204 {dimension_numbers = #tpu.dot_dimension_numbers<[1], [0], [0], [1], [0, 0, 1, 1], [], []>} : vector<64x64xf32>, vector<64x8xf32>, vector<64x8xf32> -> vector<64x8xf32>
    %c6_205 = arith.constant 6 : index
    %c0_206 = arith.constant 0 : index
    %c0_207 = arith.constant 0 : index
    %267 = vector.load %arg10[%c6_205, %c0_206, %c0_207] : memref<8x8x64xf32, #tpu.memory_space<vmem>>, vector<1x8x64xf32>
    %268 = vector.shape_cast %267 : vector<1x8x64xf32> to vector<8x64xf32>
    %cst_208 = arith.constant dense<0.000000e+00> : vector<64x64xf32>
    %269 = tpu.matmul %266, %268, %cst_208 {dimension_numbers = #tpu.dot_dimension_numbers<[1], [0], [0], [1], [0, 0, 1, 1], [], []>} : vector<64x8xf32>, vector<8x64xf32>, vector<64x64xf32> -> vector<64x64xf32>
    %270 = arith.addf %232, %269 : vector<64x64xf32>
    %c7 = arith.constant 7 : index
    %c0_209 = arith.constant 0 : index
    %c0_210 = arith.constant 0 : index
    %271 = vector.load %arg4[%c7, %c0_209, %c0_210] : memref<8x64x8xf32, #tpu.memory_space<vmem>>, vector<1x64x8xf32>
    %272 = vector.shape_cast %271 : vector<1x64x8xf32> to vector<64x8xf32>
    %cst_211 = arith.constant dense<0.000000e+00> : vector<64x8xf32>
    %273 = tpu.matmul %1, %272, %cst_211 {dimension_numbers = #tpu.dot_dimension_numbers<[1], [0], [0], [1], [0, 0, 1, 1], [], []>} : vector<64x64xf32>, vector<64x8xf32>, vector<64x8xf32> -> vector<64x8xf32>
    %c7_212 = arith.constant 7 : index
    %c0_213 = arith.constant 0 : index
    %c0_214 = arith.constant 0 : index
    %274 = vector.load %arg5[%c7_212, %c0_213, %c0_214] : memref<8x1x8xf32, #tpu.memory_space<vmem>>, vector<1x1x8xf32>
    %275 = vector.shape_cast %274 : vector<1x1x8xf32> to vector<1x8xf32>
    %276 = vector.broadcast %275 : vector<1x8xf32> to vector<64x8xf32>
    %277 = arith.addf %273, %276 : vector<64x8xf32>
    %c7_215 = arith.constant 7 : index
    %c0_216 = arith.constant 0 : index
    %c0_217 = arith.constant 0 : index
    %278 = vector.load %arg6[%c7_215, %c0_216, %c0_217] : memref<8x64x8xf32, #tpu.memory_space<vmem>>, vector<1x64x8xf32>
    %279 = vector.shape_cast %278 : vector<1x64x8xf32> to vector<64x8xf32>
    %cst_218 = arith.constant dense<0.000000e+00> : vector<64x8xf32>
    %280 = tpu.matmul %3, %279, %cst_218 {dimension_numbers = #tpu.dot_dimension_numbers<[1], [0], [0], [1], [0, 0, 1, 1], [], []>} : vector<64x64xf32>, vector<64x8xf32>, vector<64x8xf32> -> vector<64x8xf32>
    %c7_219 = arith.constant 7 : index
    %c0_220 = arith.constant 0 : index
    %c0_221 = arith.constant 0 : index
    %281 = vector.load %arg7[%c7_219, %c0_220, %c0_221] : memref<8x1x8xf32, #tpu.memory_space<vmem>>, vector<1x1x8xf32>
    %282 = vector.shape_cast %281 : vector<1x1x8xf32> to vector<1x8xf32>
    %283 = vector.broadcast %282 : vector<1x8xf32> to vector<64x8xf32>
    %284 = arith.addf %280, %283 : vector<64x8xf32>
    %c7_222 = arith.constant 7 : index
    %c0_223 = arith.constant 0 : index
    %c0_224 = arith.constant 0 : index
    %285 = vector.load %arg8[%c7_222, %c0_223, %c0_224] : memref<8x64x8xf32, #tpu.memory_space<vmem>>, vector<1x64x8xf32>
    %286 = vector.shape_cast %285 : vector<1x64x8xf32> to vector<64x8xf32>
    %cst_225 = arith.constant dense<0.000000e+00> : vector<64x8xf32>
    %287 = tpu.matmul %3, %286, %cst_225 {dimension_numbers = #tpu.dot_dimension_numbers<[1], [0], [0], [1], [0, 0, 1, 1], [], []>} : vector<64x64xf32>, vector<64x8xf32>, vector<64x8xf32> -> vector<64x8xf32>
    %c7_226 = arith.constant 7 : index
    %c0_227 = arith.constant 0 : index
    %c0_228 = arith.constant 0 : index
    %288 = vector.load %arg9[%c7_226, %c0_227, %c0_228] : memref<8x1x8xf32, #tpu.memory_space<vmem>>, vector<1x1x8xf32>
    %289 = vector.shape_cast %288 : vector<1x1x8xf32> to vector<1x8xf32>
    %290 = vector.broadcast %289 : vector<1x8xf32> to vector<64x8xf32>
    %291 = arith.addf %287, %290 : vector<64x8xf32>
    %cst_229 = arith.constant dense<0.000000e+00> : vector<64x64xf32>
    %292 = tpu.matmul %277, %284, %cst_229 {dimension_numbers = #tpu.dot_dimension_numbers<[1], [1], [0], [0], [0, 0, 1, 0], [], []>} : vector<64x8xf32>, vector<64x8xf32>, vector<64x64xf32> -> vector<64x64xf32>
    %cst_230 = arith.constant 0.353553385 : f32
    %293 = vector.broadcast %cst_230 : f32 to vector<64x64xf32>
    %294 = arith.mulf %292, %293 : vector<64x64xf32>
    %cst_231 = arith.constant dense<0xFF800000> : vector<64xf32>
    %295 = vector.multi_reduction <maximumf>, %294, %cst_231 [1] : vector<64x64xf32> to vector<64xf32>
    %296 = vector.shape_cast %295 : vector<64xf32> to vector<64x1xf32>
    %297 = vector.broadcast %296 : vector<64x1xf32> to vector<64x64xf32>
    %298 = arith.subf %294, %297 : vector<64x64xf32>
    %299 = math.exp %298 : vector<64x64xf32>
    %cst_232 = arith.constant dense<0.000000e+00> : vector<64xf32>
    %300 = vector.multi_reduction <add>, %299, %cst_232 [1] : vector<64x64xf32> to vector<64xf32>
    %301 = vector.shape_cast %300 : vector<64xf32> to vector<64x1xf32>
    %302 = vector.broadcast %301 : vector<64x1xf32> to vector<64x64xf32>
    %303 = arith.divf %299, %302 : vector<64x64xf32>
    %cst_233 = arith.constant dense<0.000000e+00> : vector<64x8xf32>
    %304 = tpu.matmul %303, %291, %cst_233 {dimension_numbers = #tpu.dot_dimension_numbers<[1], [0], [0], [1], [0, 0, 1, 1], [], []>} : vector<64x64xf32>, vector<64x8xf32>, vector<64x8xf32> -> vector<64x8xf32>
    %c7_234 = arith.constant 7 : index
    %c0_235 = arith.constant 0 : index
    %c0_236 = arith.constant 0 : index
    %305 = vector.load %arg10[%c7_234, %c0_235, %c0_236] : memref<8x8x64xf32, #tpu.memory_space<vmem>>, vector<1x8x64xf32>
    %306 = vector.shape_cast %305 : vector<1x8x64xf32> to vector<8x64xf32>
    %cst_237 = arith.constant dense<0.000000e+00> : vector<64x64xf32>
    %307 = tpu.matmul %304, %306, %cst_237 {dimension_numbers = #tpu.dot_dimension_numbers<[1], [0], [0], [1], [0, 0, 1, 1], [], []>} : vector<64x8xf32>, vector<8x64xf32>, vector<64x64xf32> -> vector<64x64xf32>
    %308 = arith.addf %270, %307 : vector<64x64xf32>
    %c0_238 = arith.constant 0 : index
    %c0_239 = arith.constant 0 : index
    %309 = vector.load %arg11[%c0_238, %c0_239] : memref<1x64xf32, #tpu.memory_space<vmem>>, vector<1x64xf32>
    %310 = vector.broadcast %309 : vector<1x64xf32> to vector<64x64xf32>
    %311 = arith.addf %308, %310 : vector<64x64xf32>
    %c0_240 = arith.constant 0 : index
    %c0_241 = arith.constant 0 : index
    %c0_242 = arith.constant 0 : index
    %312 = vector.load %arg12[%c0_240, %c0_241, %c0_242] : memref<1x64x64xf32, #tpu.memory_space<vmem>>, vector<1x64x64xf32>
    %313 = vector.shape_cast %312 : vector<1x64x64xf32> to vector<64x64xf32>
    %314 = vector.shape_cast %311 : vector<64x64xf32> to vector<1x64x64xf32>
    tpu.vector_store %arg12[%c0_240, %c0_241, %c0_242], %314 {strides = array<i32>} : memref<1x64x64xf32, #tpu.memory_space<vmem>>, vector<1x64x64xf32>,
    return
  }
  func.func @transform_0(%arg0: i32, %arg1: i32) -> (i32, i32, i32) {
    %c0_i32 = arith.constant 0 : i32
    %c0_i32_0 = arith.constant 0 : i32
    return %arg0, %arg1, %c0_i32 : i32, i32, i32
  }
  func.func @transform_1(%arg0: i32, %arg1: i32) -> (i32, i32, i32) {
    %c0_i32 = arith.constant 0 : i32
    %c0_i32_0 = arith.constant 0 : i32
    %c0_i32_1 = arith.constant 0 : i32
    return %arg0, %c0_i32, %c0_i32_0 : i32, i32, i32
  }
  func.func @transform_2(%arg0: i32, %arg1: i32) -> (i32, i32, i32) {
    %c0_i32 = arith.constant 0 : i32
    %c0_i32_0 = arith.constant 0 : i32
    %c0_i32_1 = arith.constant 0 : i32
    %c0_i32_2 = arith.constant 0 : i32
    return %c0_i32, %c0_i32_0, %c0_i32_1 : i32, i32, i32
  }
  func.func @transform_3(%arg0: i32, %arg1: i32) -> (i32, i32, i32) {
    %c0_i32 = arith.constant 0 : i32
    %c0_i32_0 = arith.constant 0 : i32
    %c0_i32_1 = arith.constant 0 : i32
    %c0_i32_2 = arith.constant 0 : i32
    return %c0_i32, %c0_i32_0, %c0_i32_1 : i32, i32, i32
  }
  func.func @transform_4(%arg0: i32, %arg1: i32) -> (i32, i32, i32) {
    %c0_i32 = arith.constant 0 : i32
    %c0_i32_0 = arith.constant 0 : i32
    %c0_i32_1 = arith.constant 0 : i32
    %c0_i32_2 = arith.constant 0 : i32
    return %c0_i32, %c0_i32_0, %c0_i32_1 : i32, i32, i32
  }
  func.func @transform_5(%arg0: i32, %arg1: i32) -> (i32, i32, i32) {
    %c0_i32 = arith.constant 0 : i32
    %c0_i32_0 = arith.constant 0 : i32
    %c0_i32_1 = arith.constant 0 : i32
    %c0_i32_2 = arith.constant 0 : i32
    return %c0_i32, %c0_i32_0, %c0_i32_1 : i32, i32, i32
  }
  func.func @transform_6(%arg0: i32, %arg1: i32) -> (i32, i32, i32) {
    %c0_i32 = arith.constant 0 : i32
    %c0_i32_0 = arith.constant 0 : i32
    %c0_i32_1 = arith.constant 0 : i32
    %c0_i32_2 = arith.constant 0 : i32
    return %c0_i32, %c0_i32_0, %c0_i32_1 : i32, i32, i32
  }
  func.func @transform_7(%arg0: i32, %arg1: i32) -> (i32, i32, i32) {
    %c0_i32 = arith.constant 0 : i32
    %c0_i32_0 = arith.constant 0 : i32
    %c0_i32_1 = arith.constant 0 : i32
    %c0_i32_2 = arith.constant 0 : i32
    return %c0_i32, %c0_i32_0, %c0_i32_1 : i32, i32, i32
  }
  func.func @transform_8(%arg0: i32, %arg1: i32) -> (i32, i32, i32) {
    %c0_i32 = arith.constant 0 : i32
    %c0_i32_0 = arith.constant 0 : i32
    %c0_i32_1 = arith.constant 0 : i32
    %c0_i32_2 = arith.constant 0 : i32
    return %c0_i32, %c0_i32_0, %c0_i32_1 : i32, i32, i32
  }
  func.func @transform_9(%arg0: i32, %arg1: i32) -> (i32, i32) {
    %c0_i32 = arith.constant 0 : i32
    %c0_i32_0 = arith.constant 0 : i32
    %c0_i32_1 = arith.constant 0 : i32
    return %c0_i32, %c0_i32_0 : i32, i32
  }
  func.func @transform_10(%arg0: i32, %arg1: i32) -> (i32, i32, i32) {
    %c0_i32 = arith.constant 0 : i32
    %c0_i32_0 = arith.constant 0 : i32
    return %arg0, %arg1, %c0_i32 : i32, i32, i32
  }
}

</mosaic_0001>

<bundles_post_ra>
// kernel: tpu_custom_call.1
= control target key start
LH: loop header
LB: loop body
LE: loop exit
PB: predicated region body
PF: predicated region fallthrough
CT: control target
= control target key end

     0   :  { %s13179_s0 = inlined_call_operand.vmem [shape: f32[2,64,64], index: 0, kind: input, shape index: {}]   ;;  %s13180_s1 = inlined_call_operand.vmem [shape: f32[2,64,64], index: 1, kind: input, shape index: {}]   ;;  %s13181_s2 = inlined_call_operand.vmem [shape: f32[8,64,8], index: 2, kind: input, shape index: {}]   ;;  %s13182_s3 = inlined_call_operand.vmem [shape: f32[8,1,8], index: 3, kind: input, shape index: {}]   ;;  %s13183_s4 = inlined_call_operand.vmem [shape: f32[8,64,8], index: 4, kind: input, shape index: {}]   ;;  %s13184_s5 = inlined_call_operand.vmem [shape: f32[8,1,8], index: 5, kind: input, shape index: {}]   ;;  %s13185_s6 = inlined_call_operand.vmem [shape: f32[8,64,8], index: 6, kind: input, shape index: {}]   ;;  %s13186_s7 = inlined_call_operand.vmem [shape: f32[8,1,8], index: 7, kind: input, shape index: {}]   ;;  %s13187_s8 = inlined_call_operand.vmem [shape: f32[8,8,64], index: 8, kind: input, shape index: {}]   ;;  %s13188_s9 = inlined_call_operand.vmem [shape: f32[1,64], index: 9, kind: input, shape index: {}]   ;;  %s13189_s10 = inlined_call_operand.hbm [shape: f32[2,64,64], index: 10, kind: output, shape index: {}]  }
   0x1   :  { %13192 = sst [smem:[#allocation6_spill]] %s13180_s1 }
   0x2   :  { %15 = vsyncpa [#allocation3], 0 }
   0x3   :  { %17 = vsyncpa [#allocation3 + $0x1], 0  ;;  %s10781_s13 = smov 0   ;;  %s10783_s14 = smov 0  }
   0x4   :  { %s10785_s15 = smov 0   ;;  %s10787_s16 = smov 0  }
   0x5   :  { %s10789_s17 = smov 0   ;;  %s10791_s18 = smov 0  }
   0x6 LB: > { %s7646_s19 = sadd.s32 4294967295, %s10721_s18   ;;  %s7647_s20 = sadd.s32 4294967294, %s10721_s18   ;;  %s10721_s18 = sphi %s10791_s18, %s23_s18   ;;  %s10717_s17 = sphi %s10789_s17, %s13203_s17   ;;  %s10713_s16 = sphi %s10787_s16, %s13202_s16   ;;  %s10709_s15 = sphi %s10785_s15, %s13201_s15   ;;  %s10705_s14 = sphi %s10783_s14, %s13200_s14   ;;  %s10701_s13 = sphi %s10781_s13, %s13199_s13  }
   0x7   : > { %s35_s21 = sadd.s32 1, %s10717_s17  ;;  %s266_s22 = sadd.s32 1, %s10709_s15 }
   0x8   : > { %p37_p0 = scmp.ge.s32.totalorder %s35_s21, 2  ;;  %p276_p1 = scmp.ne.s32.totalorder %s10709_s15, %s10705_s14 }
   0x9   : > { %p277_p2 = scmp.eq.s32.totalorder %s7646_s19, 1  ;;  %p282_p3 = scmp.ne.s32.totalorder %s10705_s14, %s10701_s13 }
   0xa   : > { %s13205_s21 = smov (%p37_p0, %s35_s21), 0  ;;  %p283_p5 = scmp.eq.s32.totalorder %s7647_s20, 1 }
   0xb   : > { %13193 = sst [smem:[#allocation5_spill]] %s13205_s21  ;;  %p10821_p4 = por %p277_p2, %p276_p1 }
   0xc   : > { %s261_s24 = ssub.s32 %s10717_s17, %s13205_s21  ;;  %p7650_p6 = scmp.ge.s32.totalorder %s10721_s18, 1 }
   0xd   : > { %p264_p7 = scmp.eq.s32.totalorder %s261_s24, 0  ;;  %p10828_p8 = por %p283_p5, %p282_p3 }
   0xe   : > { %p346_p9 = scmp.lt.s32.totalorder %s10721_s18, 3 }
   0xf   : > { %s10834_s26 = scalar_select %p264_p7, %s10709_s15, %s266_s22  }
  0x10   : > { %p347_p10 = pnand %p7650_p6, %p346_p9 }
  0x11   : > { %p394_p11 = scmp.lt.s32.totalorder (!%p347_p10), %s10713_s16, 1  ;;  %s13196_s1 = sld [smem:[#allocation6_spill]] (!%p347_p10) }
  0x12   : > { %350 = sbr.rel (%p347_p10) target bundleno = 7662 (0x1dee), region = 60  ;;  %s390_s28 = sand.u32 (!%p347_p10), 1, %s10705_s14  }
  0x13   : > { %s7651_s29 = sshll.u32 (!%p347_p10), %s390_s28, 6  ;;  %s8332_s11 = sshll.u32 (!%p347_p10), %s10713_s16, 10 }
  0x14   : > { %s13126_s27 = scalar_lea.hbm (!%p347_p10), %s13189_s10, %s8332_s11 }
  0x17   : > { %v577_v0 = vld [vmem:[%s13183_s4 + $0x38] sm:$0xff]  ;;  %v576_v1 = vld [vmem:[%s13183_s4 + $0x30] sm:$0xff]  ;;  %v575_v2 = vld [vmem:[%s13183_s4 + $0x28] sm:$0xff]  ;;  %s10847_s19 = scalar_select %p394_p11, %s10713_s16, 1  ;;  %vm440_vm0 = vcmask 523264   ;;  %vm834_vm1 = vcmask 64512  }
  0x18   : > { %9073 = vmatprep.subr.mxu1 %v577_v0  ;;  %v432_v3 = vld [vmem:[%s13181_s2 + $0x38] sm:$0xff]  ;;  %v431_v4 = vld [vmem:[%s13181_s2 + $0x30] sm:$0xff]  ;;  %v574_v5 = vld [vmem:[%s13183_s4 + $0x20] sm:$0xff]  ;;  %s13134_s16 = scalar_lea.sflag [#allocation3], %s390_s28 }
  0x19   : > { %9074 = vmatpush3.msra.mxu1 %v577_v0  ;;  %9045 = vmatprep.subr.mxu0 %v432_v3  ;;  %s13190_s30 = sshll.u32 %s10847_s19, 6  ;;  %v430_v6 = vld [vmem:[%s13181_s2 + $0x28] sm:$0xff]  ;;  %v573_v7 = vld [vmem:[%s13183_s4 + $0x18] sm:$0xff]  ;;  %v429_v9 = vld [vmem:[%s13181_s2 + $0x20] sm:$0xff] }
  0x1a   : > { %9075 = vmatprep.subr.mxu1 %v576_v1  ;;  %9046 = vmatpush3.msra.mxu0 %v432_v3  ;;  %s10864_s20 = scalar_lea.vmem %s13196_s1, %s13190_s30  ;;  %v572_v10 = vld [vmem:[%s13183_s4 + $0x10] sm:$0xff]  ;;  %v428_v11 = vld [vmem:[%s13181_s2 + $0x18] sm:$0xff]  ;;  %v571_v12 = vld [vmem:[%s13183_s4 + $0x8] sm:$0xff]  ;;  %s13197_s30 = sshll.u32 %s10847_s19, 6 }
  0x1b   : > { %9076 = vmatpush3.msra.mxu1 %v576_v1  ;;  %9047 = vmatprep.subr.mxu0 %v431_v4  ;;  %v10873_v8 = vld [vmem:[%s10864_s20] sm:$0xff]  ;;  %v427_v13 = vld [vmem:[%s13181_s2 + $0x10] sm:$0xff]  ;;  %v426_v15 = vld [vmem:[%s13181_s2 + $0x8] sm:$0xff]  ;;  %s10903_s21 = scalar_lea.vmem %s13179_s0, %s13197_s30  ;;  %s392_s1 = scalar_lea.vmem [#allocation2], %s7651_s29 }
  0x1c   : > { %9077 = vmatprep.subr.mxu1 %v575_v2  ;;  %9048 = vmatpush3.msra.mxu0 %v431_v4  ;;  %v570_v14 = vld [vmem:[%s13183_s4] sm:$0xff]  ;;  %v10906_v16 = vld [vmem:[%s10864_s20 + $0x8] sm:$0xff]  ;;  %v10909_v17 = vld [vmem:[%s10864_s20 + $0x10] sm:$0xff]  ;;  %s7555_s12 = sshll.u32 %s392_s1, 4  ;;  %s13128_s12 = int_to_ptr.vmem [resolvable:$true] %s7555_s12 }
  0x1d   : > { %9078 = vmatpush3.msra.mxu1 %v575_v2  ;;  %9089 = vmatprep.mubr.msk.f32.mxu1 %vm440_vm0, %v10873_v8  ;;  %v425_v18 = vld [vmem:[%s13181_s2] sm:$0xff]  ;;  %v10920_v20 = vld [vmem:[%s10903_s21 + $0x8] sm:$0xff]  ;;  %v10925_v21 = vld [vmem:[%s10864_s20 + $0x18] sm:$0xff]  ;;  %s10645_s30 = scalar_lea.vmem %s13128_s12, 1024 }
  0x1e   : > { %9079 = vmatprep.subr.mxu1 %v574_v5  ;;  %9049 = vmatprep.subr.mxu0 %v430_v6  ;;  %v10915_v19 = vld [vmem:[%s10903_s21] sm:$0xff]  ;;  %v10928_v22 = vld [vmem:[%s10903_s21 + $0x10] sm:$0xff]  ;;  %v10942_v24 = vld [vmem:[%s10903_s21 + $0x18] sm:$0xff]  ;;  %p10646_p12 = scmp.ne.s32.totalorder %s13128_s12, %s10645_s30 }
  0x1f   : > { %9080 = vmatpush3.msra.mxu1 %v574_v5  ;;  %9050 = vmatpush3.msra.mxu0 %v430_v6  ;;  %v10931_v23 = vld [vmem:[%s10864_s20 + $0x20] sm:$0xff]  ;;  %v10947_v25 = vld [vmem:[%s10864_s20 + $0x28] sm:$0xff]  ;;  %v10953_v27 = vld [vmem:[%s10864_s20 + $0x30] sm:$0xff] }
  0x20   : > { %9081 = vmatprep.subr.mxu1 %v573_v7  ;;  %9051 = vmatprep.subr.mxu0 %v429_v9  ;;  %v10950_v26 = vld [vmem:[%s10903_s21 + $0x20] sm:$0xff]  ;;  %v10962_v28 = vld [vmem:[%s10903_s21 + $0x28] sm:$0xff]  ;;  %v10967_v29 = vld [vmem:[%s10864_s20 + $0x38] sm:$0xff]  ;;  %p10647_p13 = pnand %p10646_p12, %p10821_p4 }
  0x21   : > { %9082 = vmatpush3.msra.mxu1 %v573_v7  ;;  %9052 = vmatpush3.msra.mxu0 %v429_v9  ;;  %v10970_v30 = vld [vmem:[%s10903_s21 + $0x30] sm:$0xff]  ;;  %v10979_v31 = vld [vmem:[%s10903_s21 + $0x38] sm:$0xff]  ;;  %v7656_v35 = vld [vmem:[%s13182_s3] ss:$0 sm:$0xff] }
  0x22   : > { %9083 = vmatprep.subr.mxu1 %v572_v10  ;;  %9053 = vmatprep.subr.mxu0 %v428_v11  ;;  %v7665_v42 = vld [vmem:[%s13184_s5] ss:$0 sm:$0xff]  ;;  %v721_v2 = vld [vmem:[%s13185_s6 + $0x38] sm:$0xff]  ;;  %v720_v3 = vld [vmem:[%s13185_s6 + $0x30] sm:$0xff]  ;;  %p10648_p0 = pneg %p10647_p13 }
  0x23   : > { %9084 = vmatpush3.msra.mxu1 %v572_v10  ;;  %9054 = vmatpush3.msra.mxu0 %v428_v11  ;;  %v719_v4 = vld [vmem:[%s13185_s6 + $0x28] sm:$0xff]  ;;  %v718_v5 = vld [vmem:[%s13185_s6 + $0x20] sm:$0xff]  ;;  %v717_v6 = vld [vmem:[%s13185_s6 + $0x18] sm:$0xff] }
  0x24   : > { %9085 = vmatprep.subr.mxu1 %v571_v12  ;;  %9055 = vmatprep.subr.mxu0 %v427_v13  ;;  %v716_v7 = vld [vmem:[%s13185_s6 + $0x10] sm:$0xff]  ;;  %v715_v9 = vld [vmem:[%s13185_s6 + $0x8] sm:$0xff]  ;;  %v714_v10 = vld [vmem:[%s13185_s6] sm:$0xff] }
  0x25   : > { %9086 = vmatpush3.msra.mxu1 %v571_v12  ;;  %9056 = vmatpush3.msra.mxu0 %v427_v13 }
  0x26   : > { %9087 = vmatprep.subr.mxu1 %v570_v14  ;;  %9057 = vmatprep.subr.mxu0 %v426_v15 }
  0x27   : > { %9088 = vmatpush3.msra.mxu1 %v570_v14  ;;  %9058 = vmatpush3.msra.mxu0 %v426_v15 }
  0x28   : > { %9090 = vmatmul.mubr.msk.f32.vlgmr.msra.gmra.mxu1 %vm440_vm0, %v10906_v16  ;;  %9059 = vmatprep.subr.mxu0 %v425_v18 }
  0x29   : > { %9092 = vmatprep.mubr.msk.f32.mxu1 %vm440_vm0, %v10909_v17  ;;  %9060 = vmatpush3.msra.mxu0 %v425_v18 }
  0x2a   : > { %9061 = vmatprep.mubr.msk.f32.mxu0 %vm440_vm0, %v10915_v19  ;;  %9101 = vmatprep.subr.mxu0 %v721_v2 }
  0x2b   : > { %9062 = vmatmul.mubr.msk.f32.vlgmr.msra.gmra.mxu0 %vm440_vm0, %v10920_v20 }
  0x2c   : > { %9093 = vmatmul.mubr.msk.f32.gmra.mxu1 %vm440_vm0, %v10925_v21  ;;  %9064 = vmatprep.mubr.msk.f32.mxu0 %vm440_vm0, %v10928_v22 }
  0x2d   : > { %9095 = vmatprep.mubr.msk.f32.mxu1 %vm440_vm0, %v10931_v23  ;;  %9102 = vmatpush3.msra.mxu0 %v721_v2 }
  0x2e   : > { %9103 = vmatprep.subr.mxu0 %v720_v3 }
  0x2f   : > { %9065 = vmatmul.mubr.msk.f32.gmra.mxu0 %vm440_vm0, %v10942_v24 }
  0x30   : > { %9096 = vmatmul.mubr.msk.f32.gmra.mxu1 %vm440_vm0, %v10947_v25  ;;  %9067 = vmatprep.mubr.msk.f32.mxu0 %vm440_vm0, %v10950_v26 }
  0x31   : > { %9098 = vmatprep.mubr.msk.f32.mxu1 %vm440_vm0, %v10953_v27  ;;  %9104 = vmatpush3.msra.mxu0 %v720_v3 }
  0x32   : > { %9105 = vmatprep.subr.mxu0 %v719_v4 }
  0x33   : > { %9068 = vmatmul.mubr.msk.f32.gmra.mxu0 %vm440_vm0, %v10962_v28 }
  0x34   : > { %9099 = vmatmul.mubr.msk.f32.gmra.mxu1 %vm440_vm0, %v10967_v29  ;;  %9070 = vmatprep.mubr.msk.f32.mxu0 %vm440_vm0, %v10970_v30 }
  0x35   : > { %9106 = vmatpush3.msra.mxu0 %v719_v4 }
  0x36   : > { %9107 = vmatprep.subr.mxu0 %v718_v5 }
  0x37   : > { %9071 = vmatmul.mubr.msk.f32.gmra.mxu0 %vm440_vm0, %v10979_v31 }
  0x38   : > { %9117 = vmatprep.mubr.msk.f32.mxu0 %vm440_vm0, %v10873_v8  ;;  %9108 = vmatpush3.msra.mxu0 %v718_v5 }
  0x39   : > { %9109 = vmatprep.subr.mxu0 %v717_v6 }
  0x3a   : > { %9110 = vmatpush3.msra.mxu0 %v717_v6 }
  0x3b   : > { %9111 = vmatprep.subr.mxu0 %v716_v7 }
  0x3c   : > { %9112 = vmatpush3.msra.mxu0 %v716_v7 }
  0x3d   : > { %9113 = vmatprep.subr.mxu0 %v715_v9 }
  0x3e   : > { %9114 = vmatpush3.msra.mxu0 %v715_v9 }
  0x3f   : > { %9115 = vmatprep.subr.mxu0 %v714_v10 }
  0x40   : > { %9116 = vmatpush3.msra.mxu0 %v714_v10 }
  0x41   : > { %9118 = vmatmul.mubr.msk.f32.vlgmr.msra.gmra.mxu0 %vm440_vm0, %v10906_v16 }
  0x42   : > { %9120 = vmatprep.mubr.msk.f32.mxu0 %vm440_vm0, %v10909_v17 }
  0x45   : > { %9121 = vmatmul.mubr.msk.f32.gmra.mxu0 %vm440_vm0, %v10925_v21 }
  0x46   : > { %9123 = vmatprep.mubr.msk.f32.mxu0 %vm440_vm0, %v10931_v23 }
  0x49   : > { %9124 = vmatmul.mubr.msk.f32.gmra.mxu0 %vm440_vm0, %v10947_v25 }
  0x4a   : > { %9126 = vmatprep.mubr.msk.f32.mxu0 %vm440_vm0, %v10953_v27 }
  0x4d   : > { %9127 = vmatmul.mubr.msk.f32.gmra.mxu0 %vm440_vm0, %v10967_v29 }
  0xe8   : > { %v9091_v32 = vpop.f32.mrf.mxu1 }
  0xe9   : > { %v681_v52 = vadd.f32 %v9091_v32, %v7665_v42 }
  0xea   : > { %v675_v33 = vpop.f32.mrf.mxu1 }
  0xeb   : > { %v9063_v34 = vpop.f32.mrf.mxu0  ;;  %v676_v55 = vadd.f32 %v7665_v42, %v675_v33 }
  0xec   : > { %v9094_v36 = vpop.f32.mrf.mxu1  ;;  %v537_v58 = vadd.f32 %v9063_v34, %v7656_v35 }
  0xed   : > { %v531_v37 = vpop.f32.mrf.mxu0  ;;  %v691_v49 = vadd.f32 %v9094_v36, %v7665_v42 }
  0xee   : > { %v685_v38 = vpop.f32.mrf.mxu1  ;;  %v532_v39 = vadd.f32 %v7656_v35, %v531_v37 }
  0xef   : > { %v686_v50 = vadd.f32 %v7665_v42, %v685_v38  ;;  %v9066_v51 = vpop.f32.mrf.mxu0 }
  0xf0   : > { %v9097_v40 = vpop.f32.mrf.mxu1  ;;  %9145 = vmatprep.mubr.msk.f32.mxu1 %vm834_vm1, %v532_v39  ;;  %v547_v61 = vadd.f32 %v9066_v51, %v7656_v35  ;;  %v7731_v51 = vld [vmem:[%s13183_s4 + $0x70] sm:$0xff] }
  0xf1   : > { %v701_v47 = vadd.f32 %v9097_v40, %v7665_v42  ;;  %v541_v53 = vpop.f32.mrf.mxu0 }
  0xf2   : > { %v695_v41 = vpop.f32.mrf.mxu1  ;;  %v542_v57 = vadd.f32 %v7656_v35, %v541_v53  ;;  %v7729_v53 = vld [vmem:[%s13183_s4 + $0x60] sm:$0xff] }
  0xf3   : > { %v696_v48 = vadd.f32 %v7665_v42, %v695_v41  ;;  %v9069_v54 = vpop.f32.mrf.mxu0 }
  0xf4   : > { %v9100_v43 = vpop.f32.mrf.mxu1  ;;  %v557_v63 = vadd.f32 %v9069_v54, %v7656_v35  ;;  %v7728_v54 = vld [vmem:[%s13183_s4 + $0x58] sm:$0xff] }
  0xf5   : > { %v711_v44 = vadd.f32 %v9100_v43, %v7665_v42  ;;  %v551_v56 = vpop.f32.mrf.mxu0 }
  0xf6   : > { %v705_v45 = vpop.f32.mrf.mxu1  ;;  %v552_v60 = vadd.f32 %v7656_v35, %v551_v56  ;;  %v7726_v56 = vld [vmem:[%s13183_s4 + $0x48] sm:$0xff] }
  0xf7   : > { %v706_v46 = vadd.f32 %v7665_v42, %v705_v45  ;;  %9129 = vmatprep.subr.msk.mxu1 %vm834_vm1, %v711_v44  ;;  %v9072_v59 = vpop.f32.mrf.mxu0 }
  0xf8   : > { %9130 = vmatpush3.xpose.msk.msra.mxu1 %vm834_vm1, %v711_v44  ;;  %v567_v1 = vadd.f32 %v9072_v59, %v7656_v35 }
  0xf9   : > { %9131 = vmatprep.subr.msk.mxu1 %vm834_vm1, %v706_v46  ;;  %v561_v62 = vpop.f32.mrf.mxu0 }
  0xfa   : > { %v562_v0 = vadd.f32 %v7656_v35, %v561_v62 }
  0xfc   : > { %9132 = vmatpush3.xpose.msk.msra.mxu1 %vm834_vm1, %v706_v46 }
  0xfd   : > { %9133 = vmatprep.subr.msk.mxu1 %vm834_vm1, %v701_v47 }
 0x100   : > { %9134 = vmatpush3.xpose.msk.msra.mxu1 %vm834_vm1, %v701_v47 }
 0x101   : > { %9135 = vmatprep.subr.msk.mxu1 %vm834_vm1, %v696_v48 }
 0x104   : > { %9136 = vmatpush3.xpose.msk.msra.mxu1 %vm834_vm1, %v696_v48 }
 0x105   : > { %9137 = vmatprep.subr.msk.mxu1 %vm834_vm1, %v691_v49 }
 0x108   : > { %9138 = vmatpush3.xpose.msk.msra.mxu1 %vm834_vm1, %v691_v49 }
 0x109   : > { %9139 = vmatprep.subr.msk.mxu1 %vm834_vm1, %v686_v50 }
 0x10c   : > { %9140 = vmatpush3.xpose.msk.msra.mxu1 %vm834_vm1, %v686_v50  ;;  %v7732_v50 = vld [vmem:[%s13183_s4 + $0x78] sm:$0xff] }
 0x10d   : > { %9141 = vmatprep.subr.msk.mxu1 %vm834_vm1, %v681_v52 }
 0x110   : > { %9142 = vmatpush3.xpose.msk.msra.mxu1 %vm834_vm1, %v681_v52  ;;  %v7730_v52 = vld [vmem:[%s13183_s4 + $0x68] sm:$0xff] }
 0x111   : > { %9143 = vmatprep.subr.msk.mxu1 %vm834_vm1, %v676_v55 }
 0x114   : > { %9144 = vmatpush3.xpose.msk.msra.mxu1 %vm834_vm1, %v676_v55  ;;  %v7727_v55 = vld [vmem:[%s13183_s4 + $0x50] sm:$0xff] }
 0x115   : > { %9213 = vmatprep.subr.mxu1 %v7732_v50 }
 0x117   : > { %9146 = vmatmul.mubr.msk.f32.vlgmr.msra.gmra.mxu1 %vm834_vm1, %v537_v58  ;;  %v9119_v58 = vpop.f32.mrf.mxu0 }
 0x118   : > { %9148 = vmatprep.mubr.msk.f32.mxu1 %vm834_vm1, %v542_v57  ;;  %9214 = vmatpush3.msra.mxu1 %v7732_v50  ;;  %v7725_v57 = vld [vmem:[%s13183_s4 + $0x40] sm:$0xff] }
 0x119   : > { %9215 = vmatprep.subr.mxu1 %v7731_v51  ;;  %v795_v59 = vpop.f32.mrf.mxu0 }
 0x11a   : > { %9216 = vmatpush3.msra.mxu1 %v7731_v51 }
 0x11b   : > { %9149 = vmatmul.mubr.msk.f32.gmra.mxu1 %vm834_vm1, %v547_v61  ;;  %9217 = vmatprep.subr.mxu1 %v7730_v52 }
 0x11c   : > { %9151 = vmatprep.mubr.msk.f32.mxu1 %vm834_vm1, %v552_v60  ;;  %9218 = vmatpush3.msra.mxu1 %v7730_v52  ;;  %v9122_v60 = vpop.f32.mrf.mxu0 }
 0x11d   : > { %9219 = vmatprep.subr.mxu1 %v7729_v53 }
 0x11e   : > { %9220 = vmatpush3.msra.mxu1 %v7729_v53  ;;  %v805_v61 = vpop.f32.mrf.mxu0 }
 0x11f   : > { %9152 = vmatmul.mubr.msk.f32.gmra.mxu1 %vm834_vm1, %v557_v63  ;;  %9221 = vmatprep.subr.mxu1 %v7728_v54  ;;  %v7674_v63 = vld [vmem:[%s13186_s7] ss:$0 sm:$0xff] }
 0x120   : > { %9154 = vmatprep.mubr.msk.f32.mxu1 %vm834_vm1, %v562_v0  ;;  %9222 = vmatpush3.msra.mxu1 %v7728_v54  ;;  %v9125_v62 = vpop.f32.mrf.mxu0  ;;  %v811_v7 = vadd.f32 %v9122_v60, %v7674_v63  ;;  %v806_v9 = vadd.f32 %v7674_v63, %v805_v61  ;;  %v801_v10 = vadd.f32 %v9119_v58, %v7674_v63 }
 0x121   : > { %9223 = vmatprep.subr.mxu1 %v7727_v55  ;;  %v821_v4 = vadd.f32 %v9125_v62, %v7674_v63 }
 0x122   : > { %9224 = vmatpush3.msra.mxu1 %v7727_v55  ;;  %v815_v0 = vpop.f32.mrf.mxu0 }
 0x123   : > { %9155 = vmatmul.mubr.msk.f32.gmra.mxu1 %vm834_vm1, %v567_v1  ;;  %9225 = vmatprep.subr.mxu1 %v7726_v56  ;;  %v816_v6 = vadd.f32 %v7674_v63, %v815_v0 }
 0x124   : > { %9229 = vmatprep.mubr.msk.f32.mxu1 %vm440_vm0, %v10873_v8  ;;  %9226 = vmatpush3.msra.mxu1 %v7726_v56  ;;  %v9128_v1 = vpop.f32.mrf.mxu0 }
 0x125   : > { %9227 = vmatprep.subr.mxu1 %v7725_v57  ;;  %v831_v2 = vadd.f32 %v9128_v1, %v7674_v63 }
 0x126   : > { %9228 = vmatpush3.msra.mxu1 %v7725_v57  ;;  %v825_v3 = vpop.f32.mrf.mxu0 }
 0x127   : > { %9230 = vmatmul.mubr.msk.f32.vlgmr.msra.gmra.mxu1 %vm440_vm0, %v10906_v16  ;;  %v826_v5 = vadd.f32 %v7674_v63, %v825_v3  ;;  %9157 = vmatprep.subr.mxu0 %v831_v2  ;;  %v7714_v3 = vld [vmem:[%s13181_s2 + $0x78] sm:$0xff] }
 0x128   : > { %9232 = vmatprep.mubr.msk.f32.mxu1 %vm440_vm0, %v10909_v17  ;;  %9158 = vmatpush3.msra.mxu0 %v831_v2 }
 0x129   : > { %9159 = vmatprep.subr.mxu0 %v826_v5 }
 0x12a   : > { %9160 = vmatpush3.msra.mxu0 %v826_v5 }
 0x12b   : > { %9233 = vmatmul.mubr.msk.f32.gmra.mxu1 %vm440_vm0, %v10925_v21  ;;  %9161 = vmatprep.subr.mxu0 %v821_v4 }
 0x12c   : > { %9235 = vmatprep.mubr.msk.f32.mxu1 %vm440_vm0, %v10931_v23  ;;  %9162 = vmatpush3.msra.mxu0 %v821_v4 }
 0x12d   : > { %9163 = vmatprep.subr.mxu0 %v816_v6 }
 0x12e   : > { %9164 = vmatpush3.msra.mxu0 %v816_v6 }
 0x12f   : > { %9236 = vmatmul.mubr.msk.f32.gmra.mxu1 %vm440_vm0, %v10947_v25  ;;  %9165 = vmatprep.subr.mxu0 %v811_v7 }
 0x130   : > { %9238 = vmatprep.mubr.msk.f32.mxu1 %vm440_vm0, %v10953_v27  ;;  %9166 = vmatpush3.msra.mxu0 %v811_v7 }
 0x131   : > { %9167 = vmatprep.subr.mxu0 %v806_v9 }
 0x132   : > { %9168 = vmatpush3.msra.mxu0 %v806_v9 }
 0x133   : > { %9239 = vmatmul.mubr.msk.f32.gmra.mxu1 %vm440_vm0, %v10967_v29  ;;  %9169 = vmatprep.subr.mxu0 %v801_v10 }
 0x134   : > { %9170 = vmatpush3.msra.mxu0 %v801_v10  ;;  %v7734_v10 = vld [vmem:[%s13184_s5 + $0x1] ss:$0 sm:$0xff] }
 0x1d7   : > { %v9147_v11 = vpop.f32.mrf.mxu1 }
 0x1d8   : > { %v11057_v15 = vmul.f32 0.35355338, %v9147_v11  ;;  %v796_v11 = vadd.f32 %v7674_v63, %v795_v59 }
 0x1d9   : > { %v949_v12 = vpop.f32.mrf.mxu1 }
 0x1da   : > { %v11055_v13 = vmul.f32 0.35355338, %v949_v12  ;;  %v999_v36 = vsel %vm440_vm0, %v11057_v15, -inf  ;;  %9171 = vmatprep.subr.mxu0 %v796_v11 }
 0x1db   : > { %v9150_v14 = vpop.f32.mrf.mxu1  ;;  %9172 = vmatpush3.msra.mxu0 %v796_v11 }
 0x1dc   : > { %v996_v18 = vsel %vm440_vm0, %v11055_v13, -inf  ;;  %v11063_v35 = vmul.f32 0.35355338, %v9150_v14  ;;  %9185 = vmatprep.subr.mxu0 %v7714_v3 }
 0x1dd   : > { %997 = vmax.xlane.f32.xlu0 %v996_v18  ;;  %v959_v32 = vpop.f32.mrf.mxu1 }
 0x1de   : > { %v11061_v33 = vmul.f32 0.35355338, %v959_v32  ;;  %v1005_v42 = vsel %vm440_vm0, %v11063_v35, -inf }
 0x1df   : > { %v9153_v34 = vpop.f32.mrf.mxu1 }
 0x1e0   : > { %v1002_v37 = vsel %vm440_vm0, %v11061_v33, -inf  ;;  %v11071_v41 = vmul.f32 0.35355338, %v9153_v34 }
 0x1e1   : > { %1000 = vmax.xlane.f32.xlu0 %v999_v36  ;;  %1003 = vmax.xlane.f32.xlu1 %v1002_v37  ;;  %v969_v38 = vpop.f32.mrf.mxu1 }
 0x1e2   : > { %v11069_v39 = vmul.f32 0.35355338, %v969_v38  ;;  %v1011_v47 = vsel %vm440_vm0, %v11071_v41, -inf }
 0x1e3   : > { %v9156_v40 = vpop.f32.mrf.mxu1 }
 0x1e4   : > { %v1008_v43 = vsel %vm440_vm0, %v11069_v39, -inf  ;;  %v11079_v46 = vmul.f32 0.35355338, %v9156_v40 }
 0x1e5   : > { %1006 = vmax.xlane.f32.xlu1 %v1005_v42  ;;  %1009 = vmax.xlane.f32.xlu0 %v1008_v43  ;;  %v979_v44 = vpop.f32.mrf.mxu1 }
 0x1e6   : > { %v11077_v45 = vmul.f32 0.35355338, %v979_v44  ;;  %v1017_v49 = vsel %vm440_vm0, %v11079_v46, -inf }
 0x1e7   : > { %v9231_v4 = vpop.f32.mrf.mxu1 }
 0x1e8   : > { %v1014_v48 = vsel %vm440_vm0, %v11077_v45, -inf }
 0x1e9   : > { %1012 = vmax.xlane.f32.xlu1 %v1011_v47  ;;  %1015 = vmax.xlane.f32.xlu0 %v1014_v48  ;;  %v1419_v5 = vpop.f32.mrf.mxu1 }
 0x1eb   : > { %v9234_v6 = vpop.f32.mrf.mxu1 }
 0x1ed   : > { %1018 = vmax.xlane.f32.xlu1 %v1017_v49  ;;  %v1429_v7 = vpop.f32.mrf.mxu1 }
 0x1ef   : > { %v9237_v9 = vpop.f32.mrf.mxu1 }
 0x1f1   : > { %v1439_v11 = vpop.f32.mrf.mxu1 }
 0x266   : > { %v998_v12 = vpop.xlane.xlu0 %997 }
 0x267   : > { %v1020_v14 = vsub.f32 %v11055_v13, %v998_v12  ;;  %v9240_v12 = vpop.f32.mrf.mxu1 }
 0x269   : > { %v1028_v18 = vmul.f32 1.442695, %v1020_v14  ;;  %v1455_v14 = vadd.f32 %v9240_v12, %v7734_v10 }
 0x26a   : > { %v1001_v32 = vpop.xlane.xlu0 %1000  ;;  %v1004_v34 = vpop.xlane.xlu1 %1003 }
 0x26b   : > { %10334 = vpow2.f32 %v1028_v18  ;;  %v1021_v36 = vsub.f32 %v11057_v15, %v1001_v32  ;;  %v1022_v37 = vsub.f32 %v11061_v33, %v1004_v34  ;;  %v1449_v18 = vpop.f32.mrf.mxu1  ;;  %9269 = vmatprep.subr.msk.mxu1 %vm834_vm1, %v1455_v14  ;;  %v1445_v34 = vadd.f32 %v9237_v9, %v7734_v10 }
 0x26c   : > { %v1450_v32 = vadd.f32 %v7734_v10, %v1449_v18  ;;  %9270 = vmatpush3.xpose.msk.msra.mxu1 %vm834_vm1, %v1455_v14 }
 0x26d   : > { %v1030_v38 = vmul.f32 1.442695, %v1021_v36  ;;  %v1032_v40 = vmul.f32 1.442695, %v1022_v37  ;;  %v1440_v36 = vadd.f32 %v7734_v10, %v1439_v11  ;;  %v1435_v37 = vadd.f32 %v9234_v6, %v7734_v10 }
 0x26e   : > { %v1007_v42 = vpop.xlane.xlu1 %1006  ;;  %v1010_v43 = vpop.xlane.xlu0 %1009  ;;  %9271 = vmatprep.subr.msk.mxu1 %vm834_vm1, %v1450_v32 }
 0x26f   : > { %10336 = vpow2.f32 %v1030_v38  ;;  %v1023_v44 = vsub.f32 %v11063_v35, %v1007_v42  ;;  %v1024_v47 = vsub.f32 %v11069_v39, %v1010_v43  ;;  %v1430_v38 = vadd.f32 %v7734_v10, %v1429_v7 }
 0x270   : > { %10338 = vpow2.f32 %v1032_v40  ;;  %9272 = vmatpush3.xpose.msk.msra.mxu1 %vm834_vm1, %v1450_v32  ;;  %v1425_v40 = vadd.f32 %v9231_v4, %v7734_v10  ;;  %v1420_v42 = vadd.f32 %v7734_v10, %v1419_v5  ;;  %v7708_v4 = vld [vmem:[%s13181_s2 + $0x48] sm:$0xff] }
 0x271   : > { %v1034_v48 = vmul.f32 1.442695, %v1023_v44  ;;  %v1036_v13 = vmul.f32 1.442695, %v1024_v47  ;;  %9273 = vmatprep.subr.msk.mxu1 %vm834_vm1, %v1445_v34 }
 0x272   : > { %v1013_v49 = vpop.xlane.xlu1 %1012  ;;  %v1016_v50 = vpop.xlane.xlu0 %1015 }
 0x273   : > { %10340 = vpow2.f32 %v1034_v48  ;;  %v1025_v51 = vsub.f32 %v11071_v41, %v1013_v49  ;;  %v1026_v15 = vsub.f32 %v11077_v45, %v1016_v50 }
 0x274   : > { %10342 = vpow2.f32 %v1036_v13  ;;  %9274 = vmatpush3.xpose.msk.msra.mxu1 %vm834_vm1, %v1445_v34 }
 0x275   : > { %v1038_v33 = vmul.f32 1.442695, %v1025_v51  ;;  %v1040_v52 = vmul.f32 1.442695, %v1026_v15  ;;  %9275 = vmatprep.subr.msk.mxu1 %vm834_vm1, %v1440_v36 }
 0x276   : > { %v1019_v53 = vpop.xlane.xlu1 %1018 }
 0x277   : > { %10344 = vpow2.f32 %v1038_v33  ;;  %v1027_v54 = vsub.f32 %v11079_v46, %v1019_v53 }
 0x278   : > { %v11136_v35 = vpop.eup %10334  ;;  %10346 = vpow2.f32 %v1040_v52  ;;  %9276 = vmatpush3.xpose.msk.msra.mxu1 %vm834_vm1, %v1440_v36 }
 0x279   : > { %v1042_v39 = vmul.f32 1.442695, %v1027_v54  ;;  %v1044_v55 = vsel %vm440_vm0, %v11136_v35, 0.0  ;;  %9277 = vmatprep.subr.msk.mxu1 %vm834_vm1, %v1435_v37 }
 0x27a   : > { %1045 = vadd.xlane.f32.xlu0 %v1044_v55  ;;  %v7713_v55 = vld [vmem:[%s13181_s2 + $0x70] sm:$0xff] }
 0x27b   : > { %10348 = vpow2.f32 %v1042_v39 }
 0x27c   : > { %v11140_v56 = vpop.eup %10336  ;;  %9278 = vmatpush3.xpose.msk.msra.mxu1 %vm834_vm1, %v1435_v37 }
 0x27d   : > { %v11142_v41 = vpop.eup %10338  ;;  %v1047_v45 = vsel %vm440_vm0, %v11140_v56, 0.0  ;;  %9279 = vmatprep.subr.msk.mxu1 %vm834_vm1, %v1430_v38 }
 0x27e   : > { %1048 = vadd.xlane.f32.xlu1 %v1047_v45  ;;  %v1050_v46 = vsel %vm440_vm0, %v11142_v41, 0.0 }
 0x27f   : > { %1051 = vadd.xlane.f32.xlu0 %v1050_v46 }
 0x280   : > { %v11148_v57 = vpop.eup %10340  ;;  %9280 = vmatpush3.xpose.msk.msra.mxu1 %vm834_vm1, %v1430_v38 }
 0x281   : > { %v11150_v58 = vpop.eup %10342  ;;  %v1053_v59 = vsel %vm440_vm0, %v11148_v57, 0.0  ;;  %9281 = vmatprep.subr.msk.mxu1 %vm834_vm1, %v1425_v40 }
 0x282   : > { %1054 = vadd.xlane.f32.xlu1 %v1053_v59  ;;  %v1056_v60 = vsel %vm440_vm0, %v11150_v58, 0.0  ;;  %v7711_v59 = vld [vmem:[%s13181_s2 + $0x60] sm:$0xff] }
 0x283   : > { %1057 = vadd.xlane.f32.xlu0 %v1056_v60 }
 0x284   : > { %v11156_v61 = vpop.eup %10344  ;;  %9282 = vmatpush3.xpose.msk.msra.mxu1 %vm834_vm1, %v1425_v40 }
 0x285   : > { %v11158_v62 = vpop.eup %10346  ;;  %v1059_v63 = vsel %vm440_vm0, %v11156_v61, 0.0  ;;  %9283 = vmatprep.subr.msk.mxu1 %vm834_vm1, %v1420_v42 }
 0x286   : > { %1060 = vadd.xlane.f32.xlu1 %v1059_v63  ;;  %v1062_v0 = vsel %vm440_vm0, %v11158_v62, 0.0  ;;  %v7710_v63 = vld [vmem:[%s13181_s2 + $0x58] sm:$0xff] }
 0x287   : > { %1063 = vadd.xlane.f32.xlu0 %v1062_v0 }
 0x288   : > { %v11164_v1 = vpop.eup %10348  ;;  %9284 = vmatpush3.xpose.msk.msra.mxu1 %vm834_vm1, %v1420_v42 }
 0x289   : > { %v1065_v2 = vsel %vm440_vm0, %v11164_v1, 0.0 }
 0x28a   : > { %1066 = vadd.xlane.f32.xlu1 %v1065_v2  ;;  %v7709_v2 = vld [vmem:[%s13181_s2 + $0x50] sm:$0xff] }
 0x303   : > { %v1046_v43 = vpop.xlane.xlu0 %1045 }
 0x304   : > { %10350 = vrcp.f32 %v1046_v43 }
 0x307   : > { %v1049_v44 = vpop.xlane.xlu1 %1048 }
 0x308   : > { %10352 = vrcp.f32 %v1049_v44  ;;  %v1052_v47 = vpop.xlane.xlu0 %1051  ;;  %v7750_v44 = vld [vmem:[%s13185_s6 + $0x78] sm:$0xff] }
 0x309   : > { %10354 = vrcp.f32 %v1052_v47  ;;  %v7749_v47 = vld [vmem:[%s13185_s6 + $0x70] sm:$0xff] }
 0x30b   : > { %v1055_v48 = vpop.xlane.xlu1 %1054 }
 0x30c   : > { %10356 = vrcp.f32 %v1055_v48  ;;  %v1058_v13 = vpop.xlane.xlu0 %1057  ;;  %v7748_v48 = vld [vmem:[%s13185_s6 + $0x68] sm:$0xff] }
 0x30d   : > { %10358 = vrcp.f32 %v1058_v13  ;;  %v7746_v13 = vld [vmem:[%s13185_s6 + $0x58] sm:$0xff] }
 0x30f   : > { %v1061_v49 = vpop.xlane.xlu1 %1060 }
 0x310   : > { %10360 = vrcp.f32 %v1061_v49  ;;  %v1064_v50 = vpop.xlane.xlu0 %1063  ;;  %v7745_v49 = vld [vmem:[%s13185_s6 + $0x50] sm:$0xff] }
 0x311   : > { %v10351_v51 = vpop.eup %10350  ;;  %10362 = vrcp.f32 %v1064_v50  ;;  %v7744_v50 = vld [vmem:[%s13185_s6 + $0x48] sm:$0xff] }
 0x312   : > { %v1069_v15 = vmul.f32 %v10351_v51, %v11136_v35  ;;  %v7712_v35 = vld [vmem:[%s13181_s2 + $0x68] sm:$0xff]  ;;  %v7743_v51 = vld [vmem:[%s13185_s6 + $0x40] sm:$0xff] }
 0x313   : > { %v1067_v33 = vpop.xlane.xlu1 %1066 }
 0x314   : > { %10364 = vrcp.f32 %v1067_v33  ;;  %9173 = vmatprep.mubr.msk.f32.mxu0 %vm440_vm0, %v1069_v15 }
 0x315   : > { %v10353_v52 = vpop.eup %10352 }
 0x316   : > { %v10355_v53 = vpop.eup %10354  ;;  %v1071_v54 = vmul.f32 %v10353_v52, %v11140_v56 }
 0x317   : > { %v1073_v39 = vmul.f32 %v10355_v53, %v11142_v41 }
 0x318   : > { %9174 = vmatmul.mubr.msk.f32.vlgmr.msra.gmra.mxu0 %vm440_vm0, %v1071_v54 }
 0x319   : > { %v10357_v45 = vpop.eup %10356  ;;  %9186 = vmatpush3.msra.mxu0 %v7714_v3  ;;  %9176 = vmatprep.mubr.msk.f32.mxu0 %vm440_vm0, %v1073_v39 }
 0x31a   : > { %v10359_v46 = vpop.eup %10358  ;;  %9187 = vmatprep.subr.mxu0 %v7713_v55  ;;  %v1075_v56 = vmul.f32 %v10357_v45, %v11148_v57 }
 0x31b   : > { %9188 = vmatpush3.msra.mxu0 %v7713_v55  ;;  %v1077_v41 = vmul.f32 %v10359_v46, %v11150_v58 }
 0x31c   : > { %9189 = vmatprep.subr.mxu0 %v7712_v35  ;;  %9177 = vmatmul.mubr.msk.f32.gmra.mxu0 %vm440_vm0, %v1075_v56 }
 0x31d   : > { %v10361_v60 = vpop.eup %10360  ;;  %9190 = vmatpush3.msra.mxu0 %v7712_v35  ;;  %9179 = vmatprep.mubr.msk.f32.mxu0 %vm440_vm0, %v1077_v41 }
 0x31e   : > { %v10363_v0 = vpop.eup %10362  ;;  %9191 = vmatprep.subr.mxu0 %v7711_v59  ;;  %v1079_v57 = vmul.f32 %v10361_v60, %v11156_v61 }
 0x31f   : > { %9192 = vmatpush3.msra.mxu0 %v7711_v59  ;;  %v1081_v58 = vmul.f32 %v10363_v0, %v11158_v62  ;;  %v7707_v62 = vld [vmem:[%s13181_s2 + $0x40] sm:$0xff] }
 0x320   : > { %9193 = vmatprep.subr.mxu0 %v7710_v63  ;;  %9180 = vmatmul.mubr.msk.f32.gmra.mxu0 %vm440_vm0, %v1079_v57 }
 0x321   : > { %v10365_v3 = vpop.eup %10364  ;;  %9194 = vmatpush3.msra.mxu0 %v7710_v63  ;;  %9182 = vmatprep.mubr.msk.f32.mxu0 %vm440_vm0, %v1081_v58 }
 0x322   : > { %9195 = vmatprep.subr.mxu0 %v7709_v2  ;;  %v1083_v61 = vmul.f32 %v10365_v3, %v11164_v1 }
 0x323   : > { %9196 = vmatpush3.msra.mxu0 %v7709_v2 }
 0x324   : > { %9197 = vmatprep.subr.mxu0 %v7708_v4  ;;  %9183 = vmatmul.mubr.msk.f32.gmra.mxu0 %vm440_vm0, %v1083_v61 }
 0x325   : > { %9198 = vmatpush3.msra.mxu0 %v7708_v4  ;;  %9201 = vmatprep.mubr.msk.f32.mxu0 %vm440_vm0, %v10915_v19  ;;  %v1213_v19 = vld [vmem:[%s13187_s8] sm:$0xff] }
 0x326   : > { %9199 = vmatprep.subr.mxu0 %v7707_v62  ;;  %9339 = vmatprep.subr.mxu1 %v1213_v19 }
 0x327   : > { %9200 = vmatpush3.msra.mxu0 %v7707_v62  ;;  %v7752_v62 = vld [vmem:[%s13186_s7 + $0x1] ss:$0 sm:$0xff] }
 0x328   : > { %9202 = vmatmul.mubr.msk.f32.vlgmr.msra.gmra.mxu0 %vm440_vm0, %v10920_v20  ;;  %9241 = vmatprep.subr.mxu0 %v7750_v44 }
 0x329   : > { %9204 = vmatprep.mubr.msk.f32.mxu0 %vm440_vm0, %v10928_v22  ;;  %9242 = vmatpush3.msra.mxu0 %v7750_v44 }
 0x32a   : > { %9243 = vmatprep.subr.mxu0 %v7749_v47 }
 0x32b   : > { %9244 = vmatpush3.msra.mxu0 %v7749_v47 }
 0x32c   : > { %9205 = vmatmul.mubr.msk.f32.gmra.mxu0 %vm440_vm0, %v10942_v24  ;;  %9245 = vmatprep.subr.mxu0 %v7748_v48 }
 0x32d   : > { %9207 = vmatprep.mubr.msk.f32.mxu0 %vm440_vm0, %v10950_v26  ;;  %9246 = vmatpush3.msra.mxu0 %v7748_v48 }
 0x330   : > { %9208 = vmatmul.mubr.msk.f32.gmra.mxu0 %vm440_vm0, %v10962_v28 }
 0x331   : > { %9210 = vmatprep.mubr.msk.f32.mxu0 %vm440_vm0, %v10970_v30 }
 0x334   : > { %9211 = vmatmul.mubr.msk.f32.gmra.mxu0 %vm440_vm0, %v10979_v31  ;;  %v7716_v31 = vld [vmem:[%s13182_s3 + $0x1] ss:$0 sm:$0xff] }
 0x335   : > { %9257 = vmatprep.mubr.msk.f32.mxu0 %vm440_vm0, %v10873_v8 }
 0x3d8   : > { %v9175_v20 = vpop.f32.mrf.mxu0 }
 0x3da   : > { %v1174_v22 = vpop.f32.mrf.mxu0 }
 0x3dc   : > { %v9178_v24 = vpop.f32.mrf.mxu0 }
 0x3de   : > { %v1184_v26 = vpop.f32.mrf.mxu0 }
 0x3e0   : > { %v9181_v1 = vpop.f32.mrf.mxu0 }
 0x3e2   : > { %v1194_v28 = vpop.f32.mrf.mxu0 }
 0x3e4   : > { %v9184_v5 = vpop.f32.mrf.mxu0 }
 0x3e6   : > { %v1204_v6 = vpop.f32.mrf.mxu0 }
 0x3e8   : > { %v9203_v30 = vpop.f32.mrf.mxu0 }
 0x3e9   : > { %v1303_v10 = vadd.f32 %v9203_v30, %v7716_v31 }
 0x3ea   : > { %v1297_v7 = vpop.f32.mrf.mxu0 }
 0x3eb   : > { %v1298_v9 = vadd.f32 %v7716_v31, %v1297_v7 }
 0x3ec   : > { %v9206_v11 = vpop.f32.mrf.mxu0 }
 0x3ed   : > { %9285 = vmatprep.mubr.msk.f32.mxu1 %vm834_vm1, %v1298_v9  ;;  %v1313_v18 = vadd.f32 %v9206_v11, %v7716_v31 }
 0x3ee   : > { %v1307_v12 = vpop.f32.mrf.mxu0  ;;  %9286 = vmatmul.mubr.msk.f32.vlgmr.msra.gmra.mxu1 %vm834_vm1, %v1303_v10 }
 0x3ef   : > { %v1308_v14 = vadd.f32 %v7716_v31, %v1307_v12  ;;  %9340 = vmatpush3.msra.mxu1 %v1213_v19 }
 0x3f0   : > { %v9209_v32 = vpop.f32.mrf.mxu0 }
 0x3f1   : > { %9288 = vmatprep.mubr.msk.f32.mxu1 %vm834_vm1, %v1308_v14  ;;  %v1323_v37 = vadd.f32 %v9209_v32, %v7716_v31 }
 0x3f2   : > { %v1317_v34 = vpop.f32.mrf.mxu0  ;;  %9289 = vmatmul.mubr.msk.f32.gmra.mxu1 %vm834_vm1, %v1313_v18 }
 0x3f3   : > { %v1318_v36 = vadd.f32 %v7716_v31, %v1317_v34 }
 0x3f4   : > { %v9212_v38 = vpop.f32.mrf.mxu0 }
 0x3f5   : > { %9291 = vmatprep.mubr.msk.f32.mxu1 %vm834_vm1, %v1318_v36  ;;  %v1333_v43 = vadd.f32 %v9212_v38, %v7716_v31 }
 0x3f6   : > { %v1327_v40 = vpop.f32.mrf.mxu0  ;;  %9292 = vmatmul.mubr.msk.f32.gmra.mxu1 %vm834_vm1, %v1323_v37 }
 0x3f7   : > { %v1328_v42 = vadd.f32 %v7716_v31, %v1327_v40 }
 0x3f9   : > { %9294 = vmatprep.mubr.msk.f32.mxu1 %vm834_vm1, %v1328_v42 }
 0x3fa   : > { %9295 = vmatmul.mubr.msk.f32.gmra.mxu1 %vm834_vm1, %v1333_v43 }
 0x3fb   : > { %9341 = vmatprep.mubr.msk.f32.mxu1 %vm834_vm1, %v1174_v22 }
 0x3fe   : > { %9342 = vmatmul.mubr.msk.f32.vlgmr.msra.gmra.mxu1 %vm834_vm1, %v9175_v20 }
 0x3ff   : > { %9344 = vmatprep.mubr.msk.f32.mxu1 %vm834_vm1, %v1184_v26 }
 0x402   : > { %9345 = vmatmul.mubr.msk.f32.gmra.mxu1 %vm834_vm1, %v9178_v24 }
 0x403   : > { %9347 = vmatprep.mubr.msk.f32.mxu1 %vm834_vm1, %v1194_v28 }
 0x406   : > { %9348 = vmatmul.mubr.msk.f32.gmra.mxu1 %vm834_vm1, %v9181_v1 }
 0x407   : > { %9350 = vmatprep.mubr.msk.f32.mxu1 %vm834_vm1, %v1204_v6 }
 0x40a   : > { %9351 = vmatmul.mubr.msk.f32.gmra.mxu1 %vm834_vm1, %v9184_v5 }
 0x40b   : > { %9397 = vmatprep.mubr.msk.f32.mxu1 %vm440_vm0, %v10873_v8  ;;  %v7747_v8 = vld [vmem:[%s13185_s6 + $0x60] sm:$0xff] }
 0x40c   : > { %9247 = vmatprep.subr.mxu0 %v7747_v8 }
 0x40d   : > { %9248 = vmatpush3.msra.mxu0 %v7747_v8 }
 0x40e   : > { %9249 = vmatprep.subr.mxu0 %v7746_v13 }
 0x40f   : > { %9250 = vmatpush3.msra.mxu0 %v7746_v13 }
 0x410   : > { %9251 = vmatprep.subr.mxu0 %v7745_v49 }
 0x411   : > { %9252 = vmatpush3.msra.mxu0 %v7745_v49 }
 0x412   : > { %9253 = vmatprep.subr.mxu0 %v7744_v50 }
 0x413   : > { %9254 = vmatpush3.msra.mxu0 %v7744_v50 }
 0x414   : > { %9255 = vmatprep.subr.mxu0 %v7743_v51 }
 0x415   : > { %9256 = vmatpush3.msra.mxu0 %v7743_v51 }
 0x416   : > { %9258 = vmatmul.mubr.msk.f32.vlgmr.msra.gmra.mxu0 %vm440_vm0, %v10906_v16 }
 0x417   : > { %9260 = vmatprep.mubr.msk.f32.mxu0 %vm440_vm0, %v10909_v17 }
 0x41a   : > { %9261 = vmatmul.mubr.msk.f32.gmra.mxu0 %vm440_vm0, %v10925_v21 }
 0x41b   : > { %9263 = vmatprep.mubr.msk.f32.mxu0 %vm440_vm0, %v10931_v23 }
 0x41e   : > { %9264 = vmatmul.mubr.msk.f32.gmra.mxu0 %vm440_vm0, %v10947_v25 }
 0x41f   : > { %9266 = vmatprep.mubr.msk.f32.mxu0 %vm440_vm0, %v10953_v27 }
 0x422   : > { %9267 = vmatmul.mubr.msk.f32.gmra.mxu0 %vm440_vm0, %v10967_v29 }
 0x4ae   : > { %v9287_v15 = vpop.f32.mrf.mxu1 }
 0x4af   : > { %v11307_v16 = vmul.f32 0.35355338, %v9287_v15 }
 0x4b0   : > { %v1694_v33 = vpop.f32.mrf.mxu1 }
 0x4b1   : > { %v11309_v17 = vmul.f32 0.35355338, %v1694_v33  ;;  %v1744_v21 = vsel %vm440_vm0, %v11307_v16, -inf }
 0x4b2   : > { %1745 = vmax.xlane.f32.xlu1 %v1744_v21  ;;  %v9290_v23 = vpop.f32.mrf.mxu1 }
 0x4b3   : > { %v11313_v52 = vmul.f32 0.35355338, %v9290_v23  ;;  %v1741_v25 = vsel %vm440_vm0, %v11309_v17, -inf }
 0x4b4   : > { %1742 = vmax.xlane.f32.xlu0 %v1741_v25  ;;  %v1704_v27 = vpop.f32.mrf.mxu1 }
 0x4b5   : > { %v11317_v53 = vmul.f32 0.35355338, %v1704_v27  ;;  %v1750_v29 = vsel %vm440_vm0, %v11313_v52, -inf }
 0x4b6   : > { %1751 = vmax.xlane.f32.xlu1 %v1750_v29  ;;  %v9293_v54 = vpop.f32.mrf.mxu1 }
 0x4b7   : > { %v11321_v39 = vmul.f32 0.35355338, %v9293_v54  ;;  %v1747_v55 = vsel %vm440_vm0, %v11317_v53, -inf }
 0x4b8   : > { %1748 = vmax.xlane.f32.xlu0 %v1747_v55  ;;  %v1714_v45 = vpop.f32.mrf.mxu1 }
 0x4b9   : > { %v11325_v35 = vmul.f32 0.35355338, %v1714_v45  ;;  %v1756_v46 = vsel %vm440_vm0, %v11321_v39, -inf }
 0x4ba   : > { %1757 = vmax.xlane.f32.xlu1 %v1756_v46  ;;  %v9296_v56 = vpop.f32.mrf.mxu1 }
 0x4bb   : > { %v11329_v41 = vmul.f32 0.35355338, %v9296_v56  ;;  %v1753_v59 = vsel %vm440_vm0, %v11325_v35, -inf  ;;  %v7827_v56 = vld [vmem:[%s13183_s4 + $0xb8] sm:$0xff] }
 0x4bc   : > { %1754 = vmax.xlane.f32.xlu0 %v1753_v59  ;;  %v1724_v60 = vpop.f32.mrf.mxu1  ;;  %9381 = vmatprep.subr.mxu1 %v7827_v56  ;;  %v7825_v59 = vld [vmem:[%s13183_s4 + $0xa8] sm:$0xff] }
 0x4bd   : > { %v11333_v63 = vmul.f32 0.35355338, %v1724_v60  ;;  %v1762_v0 = vsel %vm440_vm0, %v11329_v41, -inf  ;;  %9382 = vmatpush3.msra.mxu1 %v7827_v56  ;;  %v7785_v60 = vld [vmem:[%s13187_s8 + $0x8] sm:$0xff] }
 0x4be   : > { %1763 = vmax.xlane.f32.xlu1 %v1762_v0  ;;  %v7823_v0 = vld [vmem:[%s13183_s4 + $0x98] sm:$0xff] }
 0x4bf   : > { %v1759_v57 = vsel %vm440_vm0, %v11333_v63, -inf }
 0x4c0   : > { %1760 = vmax.xlane.f32.xlu0 %v1759_v57  ;;  %v7822_v57 = vld [vmem:[%s13183_s4 + $0x90] sm:$0xff] }
 0x4d6   : > { %v9259_v58 = vpop.f32.mrf.mxu0 }
 0x4d7   : > { %v1547_v30 = vadd.f32 %v9259_v58, %v7752_v62  ;;  %v7821_v58 = vld [vmem:[%s13183_s4 + $0x88] sm:$0xff] }
 0x4d8   : > { %v1541_v2 = vpop.f32.mrf.mxu0 }
 0x4d9   : > { %v1542_v31 = vadd.f32 %v7752_v62, %v1541_v2  ;;  %v7820_v2 = vld [vmem:[%s13183_s4 + $0x80] sm:$0xff] }
 0x4da   : > { %v9262_v3 = vpop.f32.mrf.mxu0 }
 0x4db   : > { %v1557_v5 = vadd.f32 %v9262_v3, %v7752_v62  ;;  %v11410_v3 = vld [vmem:[%s10864_s20 + $0x8] sm:$0xff] }
 0x4dc   : > { %v1551_v4 = vpop.f32.mrf.mxu0 }
 0x4dd   : > { %v1552_v6 = vadd.f32 %v7752_v62, %v1551_v4  ;;  %v11415_v4 = vld [vmem:[%s10864_s20 + $0x10] sm:$0xff] }
 0x4de   : > { %v9265_v61 = vpop.f32.mrf.mxu0 }
 0x4df   : > { %v1567_v26 = vadd.f32 %v9265_v61, %v7752_v62  ;;  %v11420_v61 = vld [vmem:[%s10864_s20 + $0x18] sm:$0xff] }
 0x4e0   : > { %v1561_v19 = vpop.f32.mrf.mxu0 }
 0x4e1   : > { %v1562_v28 = vadd.f32 %v7752_v62, %v1561_v19  ;;  %v11430_v19 = vld [vmem:[%s10864_s20 + $0x28] sm:$0xff] }
 0x4e2   : > { %v9268_v20 = vpop.f32.mrf.mxu0 }
 0x4e3   : > { %v1577_v22 = vadd.f32 %v9268_v20, %v7752_v62  ;;  %v11435_v20 = vld [vmem:[%s10864_s20 + $0x30] sm:$0xff] }
 0x4e4   : > { %v1571_v24 = vpop.f32.mrf.mxu0 }
 0x4e5   : > { %v1572_v1 = vadd.f32 %v7752_v62, %v1571_v24  ;;  %9297 = vmatprep.subr.mxu0 %v1577_v22  ;;  %v11425_v62 = vld [vmem:[%s10864_s20 + $0x20] sm:$0xff] }
 0x4e6   : > { %9298 = vmatpush3.msra.mxu0 %v1577_v22  ;;  %v11440_v22 = vld [vmem:[%s10864_s20 + $0x38] sm:$0xff] }
 0x4e7   : > { %9299 = vmatprep.subr.mxu0 %v1572_v1 }
 0x4e8   : > { %9300 = vmatpush3.msra.mxu0 %v1572_v1 }
 0x4e9   : > { %9301 = vmatprep.subr.mxu0 %v1567_v26 }
 0x4ea   : > { %9302 = vmatpush3.msra.mxu0 %v1567_v26 }
 0x4eb   : > { %9303 = vmatprep.subr.mxu0 %v1562_v28 }
 0x4ec   : > { %9304 = vmatpush3.msra.mxu0 %v1562_v28 }
 0x4ed   : > { %9305 = vmatprep.subr.mxu0 %v1557_v5 }
 0x4ee   : > { %9306 = vmatpush3.msra.mxu0 %v1557_v5 }
 0x4ef   : > { %9307 = vmatprep.subr.mxu0 %v1552_v6 }
 0x4f0   : > { %9308 = vmatpush3.msra.mxu0 %v1552_v6 }
 0x4f1   : > { %9309 = vmatprep.subr.mxu0 %v1547_v30 }
 0x4f2   : > { %9310 = vmatpush3.msra.mxu0 %v1547_v30 }
 0x4f3   : > { %9311 = vmatprep.subr.mxu0 %v1542_v31 }
 0x4f4   : > { %9312 = vmatpush3.msra.mxu0 %v1542_v31 }
 0x4f5   : > { %9325 = vmatprep.subr.mxu0 %v7785_v60 }
 0x53b   : > { %v1746_v7 = vpop.xlane.xlu1 %1745 }
 0x53c   : > { %v1766_v9 = vsub.f32 %v11307_v16, %v1746_v7 }
 0x53d   : > { %v1743_v10 = vpop.xlane.xlu0 %1742 }
 0x53e   : > { %v1775_v11 = vmul.f32 1.442695, %v1766_v9  ;;  %v1765_v12 = vsub.f32 %v11309_v17, %v1743_v10 }
 0x53f   : > { %v1752_v14 = vpop.xlane.xlu1 %1751 }
 0x540   : > { %10366 = vpow2.f32 %v1775_v11  ;;  %v1773_v18 = vmul.f32 1.442695, %v1765_v12  ;;  %v1768_v32 = vsub.f32 %v11313_v52, %v1752_v14 }
 0x541   : > { %v1749_v34 = vpop.xlane.xlu0 %1748 }
 0x542   : > { %10368 = vpow2.f32 %v1773_v18  ;;  %v1779_v36 = vmul.f32 1.442695, %v1768_v32  ;;  %v1767_v37 = vsub.f32 %v11317_v53, %v1749_v34 }
 0x543   : > { %v1758_v38 = vpop.xlane.xlu1 %1757 }
 0x544   : > { %10370 = vpow2.f32 %v1779_v36  ;;  %v1777_v40 = vmul.f32 1.442695, %v1767_v37  ;;  %v1770_v42 = vsub.f32 %v11321_v39, %v1758_v38 }
 0x545   : > { %v1755_v43 = vpop.xlane.xlu0 %1754 }
 0x546   : > { %10372 = vpow2.f32 %v1777_v40  ;;  %v1783_v44 = vmul.f32 1.442695, %v1770_v42  ;;  %v1769_v47 = vsub.f32 %v11325_v35, %v1755_v43 }
 0x547   : > { %v1764_v48 = vpop.xlane.xlu1 %1763 }
 0x548   : > { %10374 = vpow2.f32 %v1783_v44  ;;  %v1781_v8 = vmul.f32 1.442695, %v1769_v47  ;;  %v1772_v13 = vsub.f32 %v11329_v41, %v1764_v48  ;;  %v7826_v41 = vld [vmem:[%s13183_s4 + $0xb0] sm:$0xff]  ;;  %v11460_v47 = vpop.f32.mrf.mxu1  ;;  %v7809_v48 = vld [vmem:[%s13181_s2 + $0xb8] sm:$0xff] }
 0x549   : > { %v1761_v49 = vpop.xlane.xlu0 %1760  ;;  %9383 = vmatprep.subr.mxu1 %v7826_v41 }
 0x54a   : > { %10376 = vpow2.f32 %v1781_v8  ;;  %v1787_v50 = vmul.f32 1.442695, %v1772_v13  ;;  %v1771_v51 = vsub.f32 %v11333_v63, %v1761_v49  ;;  %9384 = vmatpush3.msra.mxu1 %v7826_v41  ;;  %v7824_v63 = vld [vmem:[%s13183_s4 + $0xa0] sm:$0xff]  ;;  %v11465_v8 = vpop.f32.mrf.mxu1 }
 0x54b   : > { %9385 = vmatprep.subr.mxu1 %v7825_v59 }
 0x54c   : > { %10378 = vpow2.f32 %v1787_v50  ;;  %v1785_v15 = vmul.f32 1.442695, %v1771_v51  ;;  %9386 = vmatpush3.msra.mxu1 %v7825_v59  ;;  %v11467_v13 = vpop.f32.mrf.mxu1 }
 0x54d   : > { %v11350_v16 = vpop.eup %10366  ;;  %9387 = vmatprep.subr.mxu1 %v7824_v63 }
 0x54e   : > { %10380 = vpow2.f32 %v1785_v15  ;;  %v1792_v33 = vsel %vm440_vm0, %v11350_v16, 0.0  ;;  %9388 = vmatpush3.msra.mxu1 %v7824_v63  ;;  %v11469_v49 = vpop.f32.mrf.mxu1  ;;  %v7808_v63 = vld [vmem:[%s13181_s2 + $0xb0] sm:$0xff] }
 0x54f   : > { %v11354_v17 = vpop.eup %10368  ;;  %1793 = vadd.xlane.f32.xlu1 %v1792_v33  ;;  %9389 = vmatprep.subr.mxu1 %v7823_v0 }
 0x550   : > { %v1789_v21 = vsel %vm440_vm0, %v11354_v17, 0.0  ;;  %9390 = vmatpush3.msra.mxu1 %v7823_v0  ;;  %v11471_v50 = vpop.f32.mrf.mxu1 }
 0x551   : > { %v11358_v23 = vpop.eup %10370  ;;  %1790 = vadd.xlane.f32.xlu0 %v1789_v21  ;;  %9391 = vmatprep.subr.mxu1 %v7822_v57 }
 0x552   : > { %v1798_v52 = vsel %vm440_vm0, %v11358_v23, 0.0  ;;  %9392 = vmatpush3.msra.mxu1 %v7822_v57  ;;  %v11473_v51 = vpop.f32.mrf.mxu1  ;;  %v7807_v57 = vld [vmem:[%s13181_s2 + $0xa8] sm:$0xff] }
 0x553   : > { %v11362_v25 = vpop.eup %10372  ;;  %1799 = vadd.xlane.f32.xlu1 %v1798_v52  ;;  %9393 = vmatprep.subr.mxu1 %v7821_v58 }
 0x554   : > { %v1795_v27 = vsel %vm440_vm0, %v11362_v25, 0.0  ;;  %9394 = vmatpush3.msra.mxu1 %v7821_v58  ;;  %v11475_v15 = vpop.f32.mrf.mxu1 }
 0x555   : > { %v11366_v53 = vpop.eup %10374  ;;  %1796 = vadd.xlane.f32.xlu0 %v1795_v27  ;;  %9395 = vmatprep.subr.mxu1 %v7820_v2 }
 0x556   : > { %v1804_v29 = vsel %vm440_vm0, %v11366_v53, 0.0  ;;  %9396 = vmatpush3.msra.mxu1 %v7820_v2  ;;  %v7806_v2 = vld [vmem:[%s13181_s2 + $0xa0] sm:$0xff] }
 0x557   : > { %v11370_v54 = vpop.eup %10376  ;;  %1805 = vadd.xlane.f32.xlu1 %v1804_v29  ;;  %9398 = vmatmul.mubr.msk.f32.vlgmr.msra.gmra.mxu1 %vm440_vm0, %v11410_v3 }
 0x558   : > { %v1801_v39 = vsel %vm440_vm0, %v11370_v54, 0.0  ;;  %9400 = vmatprep.mubr.msk.f32.mxu1 %vm440_vm0, %v11415_v4 }
 0x559   : > { %v11374_v55 = vpop.eup %10378  ;;  %1802 = vadd.xlane.f32.xlu0 %v1801_v39 }
 0x55a   : > { %v1810_v45 = vsel %vm440_vm0, %v11374_v55, 0.0 }
 0x55b   : > { %v11378_v35 = vpop.eup %10380  ;;  %1811 = vadd.xlane.f32.xlu1 %v1810_v45  ;;  %9401 = vmatmul.mubr.msk.f32.gmra.mxu1 %vm440_vm0, %v11420_v61 }
 0x55c   : > { %v1807_v46 = vsel %vm440_vm0, %v11378_v35, 0.0  ;;  %9403 = vmatprep.mubr.msk.f32.mxu1 %vm440_vm0, %v11425_v62 }
 0x55d   : > { %1808 = vadd.xlane.f32.xlu0 %v1807_v46 }
 0x55f   : > { %9404 = vmatmul.mubr.msk.f32.gmra.mxu1 %vm440_vm0, %v11430_v19 }
 0x560   : > { %9406 = vmatprep.mubr.msk.f32.mxu1 %vm440_vm0, %v11435_v20 }
 0x563   : > { %9407 = vmatmul.mubr.msk.f32.gmra.mxu1 %vm440_vm0, %v11440_v22 }
 0x5d8   : > { %v1794_v24 = vpop.xlane.xlu1 %1793 }
 0x5d9   : > { %10382 = vrcp.f32 %v1794_v24 }
 0x5da   : > { %v1791_v26 = vpop.xlane.xlu0 %1790 }
 0x5db   : > { %10384 = vrcp.f32 %v1791_v26  ;;  %v7805_v26 = vld [vmem:[%s13181_s2 + $0x98] sm:$0xff] }
 0x5dc   : > { %v1800_v1 = vpop.xlane.xlu1 %1799 }
 0x5dd   : > { %10386 = vrcp.f32 %v1800_v1 }
 0x5de   : > { %v1797_v28 = vpop.xlane.xlu0 %1796 }
 0x5df   : > { %10388 = vrcp.f32 %v1797_v28  ;;  %v7804_v28 = vld [vmem:[%s13181_s2 + $0x90] sm:$0xff] }
 0x5e0   : > { %v1806_v5 = vpop.xlane.xlu1 %1805 }
 0x5e1   : > { %10390 = vrcp.f32 %v1806_v5 }
 0x5e2   : > { %v1803_v6 = vpop.xlane.xlu0 %1802 }
 0x5e3   : > { %10392 = vrcp.f32 %v1803_v6  ;;  %v7803_v6 = vld [vmem:[%s13181_s2 + $0x88] sm:$0xff] }
 0x5e4   : > { %v1812_v30 = vpop.xlane.xlu1 %1811 }
 0x5e5   : > { %10394 = vrcp.f32 %v1812_v30 }
 0x5e6   : > { %v1809_v31 = vpop.xlane.xlu0 %1808  ;;  %v10383_v7 = vpop.eup %10382 }
 0x5e7   : > { %10396 = vrcp.f32 %v1809_v31  ;;  %v1816_v11 = vmul.f32 %v10383_v7, %v11350_v16  ;;  %v11477_v16 = vpop.f32.mrf.mxu1  ;;  %v7802_v31 = vld [vmem:[%s13181_s2 + $0x80] sm:$0xff] }
 0x5e8   : > { %v10385_v9 = vpop.eup %10384  ;;  %v11528_v7 = vld [vmem:[%s10903_s21] sm:$0xff] }
 0x5e9   : > { %v1814_v10 = vmul.f32 %v10385_v9, %v11354_v17  ;;  %v11533_v9 = vld [vmem:[%s10903_s21 + $0x8] sm:$0xff] }
 0x5ea   : > { %v10387_v12 = vpop.eup %10386 }
 0x5eb   : > { %9313 = vmatprep.mubr.msk.f32.mxu0 %vm440_vm0, %v1814_v10  ;;  %v1820_v32 = vmul.f32 %v10387_v12, %v11358_v23  ;;  %v11538_v10 = vld [vmem:[%s10903_s21 + $0x10] sm:$0xff]  ;;  %v11548_v12 = vld [vmem:[%s10903_s21 + $0x20] sm:$0xff] }
 0x5ec   : > { %v10389_v14 = vpop.eup %10388  ;;  %9314 = vmatmul.mubr.msk.f32.vlgmr.msra.gmra.mxu0 %vm440_vm0, %v1816_v11  ;;  %v11543_v11 = vld [vmem:[%s10903_s21 + $0x18] sm:$0xff] }
 0x5ed   : > { %v1818_v18 = vmul.f32 %v10389_v14, %v11362_v25  ;;  %9326 = vmatpush3.msra.mxu0 %v7785_v60  ;;  %v7829_v25 = vld [vmem:[%s13184_s5 + $0x2] ss:$0 sm:$0xff]  ;;  %v11553_v14 = vld [vmem:[%s10903_s21 + $0x28] sm:$0xff] }
 0x5ee   : > { %v10391_v34 = vpop.eup %10390  ;;  %9353 = vmatprep.subr.mxu0 %v7809_v48 }
 0x5ef   : > { %9316 = vmatprep.mubr.msk.f32.mxu0 %vm440_vm0, %v1818_v18  ;;  %v1824_v38 = vmul.f32 %v10391_v34, %v11366_v53  ;;  %v11558_v18 = vld [vmem:[%s10903_s21 + $0x30] sm:$0xff]  ;;  %v11568_v34 = vld [vmem:[%s10864_s20] sm:$0xff] }
 0x5f0   : > { %v10393_v36 = vpop.eup %10392  ;;  %9317 = vmatmul.mubr.msk.f32.gmra.mxu0 %vm440_vm0, %v1820_v32  ;;  %v11563_v32 = vld [vmem:[%s10903_s21 + $0x38] sm:$0xff] }
 0x5f1   : > { %v1822_v37 = vmul.f32 %v10393_v36, %v11370_v54 }
 0x5f2   : > { %v10395_v40 = vpop.eup %10394 }
 0x5f3   : > { %9319 = vmatprep.mubr.msk.f32.mxu0 %vm440_vm0, %v1822_v37  ;;  %v1828_v44 = vmul.f32 %v10395_v40, %v11374_v55 }
 0x5f4   : > { %v10397_v42 = vpop.eup %10396  ;;  %9320 = vmatmul.mubr.msk.f32.gmra.mxu0 %vm440_vm0, %v1824_v38 }
 0x5f5   : > { %v1826_v43 = vmul.f32 %v10397_v42, %v11378_v35 }
 0x5f7   : > { %9322 = vmatprep.mubr.msk.f32.mxu0 %vm440_vm0, %v1826_v43 }
 0x5f8   : > { %9323 = vmatmul.mubr.msk.f32.gmra.mxu0 %vm440_vm0, %v1828_v44 }
 0x617   : > { %v9399_v33 = vpop.f32.mrf.mxu1 }
 0x618   : > { %v2429_v56 = vadd.f32 %v9399_v33, %v7829_v25 }
 0x619   : > { %v2423_v17 = vpop.f32.mrf.mxu1 }
 0x61a   : > { %v2424_v41 = vadd.f32 %v7829_v25, %v2423_v17  ;;  %v7811_v17 = vld [vmem:[%s13182_s3 + $0x2] ss:$0 sm:$0xff] }
 0x61b   : > { %v9402_v21 = vpop.f32.mrf.mxu1 }
 0x61c   : > { %v2439_v35 = vadd.f32 %v9402_v21, %v7829_v25 }
 0x61d   : > { %v2433_v23 = vpop.f32.mrf.mxu1 }
 0x61e   : > { %v2434_v46 = vadd.f32 %v7829_v25, %v2433_v23 }
 0x61f   : > { %v9405_v52 = vpop.f32.mrf.mxu1 }
 0x620   : > { %v2449_v55 = vadd.f32 %v9405_v52, %v7829_v25 }
 0x621   : > { %v2443_v27 = vpop.f32.mrf.mxu1 }
 0x622   : > { %v2444_v45 = vadd.f32 %v7829_v25, %v2443_v27 }
 0x623   : > { %v9408_v53 = vpop.f32.mrf.mxu1 }
 0x624   : > { %v2459_v29 = vadd.f32 %v9408_v53, %v7829_v25 }
 0x625   : > { %v2453_v54 = vpop.f32.mrf.mxu1 }
 0x626   : > { %9437 = vmatprep.subr.msk.mxu1 %vm834_vm1, %v2459_v29  ;;  %v2454_v39 = vadd.f32 %v7829_v25, %v2453_v54 }
 0x627   : > { %9438 = vmatpush3.xpose.msk.msra.mxu1 %vm834_vm1, %v2459_v29 }
 0x628   : > { %9439 = vmatprep.subr.msk.mxu1 %vm834_vm1, %v2454_v39 }
 0x62b   : > { %9440 = vmatpush3.xpose.msk.msra.mxu1 %vm834_vm1, %v2454_v39 }
 0x62c   : > { %9441 = vmatprep.subr.msk.mxu1 %vm834_vm1, %v2449_v55 }
 0x62f   : > { %9442 = vmatpush3.xpose.msk.msra.mxu1 %vm834_vm1, %v2449_v55 }
 0x630   : > { %9443 = vmatprep.subr.msk.mxu1 %vm834_vm1, %v2444_v45 }
 0x633   : > { %9444 = vmatpush3.xpose.msk.msra.mxu1 %vm834_vm1, %v2444_v45 }
 0x634   : > { %9445 = vmatprep.subr.msk.mxu1 %vm834_vm1, %v2439_v35 }
 0x637   : > { %9446 = vmatpush3.xpose.msk.msra.mxu1 %vm834_vm1, %v2439_v35 }
 0x638   : > { %9447 = vmatprep.subr.msk.mxu1 %vm834_vm1, %v2434_v46 }
 0x63b   : > { %9448 = vmatpush3.xpose.msk.msra.mxu1 %vm834_vm1, %v2434_v46 }
 0x63c   : > { %9449 = vmatprep.subr.msk.mxu1 %vm834_vm1, %v2429_v56 }
 0x63f   : > { %9450 = vmatpush3.xpose.msk.msra.mxu1 %vm834_vm1, %v2429_v56 }
 0x640   : > { %9451 = vmatprep.subr.msk.mxu1 %vm834_vm1, %v2424_v41 }
 0x643   : > { %9452 = vmatpush3.xpose.msk.msra.mxu1 %vm834_vm1, %v2424_v41 }
 0x6ac   : > { %v9315_v59 = vpop.f32.mrf.mxu0 }
 0x6ae   : > { %v1919_v60 = vpop.f32.mrf.mxu0 }
 0x6af   : > { %9327 = vmatprep.mubr.msk.f32.mxu0 %vm834_vm1, %v1919_v60  ;;  %v7844_v60 = vld [vmem:[%s13185_s6 + $0xb0] sm:$0xff] }
 0x6b0   : > { %v9318_v0 = vpop.f32.mrf.mxu0  ;;  %9328 = vmatmul.mubr.msk.f32.vlgmr.msra.gmra.mxu0 %vm834_vm1, %v9315_v59  ;;  %v7845_v59 = vld [vmem:[%s13185_s6 + $0xb8] sm:$0xff] }
 0x6b1   : > { %9354 = vmatpush3.msra.mxu0 %v7809_v48 }
 0x6b2   : > { %9355 = vmatprep.subr.mxu0 %v7808_v63  ;;  %v1929_v58 = vpop.f32.mrf.mxu0 }
 0x6b3   : > { %9356 = vmatpush3.msra.mxu0 %v7808_v63  ;;  %9330 = vmatprep.mubr.msk.f32.mxu0 %vm834_vm1, %v1929_v58  ;;  %v7843_v63 = vld [vmem:[%s13185_s6 + $0xa8] sm:$0xff]  ;;  %v7840_v58 = vld [vmem:[%s13185_s6 + $0x90] sm:$0xff] }
 0x6b4   : > { %9357 = vmatprep.subr.mxu0 %v7807_v57  ;;  %v9321_v24 = vpop.f32.mrf.mxu0  ;;  %9331 = vmatmul.mubr.msk.f32.gmra.mxu0 %vm834_vm1, %v9318_v0  ;;  %v7842_v0 = vld [vmem:[%s13185_s6 + $0xa0] sm:$0xff] }
 0x6b5   : > { %9358 = vmatpush3.msra.mxu0 %v7807_v57  ;;  %v7841_v57 = vld [vmem:[%s13185_s6 + $0x98] sm:$0xff] }
 0x6b6   : > { %9359 = vmatprep.subr.mxu0 %v7806_v2  ;;  %v1939_v1 = vpop.f32.mrf.mxu0 }
 0x6b7   : > { %9360 = vmatpush3.msra.mxu0 %v7806_v2  ;;  %9333 = vmatprep.mubr.msk.f32.mxu0 %vm834_vm1, %v1939_v1  ;;  %v7839_v2 = vld [vmem:[%s13185_s6 + $0x88] sm:$0xff] }
 0x6b8   : > { %9361 = vmatprep.subr.mxu0 %v7805_v26  ;;  %v9324_v5 = vpop.f32.mrf.mxu0  ;;  %9334 = vmatmul.mubr.msk.f32.gmra.mxu0 %vm834_vm1, %v9321_v24  ;;  %v7838_v24 = vld [vmem:[%s13185_s6 + $0x80] sm:$0xff] }
 0x6b9   : > { %9362 = vmatpush3.msra.mxu0 %v7805_v26 }
 0x6ba   : > { %9363 = vmatprep.subr.mxu0 %v7804_v28  ;;  %v1949_v30 = vpop.f32.mrf.mxu0 }
 0x6bb   : > { %9364 = vmatpush3.msra.mxu0 %v7804_v28  ;;  %9336 = vmatprep.mubr.msk.f32.mxu0 %vm834_vm1, %v1949_v30 }
 0x6bc   : > { %9365 = vmatprep.subr.mxu0 %v7803_v6  ;;  %9337 = vmatmul.mubr.msk.f32.gmra.mxu0 %vm834_vm1, %v9324_v5 }
 0x6bd   : > { %9366 = vmatpush3.msra.mxu0 %v7803_v6  ;;  %9369 = vmatprep.mubr.msk.f32.mxu0 %vm440_vm0, %v11528_v7 }
 0x6be   : > { %9367 = vmatprep.subr.mxu0 %v7802_v31 }
 0x6bf   : > { %9368 = vmatpush3.msra.mxu0 %v7802_v31 }
 0x6c0   : > { %9370 = vmatmul.mubr.msk.f32.vlgmr.msra.gmra.mxu0 %vm440_vm0, %v11533_v9  ;;  %9409 = vmatprep.subr.mxu0 %v7845_v59 }
 0x6c1   : > { %9372 = vmatprep.mubr.msk.f32.mxu0 %vm440_vm0, %v11538_v10  ;;  %9410 = vmatpush3.msra.mxu0 %v7845_v59 }
 0x6c2   : > { %9411 = vmatprep.subr.mxu0 %v7844_v60 }
 0x6c3   : > { %9412 = vmatpush3.msra.mxu0 %v7844_v60 }
 0x6c4   : > { %9373 = vmatmul.mubr.msk.f32.gmra.mxu0 %vm440_vm0, %v11543_v11  ;;  %9413 = vmatprep.subr.mxu0 %v7843_v63 }
 0x6c5   : > { %9375 = vmatprep.mubr.msk.f32.mxu0 %vm440_vm0, %v11548_v12  ;;  %9414 = vmatpush3.msra.mxu0 %v7843_v63 }
 0x6c6   : > { %9415 = vmatprep.subr.mxu0 %v7842_v0 }
 0x6c7   : > { %9416 = vmatpush3.msra.mxu0 %v7842_v0 }
 0x6c8   : > { %9376 = vmatmul.mubr.msk.f32.gmra.mxu0 %vm440_vm0, %v11553_v14  ;;  %9417 = vmatprep.subr.mxu0 %v7841_v57 }
 0x6c9   : > { %9378 = vmatprep.mubr.msk.f32.mxu0 %vm440_vm0, %v11558_v18  ;;  %9418 = vmatpush3.msra.mxu0 %v7841_v57 }
 0x6ca   : > { %9419 = vmatprep.subr.mxu0 %v7840_v58 }
 0x6cb   : > { %9420 = vmatpush3.msra.mxu0 %v7840_v58  ;;  %v7847_v58 = vld [vmem:[%s13186_s7 + $0x2] ss:$0 sm:$0xff] }
 0x6cc   : > { %9379 = vmatmul.mubr.msk.f32.gmra.mxu0 %vm440_vm0, %v11563_v32  ;;  %9421 = vmatprep.subr.mxu0 %v7839_v2 }
 0x6cd   : > { %9425 = vmatprep.mubr.msk.f32.mxu0 %vm440_vm0, %v11568_v34  ;;  %9422 = vmatpush3.msra.mxu0 %v7839_v2 }
 0x6ce   : > { %9423 = vmatprep.subr.mxu0 %v7838_v24 }
 0x6cf   : > { %9424 = vmatpush3.msra.mxu0 %v7838_v24 }
 0x6d0   : > { %9426 = vmatmul.mubr.msk.f32.vlgmr.msra.gmra.mxu0 %vm440_vm0, %v11410_v3 }
 0x6d1   : > { %9428 = vmatprep.mubr.msk.f32.mxu0 %vm440_vm0, %v11415_v4 }
 0x6d4   : > { %9429 = vmatmul.mubr.msk.f32.gmra.mxu0 %vm440_vm0, %v11420_v61 }
 0x6d5   : > { %9431 = vmatprep.mubr.msk.f32.mxu0 %vm440_vm0, %v11425_v62 }
 0x6d8   : > { %9432 = vmatmul.mubr.msk.f32.gmra.mxu0 %vm440_vm0, %v11430_v19 }
 0x6d9   : > { %9434 = vmatprep.mubr.msk.f32.mxu0 %vm440_vm0, %v11435_v20 }
 0x6dc   : > { %9435 = vmatmul.mubr.msk.f32.gmra.mxu0 %vm440_vm0, %v11440_v22 }
 0x770   : > { %v11572_v36 = vpop.f32.mrf.mxu0 }
 0x772   : > { %v11574_v37 = vpop.f32.mrf.mxu0 }
 0x774   : > { %v11576_v38 = vpop.f32.mrf.mxu0 }
 0x776   : > { %v11578_v40 = vpop.f32.mrf.mxu0 }
 0x778   : > { %v11580_v42 = vpop.f32.mrf.mxu0 }
 0x77a   : > { %v11582_v43 = vpop.f32.mrf.mxu0 }
 0x77c   : > { %v11584_v44 = vpop.f32.mrf.mxu0 }
 0x77e   : > { %v11586_v48 = vpop.f32.mrf.mxu0 }
 0x780   : > { %v9371_v33 = vpop.f32.mrf.mxu0 }
 0x781   : > { %v2307_v52 = vadd.f32 %v9371_v33, %v7811_v17 }
 0x782   : > { %v2301_v21 = vpop.f32.mrf.mxu0 }
 0x783   : > { %v2302_v23 = vadd.f32 %v7811_v17, %v2301_v21 }
 0x784   : > { %v9374_v25 = vpop.f32.mrf.mxu0 }
 0x785   : > { %9453 = vmatprep.mubr.msk.f32.mxu1 %vm834_vm1, %v2302_v23  ;;  %v2317_v29 = vadd.f32 %v9374_v25, %v7811_v17 }
 0x786   : > { %v2311_v27 = vpop.f32.mrf.mxu0  ;;  %9454 = vmatmul.mubr.msk.f32.vlgmr.msra.gmra.mxu1 %vm834_vm1, %v2307_v52 }
 0x787   : > { %v2312_v53 = vadd.f32 %v7811_v17, %v2311_v27 }
 0x788   : > { %v9377_v54 = vpop.f32.mrf.mxu0 }
 0x789   : > { %9456 = vmatprep.mubr.msk.f32.mxu1 %vm834_vm1, %v2312_v53  ;;  %v2327_v45 = vadd.f32 %v9377_v54, %v7811_v17 }
 0x78a   : > { %v2321_v39 = vpop.f32.mrf.mxu0  ;;  %9457 = vmatmul.mubr.msk.f32.gmra.mxu1 %vm834_vm1, %v2317_v29 }
 0x78b   : > { %v2322_v55 = vadd.f32 %v7811_v17, %v2321_v39 }
 0x78c   : > { %v9380_v35 = vpop.f32.mrf.mxu0 }
 0x78d   : > { %9459 = vmatprep.mubr.msk.f32.mxu1 %vm834_vm1, %v2322_v55  ;;  %v2337_v41 = vadd.f32 %v9380_v35, %v7811_v17 }
 0x78e   : > { %v2331_v46 = vpop.f32.mrf.mxu0  ;;  %9460 = vmatmul.mubr.msk.f32.gmra.mxu1 %vm834_vm1, %v2327_v45 }
 0x78f   : > { %v2332_v56 = vadd.f32 %v7811_v17, %v2331_v46 }
 0x790   : > { %v9427_v59 = vpop.f32.mrf.mxu0 }
 0x791   : > { %9462 = vmatprep.mubr.msk.f32.mxu1 %vm834_vm1, %v2332_v56 }
 0x792   : > { %9463 = vmatmul.mubr.msk.f32.gmra.mxu1 %vm834_vm1, %v2337_v41  ;;  %v2545_v60 = vpop.f32.mrf.mxu0 }
 0x793   : > { %9523 = vmatprep.mubr.msk.f32.mxu1 %vm440_vm0, %v11528_v7 }
 0x794   : > { %v9430_v63 = vpop.f32.mrf.mxu0 }
 0x796   : > { %v2555_v0 = vpop.f32.mrf.mxu0 }
 0x798   : > { %v9433_v57 = vpop.f32.mrf.mxu0 }
 0x79a   : > { %v2565_v2 = vpop.f32.mrf.mxu0 }
 0x79c   : > { %v9436_v24 = vpop.f32.mrf.mxu0 }
 0x846   : > { %v9455_v26 = vpop.f32.mrf.mxu1 }
 0x847   : > { %v11639_v1 = vmul.f32 0.35355338, %v9455_v26  ;;  %v2581_v26 = vadd.f32 %v9436_v24, %v7847_v58 }
 0x848   : > { %v2698_v28 = vpop.f32.mrf.mxu1 }
 0x849   : > { %v11641_v5 = vmul.f32 0.35355338, %v2698_v28  ;;  %v2748_v6 = vsel %vm440_vm0, %v11639_v1, -inf  ;;  %v2575_v28 = vpop.f32.mrf.mxu0  ;;  %9465 = vmatprep.subr.mxu0 %v2581_v26 }
 0x84a   : > { %2749 = vmax.xlane.f32.xlu1 %v2748_v6  ;;  %v9458_v30 = vpop.f32.mrf.mxu1  ;;  %v2571_v6 = vadd.f32 %v9433_v57, %v7847_v58  ;;  %9466 = vmatpush3.msra.mxu0 %v2581_v26 }
 0x84b   : > { %v11645_v31 = vmul.f32 0.35355338, %v9458_v30  ;;  %v2745_v33 = vsel %vm440_vm0, %v11641_v5, -inf  ;;  %v2576_v30 = vadd.f32 %v7847_v58, %v2575_v28 }
 0x84c   : > { %2746 = vmax.xlane.f32.xlu0 %v2745_v33  ;;  %v2708_v17 = vpop.f32.mrf.mxu1  ;;  %v2566_v33 = vadd.f32 %v7847_v58, %v2565_v2 }
 0x84d   : > { %v11649_v21 = vmul.f32 0.35355338, %v2708_v17  ;;  %v2754_v23 = vsel %vm440_vm0, %v11645_v31, -inf  ;;  %9467 = vmatprep.subr.mxu0 %v2576_v30  ;;  %v2561_v17 = vadd.f32 %v9430_v63, %v7847_v58 }
 0x84e   : > { %2755 = vmax.xlane.f32.xlu1 %v2754_v23  ;;  %v9461_v52 = vpop.f32.mrf.mxu1  ;;  %9468 = vmatpush3.msra.mxu0 %v2576_v30  ;;  %v2556_v23 = vadd.f32 %v7847_v58, %v2555_v0 }
 0x84f   : > { %v11653_v25 = vmul.f32 0.35355338, %v9461_v52  ;;  %v2751_v27 = vsel %vm440_vm0, %v11649_v21, -inf  ;;  %9469 = vmatprep.subr.mxu0 %v2571_v6  ;;  %v2551_v52 = vadd.f32 %v9427_v59, %v7847_v58 }
 0x850   : > { %2752 = vmax.xlane.f32.xlu0 %v2751_v27  ;;  %v2718_v53 = vpop.f32.mrf.mxu1  ;;  %9470 = vmatpush3.msra.mxu0 %v2571_v6  ;;  %v2546_v27 = vadd.f32 %v7847_v58, %v2545_v60 }
 0x851   : > { %v11657_v29 = vmul.f32 0.35355338, %v2718_v53  ;;  %v2760_v54 = vsel %vm440_vm0, %v11653_v25, -inf  ;;  %9471 = vmatprep.subr.mxu0 %v2566_v33 }
 0x852   : > { %2761 = vmax.xlane.f32.xlu1 %v2760_v54  ;;  %v9464_v39 = vpop.f32.mrf.mxu1  ;;  %9472 = vmatpush3.msra.mxu0 %v2566_v33 }
 0x853   : > { %v11661_v55 = vmul.f32 0.35355338, %v9464_v39  ;;  %v2757_v45 = vsel %vm440_vm0, %v11657_v29, -inf  ;;  %9473 = vmatprep.subr.mxu0 %v2561_v17 }
 0x854   : > { %2758 = vmax.xlane.f32.xlu0 %v2757_v45  ;;  %v2728_v35 = vpop.f32.mrf.mxu1  ;;  %9474 = vmatpush3.msra.mxu0 %v2561_v17 }
 0x855   : > { %v11665_v46 = vmul.f32 0.35355338, %v2728_v35  ;;  %v2766_v56 = vsel %vm440_vm0, %v11661_v55, -inf  ;;  %9475 = vmatprep.subr.mxu0 %v2556_v23 }
 0x856   : > { %2767 = vmax.xlane.f32.xlu1 %v2766_v56  ;;  %9476 = vmatpush3.msra.mxu0 %v2556_v23 }
 0x857   : > { %v2763_v41 = vsel %vm440_vm0, %v11665_v46, -inf  ;;  %9477 = vmatprep.subr.mxu0 %v2551_v52 }
 0x858   : > { %2764 = vmax.xlane.f32.xlu0 %v2763_v41  ;;  %9478 = vmatpush3.msra.mxu0 %v2551_v52 }
 0x859   : > { %9479 = vmatprep.subr.mxu0 %v2546_v27 }
 0x85a   : > { %9480 = vmatpush3.msra.mxu0 %v2546_v27 }
 0x8d3   : > { %v2750_v53 = vpop.xlane.xlu1 %2749 }
 0x8d4   : > { %v2770_v54 = vsub.f32 %v11639_v1, %v2750_v53 }
 0x8d5   : > { %v2747_v39 = vpop.xlane.xlu0 %2746 }
 0x8d6   : > { %v2779_v45 = vmul.f32 1.442695, %v2770_v54  ;;  %v2769_v35 = vsub.f32 %v11641_v5, %v2747_v39 }
 0x8d7   : > { %v2756_v56 = vpop.xlane.xlu1 %2755 }
 0x8d8   : > { %10398 = vpow2.f32 %v2779_v45  ;;  %v2777_v41 = vmul.f32 1.442695, %v2769_v35  ;;  %v2772_v59 = vsub.f32 %v11645_v31, %v2756_v56 }
 0x8d9   : > { %v2753_v63 = vpop.xlane.xlu0 %2752 }
 0x8da   : > { %10400 = vpow2.f32 %v2777_v41  ;;  %v2783_v60 = vmul.f32 1.442695, %v2772_v59  ;;  %v2771_v0 = vsub.f32 %v11649_v21, %v2753_v63  ;;  %v7880_v63 = vld [vmem:[%s13187_s8 + $0x10] sm:$0xff] }
 0x8db   : > { %v2762_v57 = vpop.xlane.xlu1 %2761  ;;  %9493 = vmatprep.subr.mxu0 %v7880_v63 }
 0x8dc   : > { %10402 = vpow2.f32 %v2783_v60  ;;  %v2781_v58 = vmul.f32 1.442695, %v2771_v0  ;;  %v2774_v2 = vsub.f32 %v11653_v25, %v2762_v57 }
 0x8dd   : > { %v2759_v1 = vpop.xlane.xlu0 %2758 }
 0x8de   : > { %10404 = vpow2.f32 %v2781_v58  ;;  %v2787_v24 = vmul.f32 1.442695, %v2774_v2  ;;  %v2773_v5 = vsub.f32 %v11657_v29, %v2759_v1 }
 0x8df   : > { %v2768_v26 = vpop.xlane.xlu1 %2767 }
 0x8e0   : > { %10406 = vpow2.f32 %v2787_v24  ;;  %v2785_v28 = vmul.f32 1.442695, %v2773_v5  ;;  %v2776_v31 = vsub.f32 %v11661_v55, %v2768_v26 }
 0x8e1   : > { %v2765_v6 = vpop.xlane.xlu0 %2764 }
 0x8e2   : > { %10408 = vpow2.f32 %v2785_v28  ;;  %v2791_v30 = vmul.f32 1.442695, %v2776_v31  ;;  %v2775_v21 = vsub.f32 %v11665_v46, %v2765_v6 }
 0x8e4   : > { %10410 = vpow2.f32 %v2791_v30  ;;  %v2789_v33 = vmul.f32 1.442695, %v2775_v21 }
 0x8e5   : > { %v10399_v17 = vpop.eup %10398 }
 0x8e6   : > { %10412 = vpow2.f32 %v2789_v33  ;;  %v2796_v25 = vsel %vm440_vm0, %v10399_v17, 0.0 }
 0x8e7   : > { %v10401_v23 = vpop.eup %10400  ;;  %2797 = vadd.xlane.f32.xlu1 %v2796_v25 }
 0x8e8   : > { %v2793_v29 = vsel %vm440_vm0, %v10401_v23, 0.0 }
 0x8e9   : > { %v10403_v52 = vpop.eup %10402  ;;  %2794 = vadd.xlane.f32.xlu0 %v2793_v29 }
 0x8ea   : > { %v2802_v27 = vsel %vm440_vm0, %v10403_v52, 0.0 }
 0x8eb   : > { %v10405_v55 = vpop.eup %10404  ;;  %2803 = vadd.xlane.f32.xlu1 %v2802_v27 }
 0x8ec   : > { %v2799_v53 = vsel %vm440_vm0, %v10405_v55, 0.0 }
 0x8ed   : > { %v10407_v54 = vpop.eup %10406  ;;  %2800 = vadd.xlane.f32.xlu0 %v2799_v53 }
 0x8ee   : > { %v2808_v46 = vsel %vm440_vm0, %v10407_v54, 0.0 }
 0x8ef   : > { %v10409_v39 = vpop.eup %10408  ;;  %2809 = vadd.xlane.f32.xlu1 %v2808_v46 }
 0x8f0   : > { %v2805_v45 = vsel %vm440_vm0, %v10409_v39, 0.0 }
 0x8f1   : > { %v10411_v35 = vpop.eup %10410  ;;  %2806 = vadd.xlane.f32.xlu0 %v2805_v45 }
 0x8f2   : > { %v2814_v56 = vsel %vm440_vm0, %v10411_v35, 0.0 }
 0x8f3   : > { %v10413_v41 = vpop.eup %10412  ;;  %2815 = vadd.xlane.f32.xlu1 %v2814_v56 }
 0x8f4   : > { %v2811_v59 = vsel %vm440_vm0, %v10413_v41, 0.0 }
 0x8f5   : > { %2812 = vadd.xlane.f32.xlu0 %v2811_v59  ;;  %v7891_v59 = vld [vmem:[%s13181_s2 + $0xd0] sm:$0xff] }
 0x970   : > { %v2798_v60 = vpop.xlane.xlu1 %2797 }
 0x971   : > { %10414 = vrcp.f32 %v2798_v60  ;;  %v7889_v60 = vld [vmem:[%s13181_s2 + $0xc0] sm:$0xff] }
 0x972   : > { %v2795_v0 = vpop.xlane.xlu0 %2794 }
 0x973   : > { %10416 = vrcp.f32 %v2795_v0 }
 0x974   : > { %v2804_v57 = vpop.xlane.xlu1 %2803 }
 0x975   : > { %10418 = vrcp.f32 %v2804_v57  ;;  %v7910_v57 = vld [vmem:[%s13183_s4 + $0xd8] sm:$0xff] }
 0x976   : > { %v2801_v58 = vpop.xlane.xlu0 %2800 }
 0x977   : > { %10420 = vrcp.f32 %v2801_v58 }
 0x978   : > { %v2810_v2 = vpop.xlane.xlu1 %2809 }
 0x979   : > { %10422 = vrcp.f32 %v2810_v2  ;;  %v7909_v2 = vld [vmem:[%s13183_s4 + $0xd0] sm:$0xff] }
 0x97a   : > { %v2807_v1 = vpop.xlane.xlu0 %2806 }
 0x97b   : > { %10424 = vrcp.f32 %v2807_v1 }
 0x97c   : > { %v2816_v24 = vpop.xlane.xlu1 %2815 }
 0x97d   : > { %10426 = vrcp.f32 %v2816_v24  ;;  %v7908_v24 = vld [vmem:[%s13183_s4 + $0xc8] sm:$0xff] }
 0x97e   : > { %v2813_v5 = vpop.xlane.xlu0 %2812  ;;  %v10415_v26 = vpop.eup %10414 }
 0x97f   : > { %10428 = vrcp.f32 %v2813_v5  ;;  %v2820_v6 = vmul.f32 %v10415_v26, %v10399_v17  ;;  %v7907_v26 = vld [vmem:[%s13183_s4 + $0xc0] sm:$0xff] }
 0x980   : > { %v10417_v28 = vpop.eup %10416 }
 0x981   : > { %v2818_v31 = vmul.f32 %v10417_v28, %v10401_v23 }
 0x982   : > { %v10419_v30 = vpop.eup %10418 }
 0x983   : > { %9481 = vmatprep.mubr.msk.f32.mxu0 %vm440_vm0, %v2818_v31  ;;  %v2824_v25 = vmul.f32 %v10419_v30, %v10403_v52  ;;  %v7914_v52 = vld [vmem:[%s13183_s4 + $0xf8] sm:$0xff]  ;;  %v2195_v31 = vadd.f32 %v11467_v13, %v11576_v38 }
 0x984   : > { %v10421_v21 = vpop.eup %10420  ;;  %9482 = vmatmul.mubr.msk.f32.vlgmr.msra.gmra.mxu0 %vm440_vm0, %v2820_v6 }
 0x985   : > { %v2822_v33 = vmul.f32 %v10421_v21, %v10405_v55  ;;  %9494 = vmatpush3.msra.mxu0 %v7880_v63  ;;  %v7896_v55 = vld [vmem:[%s13181_s2 + $0xf8] sm:$0xff]  ;;  %v7890_v63 = vld [vmem:[%s13181_s2 + $0xc8] sm:$0xff] }
 0x986   : > { %v10423_v29 = vpop.eup %10422  ;;  %9535 = vmatprep.subr.mxu0 %v7914_v52  ;;  %9507 = vmatprep.subr.mxu1 %v7896_v55 }
 0x987   : > { %9484 = vmatprep.mubr.msk.f32.mxu0 %vm440_vm0, %v2822_v33  ;;  %v2828_v46 = vmul.f32 %v10423_v29, %v10407_v54  ;;  %v7895_v54 = vld [vmem:[%s13181_s2 + $0xf0] sm:$0xff]  ;;  %9508 = vmatpush3.msra.mxu1 %v7896_v55  ;;  %v2205_v33 = vadd.f32 %v11471_v50, %v11580_v42  ;;  %v7916_v50 = vld [vmem:[%s13184_s5 + $0x3] ss:$0 sm:$0xff] }
 0x988   : > { %v10425_v27 = vpop.eup %10424  ;;  %9485 = vmatmul.mubr.msk.f32.gmra.mxu0 %vm440_vm0, %v2824_v25  ;;  %9509 = vmatprep.subr.mxu1 %v7895_v54 }
 0x989   : > { %v2826_v53 = vmul.f32 %v10425_v27, %v10409_v39  ;;  %v7894_v39 = vld [vmem:[%s13181_s2 + $0xe8] sm:$0xff]  ;;  %9510 = vmatpush3.msra.mxu1 %v7895_v54 }
 0x98a   : > { %v10427_v45 = vpop.eup %10426  ;;  %9511 = vmatprep.subr.mxu1 %v7894_v39 }
 0x98b   : > { %9487 = vmatprep.mubr.msk.f32.mxu0 %vm440_vm0, %v2826_v53  ;;  %v2832_v56 = vmul.f32 %v10427_v45, %v10411_v35  ;;  %v7893_v35 = vld [vmem:[%s13181_s2 + $0xe0] sm:$0xff]  ;;  %9512 = vmatpush3.msra.mxu1 %v7894_v39 }
 0x98c   : > { %v10429_v17 = vpop.eup %10428  ;;  %9488 = vmatmul.mubr.msk.f32.gmra.mxu0 %vm440_vm0, %v2828_v46  ;;  %9513 = vmatprep.subr.mxu1 %v7893_v35 }
 0x98d   : > { %v2830_v23 = vmul.f32 %v10429_v17, %v10413_v41  ;;  %v7892_v41 = vld [vmem:[%s13181_s2 + $0xd8] sm:$0xff]  ;;  %9514 = vmatpush3.msra.mxu1 %v7893_v35 }
 0x98e   : > { %9515 = vmatprep.subr.mxu1 %v7892_v41 }
 0x98f   : > { %9490 = vmatprep.mubr.msk.f32.mxu0 %vm440_vm0, %v2830_v23  ;;  %9516 = vmatpush3.msra.mxu1 %v7892_v41 }
 0x990   : > { %9491 = vmatmul.mubr.msk.f32.gmra.mxu0 %vm440_vm0, %v2832_v56  ;;  %9517 = vmatprep.subr.mxu1 %v7891_v59 }
 0x991   : > { %9518 = vmatpush3.msra.mxu1 %v7891_v59 }
 0x992   : > { %9519 = vmatprep.subr.mxu1 %v7890_v63 }
 0x993   : > { %9520 = vmatpush3.msra.mxu1 %v7890_v63 }
 0x994   : > { %9521 = vmatprep.subr.mxu1 %v7889_v60 }
 0x995   : > { %9522 = vmatpush3.msra.mxu1 %v7889_v60 }
 0x996   : > { %9524 = vmatmul.mubr.msk.f32.vlgmr.msra.gmra.mxu1 %vm440_vm0, %v11533_v9 }
 0x997   : > { %9526 = vmatprep.mubr.msk.f32.mxu1 %vm440_vm0, %v11538_v10 }
 0x99a   : > { %9527 = vmatmul.mubr.msk.f32.gmra.mxu1 %vm440_vm0, %v11543_v11  ;;  %v7913_v11 = vld [vmem:[%s13183_s4 + $0xf0] sm:$0xff] }
 0x99b   : > { %9529 = vmatprep.mubr.msk.f32.mxu1 %vm440_vm0, %v11548_v12 }
 0x99e   : > { %9530 = vmatmul.mubr.msk.f32.gmra.mxu1 %vm440_vm0, %v11553_v14  ;;  %v7912_v14 = vld [vmem:[%s13183_s4 + $0xe8] sm:$0xff] }
 0x99f   : > { %9532 = vmatprep.mubr.msk.f32.mxu1 %vm440_vm0, %v11558_v18 }
 0x9a2   : > { %9533 = vmatmul.mubr.msk.f32.gmra.mxu1 %vm440_vm0, %v11563_v32  ;;  %v7911_v32 = vld [vmem:[%s13183_s4 + $0xe0] sm:$0xff] }
 0x9a3   : > { %9579 = vmatprep.mubr.msk.f32.mxu1 %vm440_vm0, %v11568_v34 }
 0xa44   : > { %v9483_v9 = vpop.f32.mrf.mxu0 }
 0xa46   : > { %v2923_v10 = vpop.f32.mrf.mxu0 }
 0xa47   : > { %9495 = vmatprep.mubr.msk.f32.mxu0 %vm834_vm1, %v2923_v10 }
 0xa48   : > { %v9486_v12 = vpop.f32.mrf.mxu0  ;;  %9496 = vmatmul.mubr.msk.f32.vlgmr.msra.gmra.mxu0 %vm834_vm1, %v9483_v9 }
 0xa49   : > { %9536 = vmatpush3.msra.mxu0 %v7914_v52 }
 0xa4a   : > { %9537 = vmatprep.subr.mxu0 %v7913_v11  ;;  %v2933_v18 = vpop.f32.mrf.mxu0 }
 0xa4b   : > { %9538 = vmatpush3.msra.mxu0 %v7913_v11  ;;  %9498 = vmatprep.mubr.msk.f32.mxu0 %vm834_vm1, %v2933_v18 }
 0xa4c   : > { %9539 = vmatprep.subr.mxu0 %v7912_v14  ;;  %v9489_v0 = vpop.f32.mrf.mxu0  ;;  %9499 = vmatmul.mubr.msk.f32.gmra.mxu0 %vm834_vm1, %v9486_v12 }
 0xa4d   : > { %9540 = vmatpush3.msra.mxu0 %v7912_v14 }
 0xa4e   : > { %9541 = vmatprep.subr.mxu0 %v7911_v32  ;;  %v2943_v58 = vpop.f32.mrf.mxu0 }
 0xa4f   : > { %9542 = vmatpush3.msra.mxu0 %v7911_v32  ;;  %9501 = vmatprep.mubr.msk.f32.mxu0 %vm834_vm1, %v2943_v58 }
 0xa50   : > { %9543 = vmatprep.subr.mxu0 %v7910_v57  ;;  %v9492_v1 = vpop.f32.mrf.mxu0  ;;  %9502 = vmatmul.mubr.msk.f32.gmra.mxu0 %vm834_vm1, %v9489_v0 }
 0xa51   : > { %9544 = vmatpush3.msra.mxu0 %v7910_v57 }
 0xa52   : > { %9545 = vmatprep.subr.mxu0 %v7909_v2  ;;  %v2953_v5 = vpop.f32.mrf.mxu0 }
 0xa53   : > { %9546 = vmatpush3.msra.mxu0 %v7909_v2  ;;  %9504 = vmatprep.mubr.msk.f32.mxu0 %vm834_vm1, %v2953_v5  ;;  %v7932_v2 = vld [vmem:[%s13185_s6 + $0xf8] sm:$0xff] }
 0xa54   : > { %9547 = vmatprep.subr.mxu0 %v7908_v24  ;;  %9505 = vmatmul.mubr.msk.f32.gmra.mxu0 %vm834_vm1, %v9492_v1  ;;  %v7931_v1 = vld [vmem:[%s13185_s6 + $0xf0] sm:$0xff]  ;;  %v7928_v5 = vld [vmem:[%s13185_s6 + $0xd8] sm:$0xff] }
 0xa55   : > { %9548 = vmatpush3.msra.mxu0 %v7908_v24  ;;  %9551 = vmatprep.mubr.msk.f32.mxu0 %vm440_vm0, %v11568_v34  ;;  %v7930_v24 = vld [vmem:[%s13185_s6 + $0xe8] sm:$0xff] }
 0xa56   : > { %9549 = vmatprep.subr.mxu0 %v7907_v26  ;;  %v9525_v34 = vpop.f32.mrf.mxu1  ;;  %9563 = vmatprep.subr.mxu1 %v7932_v2 }
 0xa57   : > { %9550 = vmatpush3.msra.mxu0 %v7907_v26  ;;  %9564 = vmatpush3.msra.mxu1 %v7932_v2  ;;  %v7927_v26 = vld [vmem:[%s13185_s6 + $0xd0] sm:$0xff] }
 0xa58   : > { %9552 = vmatmul.mubr.msk.f32.vlgmr.msra.gmra.mxu0 %vm440_vm0, %v11410_v3  ;;  %v11792_v3 = vld [vmem:[%s13182_s3 + $0x3] ss:$0 sm:$0xff]  ;;  %9565 = vmatprep.subr.mxu1 %v7931_v1 }
 0xa59   : > { %9554 = vmatprep.mubr.msk.f32.mxu0 %vm440_vm0, %v11415_v4  ;;  %v3190_v4 = vadd.f32 %v9525_v34, %v11792_v3  ;;  %9566 = vmatpush3.msra.mxu1 %v7931_v1  ;;  %v7926_v34 = vld [vmem:[%s13185_s6 + $0xc8] sm:$0xff] }
 0xa5a   : > { %9567 = vmatprep.subr.mxu1 %v7930_v24 }
 0xa5b   : > { %9568 = vmatpush3.msra.mxu1 %v7930_v24 }
 0xa5c   : > { %9555 = vmatmul.mubr.msk.f32.gmra.mxu0 %vm440_vm0, %v11420_v61  ;;  %v3184_v61 = vpop.f32.mrf.mxu1 }
 0xa5d   : > { %9557 = vmatprep.mubr.msk.f32.mxu0 %vm440_vm0, %v11425_v62  ;;  %v3185_v62 = vadd.f32 %v11792_v3, %v3184_v61  ;;  %v11885_v61 = vld [vmem:[%s10864_s20 + $0x10] sm:$0xff] }
 0xa5e   : > { %v9528_v35 = vpop.f32.mrf.mxu1 }
 0xa5f   : > { %v3200_v18 = vadd.f32 %v9528_v35, %v11792_v3 }
 0xa60   : > { %9558 = vmatmul.mubr.msk.f32.gmra.mxu0 %vm440_vm0, %v11430_v19  ;;  %v2185_v19 = vadd.f32 %v11460_v47, %v11572_v36  ;;  %v2215_v36 = vadd.f32 %v11475_v15, %v11584_v44  ;;  %v3194_v59 = vpop.f32.mrf.mxu1 }
 0xa61   : > { %9560 = vmatprep.mubr.msk.f32.mxu0 %vm440_vm0, %v11435_v20  ;;  %v3195_v11 = vadd.f32 %v11792_v3, %v3194_v59 }
 0xa62   : > { %v9531_v60 = vpop.f32.mrf.mxu1 }
 0xa63   : > { %v3210_v57 = vadd.f32 %v9531_v60, %v11792_v3 }
 0xa64   : > { %9561 = vmatmul.mubr.msk.f32.gmra.mxu0 %vm440_vm0, %v11440_v22  ;;  %v3204_v10 = vpop.f32.mrf.mxu1 }
 0xa65   : > { %9607 = vmatprep.mubr.msk.f32.mxu0 %vm834_vm1, %v3185_v62  ;;  %v3205_v14 = vadd.f32 %v11792_v3, %v3204_v10  ;;  %v11890_v62 = vld [vmem:[%s10864_s20 + $0x18] sm:$0xff] }
 0xa66   : > { %v9534_v12 = vpop.f32.mrf.mxu1 }
 0xa67   : > { %v3220_v58 = vadd.f32 %v9534_v12, %v11792_v3 }
 0xa68   : > { %v3214_v32 = vpop.f32.mrf.mxu1 }
 0xa69   : > { %v3215_v0 = vadd.f32 %v11792_v3, %v3214_v32  ;;  %v7925_v3 = vld [vmem:[%s13185_s6 + $0xc0] sm:$0xff] }
 0xa6a   : > { %v7934_v32 = vld [vmem:[%s13186_s7 + $0x3] ss:$0 sm:$0xff] }
 0xb08   : > { %v9497_v20 = vpop.f32.mrf.mxu0 }
 0xb09   : > { %v11799_v28 = vadd.f32 %v9497_v20, %v2185_v19  ;;  %v11895_v19 = vld [vmem:[%s10864_s20 + $0x20] sm:$0xff]  ;;  %v11900_v20 = vld [vmem:[%s10864_s20 + $0x28] sm:$0xff] }
 0xb0a   : > { %v11801_v22 = vpop.f32.mrf.mxu0 }
 0xb0c   : > { %v9500_v6 = vpop.f32.mrf.mxu0 }
 0xb0d   : > { %v11805_v30 = vadd.f32 %v9500_v6, %v2195_v31  ;;  %v11905_v31 = vld [vmem:[%s10864_s20 + $0x30] sm:$0xff]  ;;  %v11910_v6 = vld [vmem:[%s10864_s20 + $0x38] sm:$0xff] }
 0xb0e   : > { %v11807_v21 = vpop.f32.mrf.mxu0 }
 0xb10   : > { %v9503_v25 = vpop.f32.mrf.mxu0 }
 0xb11   : > { %v11811_v29 = vadd.f32 %v9503_v25, %v2205_v33 }
 0xb12   : > { %v11813_v47 = vpop.f32.mrf.mxu0 }
 0xb14   : > { %v9506_v27 = vpop.f32.mrf.mxu0 }
 0xb15   : > { %v11817_v53 = vadd.f32 %v9506_v27, %v2215_v36 }
 0xb16   : > { %v11819_v13 = vpop.f32.mrf.mxu0 }
 0xb18   : > { %v9553_v38 = vpop.f32.mrf.mxu0 }
 0xb19   : > { %v3312_v63 = vadd.f32 %v9553_v38, %v7916_v50 }
 0xb1a   : > { %v3306_v46 = vpop.f32.mrf.mxu0 }
 0xb1b   : > { %v3307_v9 = vadd.f32 %v7916_v50, %v3306_v46 }
 0xb1c   : > { %v9556_v45 = vpop.f32.mrf.mxu0 }
 0xb1d   : > { %v3322_v39 = vadd.f32 %v9556_v45, %v7916_v50 }
 0xb1e   : > { %v3316_v17 = vpop.f32.mrf.mxu0 }
 0xb1f   : > { %v3317_v41 = vadd.f32 %v7916_v50, %v3316_v17 }
 0xb20   : > { %v9559_v23 = vpop.f32.mrf.mxu0 }
 0xb21   : > { %v3332_v15 = vadd.f32 %v9559_v23, %v7916_v50 }
 0xb22   : > { %v3326_v56 = vpop.f32.mrf.mxu0 }
 0xb23   : > { %v3327_v44 = vadd.f32 %v7916_v50, %v3326_v56 }
 0xb24   : > { %v9562_v42 = vpop.f32.mrf.mxu0 }
 0xb25   : > { %v3342_v52 = vadd.f32 %v9562_v42, %v7916_v50 }
 0xb26   : > { %v3336_v55 = vpop.f32.mrf.mxu0 }
 0xb27   : > { %v3337_v54 = vadd.f32 %v7916_v50, %v3336_v55  ;;  %9591 = vmatprep.subr.msk.mxu0 %vm834_vm1, %v3342_v52 }
 0xb28   : > { %9592 = vmatpush3.xpose.msk.msra.mxu0 %vm834_vm1, %v3342_v52 }
 0xb29   : > { %9593 = vmatprep.subr.msk.mxu0 %vm834_vm1, %v3337_v54 }
 0xb2c   : > { %9594 = vmatpush3.xpose.msk.msra.mxu0 %vm834_vm1, %v3337_v54 }
 0xb2d   : > { %9595 = vmatprep.subr.msk.mxu0 %vm834_vm1, %v3332_v15 }
 0xb30   : > { %9596 = vmatpush3.xpose.msk.msra.mxu0 %vm834_vm1, %v3332_v15 }
 0xb31   : > { %9597 = vmatprep.subr.msk.mxu0 %vm834_vm1, %v3327_v44 }
 0xb34   : > { %9598 = vmatpush3.xpose.msk.msra.mxu0 %vm834_vm1, %v3327_v44 }
 0xb35   : > { %9599 = vmatprep.subr.msk.mxu0 %vm834_vm1, %v3322_v39 }
 0xb38   : > { %9600 = vmatpush3.xpose.msk.msra.mxu0 %vm834_vm1, %v3322_v39 }
 0xb39   : > { %9601 = vmatprep.subr.msk.mxu0 %vm834_vm1, %v3317_v41 }
 0xb3c   : > { %9602 = vmatpush3.xpose.msk.msra.mxu0 %vm834_vm1, %v3317_v41 }
 0xb3d   : > { %9603 = vmatprep.subr.msk.mxu0 %vm834_vm1, %v3312_v63 }
 0xb40   : > { %9604 = vmatpush3.xpose.msk.msra.mxu0 %vm834_vm1, %v3312_v63 }
 0xb41   : > { %9605 = vmatprep.subr.msk.mxu0 %vm834_vm1, %v3307_v9 }
 0xb44   : > { %9606 = vmatpush3.xpose.msk.msra.mxu0 %vm834_vm1, %v3307_v9 }
 0xb47   : > { %9608 = vmatmul.mubr.msk.f32.vlgmr.msra.gmra.mxu0 %vm834_vm1, %v3190_v4  ;;  %v11880_v4 = vld [vmem:[%s10864_s20 + $0x8] sm:$0xff] }
 0xb48   : > { %9610 = vmatprep.mubr.msk.f32.mxu0 %vm834_vm1, %v3195_v11 }
 0xb4b   : > { %9611 = vmatmul.mubr.msk.f32.gmra.mxu0 %vm834_vm1, %v3200_v18 }
 0xb4c   : > { %9613 = vmatprep.mubr.msk.f32.mxu0 %vm834_vm1, %v3205_v14 }
 0xb4f   : > { %9614 = vmatmul.mubr.msk.f32.gmra.mxu0 %vm834_vm1, %v3210_v57 }
 0xb50   : > { %9616 = vmatprep.mubr.msk.f32.mxu0 %vm834_vm1, %v3215_v0 }
 0xb53   : > { %9617 = vmatmul.mubr.msk.f32.gmra.mxu0 %vm834_vm1, %v3220_v58 }
 0xb54   : > { %9677 = vmatprep.mubr.msk.f32.mxu0 %vm440_vm0, %v11528_v7  ;;  %v7929_v7 = vld [vmem:[%s13185_s6 + $0xe0] sm:$0xff] }
 0xb55   : > { %9569 = vmatprep.subr.mxu1 %v7929_v7 }
 0xb56   : > { %9570 = vmatpush3.msra.mxu1 %v7929_v7 }
 0xb57   : > { %9571 = vmatprep.subr.mxu1 %v7928_v5 }
 0xb58   : > { %9572 = vmatpush3.msra.mxu1 %v7928_v5 }
 0xb59   : > { %9573 = vmatprep.subr.mxu1 %v7927_v26 }
 0xb5a   : > { %9574 = vmatpush3.msra.mxu1 %v7927_v26 }
 0xb5b   : > { %9575 = vmatprep.subr.mxu1 %v7926_v34 }
 0xb5c   : > { %9576 = vmatpush3.msra.mxu1 %v7926_v34 }
 0xb5d   : > { %9577 = vmatprep.subr.mxu1 %v7925_v3 }
 0xb5e   : > { %9578 = vmatpush3.msra.mxu1 %v7925_v3 }
 0xb5f   : > { %9580 = vmatmul.mubr.msk.f32.vlgmr.msra.gmra.mxu1 %vm440_vm0, %v11880_v4 }
 0xb60   : > { %9582 = vmatprep.mubr.msk.f32.mxu1 %vm440_vm0, %v11885_v61 }
 0xb63   : > { %9583 = vmatmul.mubr.msk.f32.gmra.mxu1 %vm440_vm0, %v11890_v62 }
 0xb64   : > { %9585 = vmatprep.mubr.msk.f32.mxu1 %vm440_vm0, %v11895_v19 }
 0xb67   : > { %9586 = vmatmul.mubr.msk.f32.gmra.mxu1 %vm440_vm0, %v11900_v20 }
 0xb68   : > { %9588 = vmatprep.mubr.msk.f32.mxu1 %vm440_vm0, %v11905_v31 }
 0xb6b   : > { %9589 = vmatmul.mubr.msk.f32.gmra.mxu1 %vm440_vm0, %v11910_v6 }
 0xc07   : > { %v9609_v33 = vpop.f32.mrf.mxu0 }
 0xc08   : > { %v11914_v25 = vmul.f32 0.35355338, %v9609_v33 }
 0xc09   : > { %v3581_v36 = vpop.f32.mrf.mxu0 }
 0xc0a   : > { %v11916_v27 = vmul.f32 0.35355338, %v3581_v36  ;;  %v3631_v38 = vsel %vm440_vm0, %v11914_v25, -inf }
 0xc0b   : > { %3632 = vmax.xlane.f32.xlu1 %v3631_v38  ;;  %v9612_v46 = vpop.f32.mrf.mxu0 }
 0xc0c   : > { %v11920_v45 = vmul.f32 0.35355338, %v9612_v46  ;;  %v3628_v17 = vsel %vm440_vm0, %v11916_v27, -inf }
 0xc0d   : > { %3629 = vmax.xlane.f32.xlu0 %v3628_v17  ;;  %v3591_v23 = vpop.f32.mrf.mxu0 }
 0xc0e   : > { %v11924_v56 = vmul.f32 0.35355338, %v3591_v23  ;;  %v3637_v50 = vsel %vm440_vm0, %v11920_v45, -inf }
 0xc0f   : > { %3638 = vmax.xlane.f32.xlu1 %v3637_v50  ;;  %v9615_v42 = vpop.f32.mrf.mxu0 }
 0xc10   : > { %v11928_v52 = vmul.f32 0.35355338, %v9615_v42  ;;  %v3634_v55 = vsel %vm440_vm0, %v11924_v56, -inf }
 0xc11   : > { %3635 = vmax.xlane.f32.xlu0 %v3634_v55  ;;  %v3601_v54 = vpop.f32.mrf.mxu0 }
 0xc12   : > { %v11932_v15 = vmul.f32 0.35355338, %v3601_v54  ;;  %v3643_v44 = vsel %vm440_vm0, %v11928_v52, -inf }
 0xc13   : > { %3644 = vmax.xlane.f32.xlu1 %v3643_v44  ;;  %v9618_v39 = vpop.f32.mrf.mxu0 }
 0xc14   : > { %v11936_v35 = vmul.f32 0.35355338, %v9618_v39  ;;  %v3640_v41 = vsel %vm440_vm0, %v11932_v15, -inf }
 0xc15   : > { %3641 = vmax.xlane.f32.xlu0 %v3640_v41  ;;  %v3611_v59 = vpop.f32.mrf.mxu0 }
 0xc16   : > { %v11940_v63 = vmul.f32 0.35355338, %v3611_v59  ;;  %v3649_v60 = vsel %vm440_vm0, %v11936_v35, -inf }
 0xc17   : > { %3650 = vmax.xlane.f32.xlu1 %v3649_v60 }
 0xc18   : > { %v3646_v9 = vsel %vm440_vm0, %v11940_v63, -inf }
 0xc19   : > { %3647 = vmax.xlane.f32.xlu0 %v3646_v9 }
 0xc1f   : > { %v9581_v10 = vpop.f32.mrf.mxu1 }
 0xc20   : > { %v3434_v34 = vadd.f32 %v9581_v10, %v7934_v32 }
 0xc21   : > { %v3428_v11 = vpop.f32.mrf.mxu1 }
 0xc22   : > { %v3429_v3 = vadd.f32 %v7934_v32, %v3428_v11 }
 0xc23   : > { %v9584_v12 = vpop.f32.mrf.mxu1 }
 0xc24   : > { %v3444_v5 = vadd.f32 %v9584_v12, %v7934_v32 }
 0xc25   : > { %v3438_v14 = vpop.f32.mrf.mxu1 }
 0xc26   : > { %v3439_v26 = vadd.f32 %v7934_v32, %v3438_v14 }
 0xc27   : > { %v9587_v18 = vpop.f32.mrf.mxu1 }
 0xc28   : > { %v3454_v1 = vadd.f32 %v9587_v18, %v7934_v32 }
 0xc29   : > { %v3448_v0 = vpop.f32.mrf.mxu1 }
 0xc2a   : > { %v3449_v7 = vadd.f32 %v7934_v32, %v3448_v0 }
 0xc2b   : > { %v9590_v57 = vpop.f32.mrf.mxu1 }
 0xc2c   : > { %v3464_v58 = vadd.f32 %v9590_v57, %v7934_v32 }
 0xc2d   : > { %v3458_v2 = vpop.f32.mrf.mxu1 }
 0xc2e   : > { %v3459_v24 = vadd.f32 %v7934_v32, %v3458_v2  ;;  %9619 = vmatprep.subr.mxu1 %v3464_v58 }
 0xc2f   : > { %9620 = vmatpush3.msra.mxu1 %v3464_v58 }
 0xc30   : > { %9621 = vmatprep.subr.mxu1 %v3459_v24 }
 0xc31   : > { %9622 = vmatpush3.msra.mxu1 %v3459_v24 }
 0xc32   : > { %9623 = vmatprep.subr.mxu1 %v3454_v1 }
 0xc33   : > { %9624 = vmatpush3.msra.mxu1 %v3454_v1 }
 0xc34   : > { %9625 = vmatprep.subr.mxu1 %v3449_v7 }
 0xc35   : > { %9626 = vmatpush3.msra.mxu1 %v3449_v7 }
 0xc36   : > { %9627 = vmatprep.subr.mxu1 %v3444_v5 }
 0xc37   : > { %9628 = vmatpush3.msra.mxu1 %v3444_v5 }
 0xc38   : > { %9629 = vmatprep.subr.mxu1 %v3439_v26 }
 0xc39   : > { %9630 = vmatpush3.msra.mxu1 %v3439_v26 }
 0xc3a   : > { %9631 = vmatprep.subr.mxu1 %v3434_v34 }
 0xc3b   : > { %9632 = vmatpush3.msra.mxu1 %v3434_v34 }
 0xc3c   : > { %9633 = vmatprep.subr.mxu1 %v3429_v3 }
 0xc3d   : > { %9634 = vmatpush3.msra.mxu1 %v3429_v3  ;;  %v7967_v3 = vld [vmem:[%s13187_s8 + $0x18] sm:$0xff] }
 0xc3e   : > { %9647 = vmatprep.subr.mxu1 %v7967_v3 }
 0xc94   : > { %v3633_v33 = vpop.xlane.xlu1 %3632 }
 0xc95   : > { %v3653_v36 = vsub.f32 %v11914_v25, %v3633_v33 }
 0xc96   : > { %v3630_v38 = vpop.xlane.xlu0 %3629 }
 0xc97   : > { %v3662_v46 = vmul.f32 1.442695, %v3653_v36  ;;  %v3652_v17 = vsub.f32 %v11916_v27, %v3630_v38 }
 0xc98   : > { %v3639_v23 = vpop.xlane.xlu1 %3638 }
 0xc99   : > { %10430 = vpow2.f32 %v3662_v46  ;;  %v3660_v50 = vmul.f32 1.442695, %v3652_v17  ;;  %v3655_v42 = vsub.f32 %v11920_v45, %v3639_v23 }
 0xc9a   : > { %v3636_v55 = vpop.xlane.xlu0 %3635 }
 0xc9b   : > { %10432 = vpow2.f32 %v3660_v50  ;;  %v3666_v54 = vmul.f32 1.442695, %v3655_v42  ;;  %v3654_v44 = vsub.f32 %v11924_v56, %v3636_v55 }
 0xc9c   : > { %v3645_v39 = vpop.xlane.xlu1 %3644 }
 0xc9d   : > { %10434 = vpow2.f32 %v3666_v54  ;;  %v3664_v41 = vmul.f32 1.442695, %v3654_v44  ;;  %v3657_v59 = vsub.f32 %v11928_v52, %v3645_v39 }
 0xc9e   : > { %v3642_v25 = vpop.xlane.xlu0 %3641 }
 0xc9f   : > { %10436 = vpow2.f32 %v3664_v41  ;;  %v3670_v60 = vmul.f32 1.442695, %v3657_v59  ;;  %v3656_v27 = vsub.f32 %v11932_v15, %v3642_v25 }
 0xca0   : > { %v3651_v9 = vpop.xlane.xlu1 %3650 }
 0xca1   : > { %10438 = vpow2.f32 %v3670_v60  ;;  %v3668_v10 = vmul.f32 1.442695, %v3656_v27  ;;  %v3659_v45 = vsub.f32 %v11936_v35, %v3651_v9 }
 0xca2   : > { %v3648_v11 = vpop.xlane.xlu0 %3647 }
 0xca3   : > { %10440 = vpow2.f32 %v3668_v10  ;;  %v3674_v12 = vmul.f32 1.442695, %v3659_v45  ;;  %v3658_v56 = vsub.f32 %v11940_v63, %v3648_v11 }
 0xca5   : > { %10442 = vpow2.f32 %v3674_v12  ;;  %v3672_v14 = vmul.f32 1.442695, %v3658_v56 }
 0xca6   : > { %v10431_v18 = vpop.eup %10430 }
 0xca7   : > { %10444 = vpow2.f32 %v3672_v14  ;;  %v3679_v52 = vsel %vm440_vm0, %v10431_v18, 0.0 }
 0xca8   : > { %v10433_v32 = vpop.eup %10432  ;;  %3680 = vadd.xlane.f32.xlu1 %v3679_v52  ;;  %v7983_v52 = vld [vmem:[%s13181_s2 + $0x138] sm:$0xff] }
 0xca9   : > { %v3676_v15 = vsel %vm440_vm0, %v10433_v32, 0.0  ;;  %9661 = vmatprep.subr.mxu0 %v7983_v52 }
 0xcaa   : > { %v10435_v0 = vpop.eup %10434  ;;  %3677 = vadd.xlane.f32.xlu0 %v3676_v15  ;;  %9662 = vmatpush3.msra.mxu0 %v7983_v52  ;;  %v7981_v15 = vld [vmem:[%s13181_s2 + $0x128] sm:$0xff] }
 0xcab   : > { %v3685_v57 = vsel %vm440_vm0, %v10435_v0, 0.0 }
 0xcac   : > { %v10437_v35 = vpop.eup %10436  ;;  %3686 = vadd.xlane.f32.xlu1 %v3685_v57  ;;  %v7979_v57 = vld [vmem:[%s13181_s2 + $0x118] sm:$0xff] }
 0xcad   : > { %v3682_v58 = vsel %vm440_vm0, %v10437_v35, 0.0 }
 0xcae   : > { %v10439_v2 = vpop.eup %10438  ;;  %3683 = vadd.xlane.f32.xlu0 %v3682_v58  ;;  %v7977_v58 = vld [vmem:[%s13181_s2 + $0x108] sm:$0xff] }
 0xcaf   : > { %v3691_v63 = vsel %vm440_vm0, %v10439_v2, 0.0 }
 0xcb0   : > { %v10441_v1 = vpop.eup %10440  ;;  %3692 = vadd.xlane.f32.xlu1 %v3691_v63  ;;  %v12004_v63 = vld [vmem:[%s10903_s21 + $0x8] sm:$0xff] }
 0xcb1   : > { %v3688_v24 = vsel %vm440_vm0, %v10441_v1, 0.0 }
 0xcb2   : > { %v10443_v7 = vpop.eup %10442  ;;  %3689 = vadd.xlane.f32.xlu0 %v3688_v24  ;;  %v12014_v24 = vld [vmem:[%s10903_s21 + $0x18] sm:$0xff] }
 0xcb3   : > { %v3697_v5 = vsel %vm440_vm0, %v10443_v7, 0.0 }
 0xcb4   : > { %v10445_v26 = vpop.eup %10444  ;;  %3698 = vadd.xlane.f32.xlu1 %v3697_v5  ;;  %v12024_v5 = vld [vmem:[%s10903_s21 + $0x28] sm:$0xff] }
 0xcb5   : > { %v3694_v34 = vsel %vm440_vm0, %v10445_v26, 0.0 }
 0xcb6   : > { %3695 = vadd.xlane.f32.xlu0 %v3694_v34  ;;  %v12034_v34 = vld [vmem:[%s10903_s21 + $0x38] sm:$0xff] }
 0xd31   : > { %v3681_v33 = vpop.xlane.xlu1 %3680 }
 0xd32   : > { %10446 = vrcp.f32 %v3681_v33 }
 0xd33   : > { %v3678_v36 = vpop.xlane.xlu0 %3677 }
 0xd34   : > { %10448 = vrcp.f32 %v3678_v36 }
 0xd35   : > { %v3687_v38 = vpop.xlane.xlu1 %3686 }
 0xd36   : > { %10450 = vrcp.f32 %v3687_v38  ;;  %v8000_v38 = vld [vmem:[%s13183_s4 + $0x130] sm:$0xff] }
 0xd37   : > { %v3684_v46 = vpop.xlane.xlu0 %3683 }
 0xd38   : > { %10452 = vrcp.f32 %v3684_v46 }
 0xd39   : > { %v3693_v17 = vpop.xlane.xlu1 %3692 }
 0xd3a   : > { %10454 = vrcp.f32 %v3693_v17  ;;  %v7999_v17 = vld [vmem:[%s13183_s4 + $0x128] sm:$0xff] }
 0xd3b   : > { %v3690_v23 = vpop.xlane.xlu0 %3689 }
 0xd3c   : > { %10456 = vrcp.f32 %v3690_v23 }
 0xd3d   : > { %v3699_v50 = vpop.xlane.xlu1 %3698 }
 0xd3e   : > { %10458 = vrcp.f32 %v3699_v50  ;;  %v7998_v50 = vld [vmem:[%s13183_s4 + $0x120] sm:$0xff] }
 0xd3f   : > { %v3696_v42 = vpop.xlane.xlu0 %3695  ;;  %v10447_v55 = vpop.eup %10446 }
 0xd40   : > { %10460 = vrcp.f32 %v3696_v42  ;;  %v3703_v39 = vmul.f32 %v10447_v55, %v10431_v18  ;;  %v8001_v18 = vld [vmem:[%s13183_s4 + $0x138] sm:$0xff] }
 0xd41   : > { %v10449_v54 = vpop.eup %10448  ;;  %v7997_v55 = vld [vmem:[%s13183_s4 + $0x118] sm:$0xff] }
 0xd42   : > { %v3701_v44 = vmul.f32 %v10449_v54, %v10433_v32  ;;  %v7982_v32 = vld [vmem:[%s13181_s2 + $0x130] sm:$0xff] }
 0xd43   : > { %v10451_v41 = vpop.eup %10450  ;;  %9663 = vmatprep.subr.mxu0 %v7982_v32 }
 0xd44   : > { %9635 = vmatprep.mubr.msk.f32.mxu1 %vm440_vm0, %v3701_v44  ;;  %v3707_v60 = vmul.f32 %v10451_v41, %v10435_v0  ;;  %9664 = vmatpush3.msra.mxu0 %v7982_v32  ;;  %v7980_v0 = vld [vmem:[%s13181_s2 + $0x120] sm:$0xff]  ;;  %v7996_v44 = vld [vmem:[%s13183_s4 + $0x110] sm:$0xff]  ;;  %v7995_v41 = vld [vmem:[%s13183_s4 + $0x108] sm:$0xff] }
 0xd45   : > { %v10453_v59 = vpop.eup %10452  ;;  %9636 = vmatmul.mubr.msk.f32.vlgmr.msra.gmra.mxu1 %vm440_vm0, %v3703_v39  ;;  %9665 = vmatprep.subr.mxu0 %v7981_v15 }
 0xd46   : > { %v3705_v25 = vmul.f32 %v10453_v59, %v10437_v35  ;;  %9648 = vmatpush3.msra.mxu1 %v7967_v3  ;;  %9666 = vmatpush3.msra.mxu0 %v7981_v15  ;;  %v7978_v35 = vld [vmem:[%s13181_s2 + $0x110] sm:$0xff]  ;;  %v12039_v3 = vld [vmem:[%s10864_s20] sm:$0xff] }
 0xd47   : > { %v10455_v27 = vpop.eup %10454  ;;  %9689 = vmatprep.subr.mxu1 %v8001_v18  ;;  %9667 = vmatprep.subr.mxu0 %v7980_v0 }
 0xd48   : > { %9638 = vmatprep.mubr.msk.f32.mxu1 %vm440_vm0, %v3705_v25  ;;  %v3711_v45 = vmul.f32 %v10455_v27, %v10439_v2  ;;  %9668 = vmatpush3.msra.mxu0 %v7980_v0  ;;  %v7976_v2 = vld [vmem:[%s13181_s2 + $0x100] sm:$0xff] }
 0xd49   : > { %v10457_v9 = vpop.eup %10456  ;;  %9639 = vmatmul.mubr.msk.f32.gmra.mxu1 %vm440_vm0, %v3707_v60  ;;  %9669 = vmatprep.subr.mxu0 %v7979_v57  ;;  %v7994_v25 = vld [vmem:[%s13183_s4 + $0x100] sm:$0xff] }
 0xd4a   : > { %v3709_v10 = vmul.f32 %v10457_v9, %v10441_v1  ;;  %9670 = vmatpush3.msra.mxu0 %v7979_v57  ;;  %v12009_v1 = vld [vmem:[%s10903_s21 + $0x10] sm:$0xff]  ;;  %v12091_v27 = vld [vmem:[%s13182_s3 + $0x4] ss:$0 sm:$0xff] }
 0xd4b   : > { %v10459_v11 = vpop.eup %10458  ;;  %9671 = vmatprep.subr.mxu0 %v7978_v35 }
 0xd4c   : > { %9641 = vmatprep.mubr.msk.f32.mxu1 %vm440_vm0, %v3709_v10  ;;  %v3715_v14 = vmul.f32 %v10459_v11, %v10443_v7  ;;  %9672 = vmatpush3.msra.mxu0 %v7978_v35  ;;  %v12019_v7 = vld [vmem:[%s10903_s21 + $0x20] sm:$0xff] }
 0xd4d   : > { %v10461_v12 = vpop.eup %10460  ;;  %9642 = vmatmul.mubr.msk.f32.gmra.mxu1 %vm440_vm0, %v3711_v45  ;;  %9673 = vmatprep.subr.mxu0 %v7977_v58 }
 0xd4e   : > { %v3713_v56 = vmul.f32 %v10461_v12, %v10445_v26  ;;  %9674 = vmatpush3.msra.mxu0 %v7977_v58  ;;  %v12029_v26 = vld [vmem:[%s10903_s21 + $0x30] sm:$0xff] }
 0xd4f   : > { %9675 = vmatprep.subr.mxu0 %v7976_v2 }
 0xd50   : > { %9644 = vmatprep.mubr.msk.f32.mxu1 %vm440_vm0, %v3713_v56  ;;  %9676 = vmatpush3.msra.mxu0 %v7976_v2 }
 0xd51   : > { %9645 = vmatmul.mubr.msk.f32.gmra.mxu1 %vm440_vm0, %v3715_v14  ;;  %9678 = vmatmul.mubr.msk.f32.vlgmr.msra.gmra.mxu0 %vm440_vm0, %v12004_v63 }
 0xd52   : > { %9680 = vmatprep.mubr.msk.f32.mxu0 %vm440_vm0, %v12009_v1 }
 0xd55   : > { %9681 = vmatmul.mubr.msk.f32.gmra.mxu0 %vm440_vm0, %v12014_v24 }
 0xd56   : > { %9683 = vmatprep.mubr.msk.f32.mxu0 %vm440_vm0, %v12019_v7 }
 0xd59   : > { %9684 = vmatmul.mubr.msk.f32.gmra.mxu0 %vm440_vm0, %v12024_v5 }
 0xd5a   : > { %9686 = vmatprep.mubr.msk.f32.mxu0 %vm440_vm0, %v12029_v26 }
 0xd5d   : > { %9687 = vmatmul.mubr.msk.f32.gmra.mxu0 %vm440_vm0, %v12034_v34 }
 0xd5e   : > { %9733 = vmatprep.mubr.msk.f32.mxu0 %vm440_vm0, %v12039_v3 }
 0xe05   : > { %v9637_v33 = vpop.f32.mrf.mxu1 }
 0xe07   : > { %v3806_v36 = vpop.f32.mrf.mxu1 }
 0xe08   : > { %9649 = vmatprep.mubr.msk.f32.mxu1 %vm834_vm1, %v3806_v36 }
 0xe09   : > { %v9640_v46 = vpop.f32.mrf.mxu1  ;;  %9650 = vmatmul.mubr.msk.f32.vlgmr.msra.gmra.mxu1 %vm834_vm1, %v9637_v33 }
 0xe0a   : > { %9690 = vmatpush3.msra.mxu1 %v8001_v18 }
 0xe0b   : > { %9691 = vmatprep.subr.mxu1 %v8000_v38  ;;  %v3816_v23 = vpop.f32.mrf.mxu1 }
 0xe0c   : > { %9692 = vmatpush3.msra.mxu1 %v8000_v38  ;;  %9652 = vmatprep.mubr.msk.f32.mxu1 %vm834_vm1, %v3816_v23 }
 0xe0d   : > { %9693 = vmatprep.subr.mxu1 %v7999_v17  ;;  %v9643_v42 = vpop.f32.mrf.mxu1  ;;  %9653 = vmatmul.mubr.msk.f32.gmra.mxu1 %vm834_vm1, %v9640_v46  ;;  %v8003_v46 = vld [vmem:[%s13184_s5 + $0x4] ss:$0 sm:$0xff] }
 0xe0e   : > { %9694 = vmatpush3.msra.mxu1 %v7999_v17 }
 0xe0f   : > { %9695 = vmatprep.subr.mxu1 %v7998_v50  ;;  %v3826_v54 = vpop.f32.mrf.mxu1 }
 0xe10   : > { %9696 = vmatpush3.msra.mxu1 %v7998_v50  ;;  %9655 = vmatprep.mubr.msk.f32.mxu1 %vm834_vm1, %v3826_v54 }
 0xe11   : > { %9697 = vmatprep.subr.mxu1 %v7997_v55  ;;  %v9646_v39 = vpop.f32.mrf.mxu1  ;;  %9656 = vmatmul.mubr.msk.f32.gmra.mxu1 %vm834_vm1, %v9643_v42  ;;  %v9679_v60 = vpop.f32.mrf.mxu0 }
 0xe12   : > { %9698 = vmatpush3.msra.mxu1 %v7997_v55  ;;  %v4073_v9 = vadd.f32 %v9679_v60, %v12091_v27 }
 0xe13   : > { %9699 = vmatprep.subr.mxu1 %v7996_v44  ;;  %v3836_v59 = vpop.f32.mrf.mxu1  ;;  %v4067_v10 = vpop.f32.mrf.mxu0 }
 0xe14   : > { %9700 = vmatpush3.msra.mxu1 %v7996_v44  ;;  %9658 = vmatprep.mubr.msk.f32.mxu1 %vm834_vm1, %v3836_v59  ;;  %v4068_v45 = vadd.f32 %v12091_v27, %v4067_v10 }
 0xe15   : > { %9701 = vmatprep.subr.mxu1 %v7995_v41  ;;  %9659 = vmatmul.mubr.msk.f32.gmra.mxu1 %vm834_vm1, %v9646_v39  ;;  %v9682_v54 = vpop.f32.mrf.mxu0 }
 0xe16   : > { %9702 = vmatpush3.msra.mxu1 %v7995_v41  ;;  %9705 = vmatprep.mubr.msk.f32.mxu1 %vm440_vm0, %v12039_v3 }
 0xe17   : > { %9703 = vmatprep.subr.mxu1 %v7994_v25  ;;  %v4077_v39 = vpop.f32.mrf.mxu0 }
 0xe18   : > { %9704 = vmatpush3.msra.mxu1 %v7994_v25  ;;  %v4078_v10 = vadd.f32 %v12091_v27, %v4077_v39 }
 0xe19   : > { %9706 = vmatmul.mubr.msk.f32.vlgmr.msra.gmra.mxu1 %vm440_vm0, %v11880_v4  ;;  %v9685_v59 = vpop.f32.mrf.mxu0 }
 0xe1a   : > { %9708 = vmatprep.mubr.msk.f32.mxu1 %vm440_vm0, %v11885_v61 }
 0xe1b   : > { %v4087_v60 = vpop.f32.mrf.mxu0 }
 0xe1d   : > { %9709 = vmatmul.mubr.msk.f32.gmra.mxu1 %vm440_vm0, %v11890_v62 }
 0xe1e   : > { %9711 = vmatprep.mubr.msk.f32.mxu1 %vm440_vm0, %v11895_v19 }
 0xe21   : > { %9712 = vmatmul.mubr.msk.f32.gmra.mxu1 %vm440_vm0, %v11900_v20 }
 0xe22   : > { %9714 = vmatprep.mubr.msk.f32.mxu1 %vm440_vm0, %v11905_v31 }
 0xe25   : > { %9715 = vmatmul.mubr.msk.f32.gmra.mxu1 %vm440_vm0, %v11910_v6 }
 0xe26   : > { %9761 = vmatprep.mubr.msk.f32.mxu1 %vm834_vm1, %v4068_v45  ;;  %v9688_v45 = vpop.f32.mrf.mxu0 }
 0xec9   : > { %v9651_v11 = vpop.f32.mrf.mxu1 }
 0xeca   : > { %v12097_v12 = vadd.f32 %v9651_v11, %v11799_v28  ;;  %v4088_v11 = vadd.f32 %v12091_v27, %v4087_v60 }
 0xecb   : > { %v12099_v56 = vpop.f32.mrf.mxu1 }
 0xecd   : > { %v9654_v14 = vpop.f32.mrf.mxu1 }
 0xece   : > { %v12102_v18 = vadd.f32 %v9654_v14, %v11805_v30  ;;  %v4083_v14 = vadd.f32 %v9682_v54, %v12091_v27 }
 0xecf   : > { %v12104_v52 = vpop.f32.mrf.mxu1 }
 0xed1   : > { %v9657_v32 = vpop.f32.mrf.mxu1 }
 0xed2   : > { %v12107_v15 = vadd.f32 %v9657_v32, %v11811_v29  ;;  %v4097_v32 = vpop.f32.mrf.mxu0 }
 0xed3   : > { %v12109_v0 = vpop.f32.mrf.mxu1 }
 0xed5   : > { %v9660_v57 = vpop.f32.mrf.mxu1 }
 0xed6   : > { %v12112_v35 = vadd.f32 %v9660_v57, %v11817_v53  ;;  %v4098_v57 = vadd.f32 %v12091_v27, %v4097_v32 }
 0xed7   : > { %v12114_v28 = vpop.f32.mrf.mxu1 }
 0xed9   : > { %v9707_v58 = vpop.f32.mrf.mxu1 }
 0xeda   : > { %v4195_v41 = vadd.f32 %v9707_v58, %v8003_v46  ;;  %v4093_v58 = vadd.f32 %v9685_v59, %v12091_v27 }
 0xedb   : > { %v4189_v2 = vpop.f32.mrf.mxu1 }
 0xedc   : > { %v4190_v25 = vadd.f32 %v8003_v46, %v4189_v2  ;;  %v12149_v2 = vld [vmem:[%s10903_s21] sm:$0xff] }
 0xedd   : > { %v9710_v33 = vpop.f32.mrf.mxu1 }
 0xede   : > { %v4205_v55 = vadd.f32 %v9710_v33, %v8003_v46  ;;  %v8019_v33 = vld [vmem:[%s13185_s6 + $0x138] sm:$0xff] }
 0xedf   : > { %v4199_v36 = vpop.f32.mrf.mxu1  ;;  %9717 = vmatprep.subr.mxu0 %v8019_v33 }
 0xee0   : > { %v4200_v44 = vadd.f32 %v8003_v46, %v4199_v36  ;;  %v8018_v36 = vld [vmem:[%s13185_s6 + $0x130] sm:$0xff]  ;;  %9718 = vmatpush3.msra.mxu0 %v8019_v33 }
 0xee1   : > { %v9713_v30 = vpop.f32.mrf.mxu1  ;;  %9719 = vmatprep.subr.mxu0 %v8018_v36 }
 0xee2   : > { %v4215_v53 = vadd.f32 %v9713_v30, %v8003_v46  ;;  %9720 = vmatpush3.msra.mxu0 %v8018_v36  ;;  %v8016_v30 = vld [vmem:[%s13185_s6 + $0x120] sm:$0xff] }
 0xee3   : > { %v4209_v38 = vpop.f32.mrf.mxu1 }
 0xee4   : > { %v4210_v42 = vadd.f32 %v8003_v46, %v4209_v38  ;;  %v8015_v38 = vld [vmem:[%s13185_s6 + $0x118] sm:$0xff] }
 0xee5   : > { %v9716_v29 = vpop.f32.mrf.mxu1 }
 0xee6   : > { %v4225_v17 = vadd.f32 %v9716_v29, %v8003_v46  ;;  %v8013_v29 = vld [vmem:[%s13185_s6 + $0x108] sm:$0xff] }
 0xee7   : > { %v4219_v23 = vpop.f32.mrf.mxu1 }
 0xee8   : > { %v4220_v50 = vadd.f32 %v8003_v46, %v4219_v23  ;;  %9745 = vmatprep.subr.msk.mxu1 %vm834_vm1, %v4225_v17  ;;  %v8014_v46 = vld [vmem:[%s13185_s6 + $0x110] sm:$0xff] }
 0xee9   : > { %9746 = vmatpush3.xpose.msk.msra.mxu1 %vm834_vm1, %v4225_v17  ;;  %v8012_v17 = vld [vmem:[%s13185_s6 + $0x100] sm:$0xff] }
 0xeea   : > { %9747 = vmatprep.subr.msk.mxu1 %vm834_vm1, %v4220_v50 }
 0xeed   : > { %9748 = vmatpush3.xpose.msk.msra.mxu1 %vm834_vm1, %v4220_v50 }
 0xeee   : > { %9749 = vmatprep.subr.msk.mxu1 %vm834_vm1, %v4215_v53 }
 0xef1   : > { %9750 = vmatpush3.xpose.msk.msra.mxu1 %vm834_vm1, %v4215_v53 }
 0xef2   : > { %9751 = vmatprep.subr.msk.mxu1 %vm834_vm1, %v4210_v42 }
 0xef5   : > { %9752 = vmatpush3.xpose.msk.msra.mxu1 %vm834_vm1, %v4210_v42 }
 0xef6   : > { %9753 = vmatprep.subr.msk.mxu1 %vm834_vm1, %v4205_v55 }
 0xef9   : > { %9754 = vmatpush3.xpose.msk.msra.mxu1 %vm834_vm1, %v4205_v55 }
 0xefa   : > { %9755 = vmatprep.subr.msk.mxu1 %vm834_vm1, %v4200_v44 }
 0xefd   : > { %9756 = vmatpush3.xpose.msk.msra.mxu1 %vm834_vm1, %v4200_v44 }
 0xefe   : > { %9757 = vmatprep.subr.msk.mxu1 %vm834_vm1, %v4195_v41 }
 0xf01   : > { %9758 = vmatpush3.xpose.msk.msra.mxu1 %vm834_vm1, %v4195_v41 }
 0xf02   : > { %9759 = vmatprep.subr.msk.mxu1 %vm834_vm1, %v4190_v25 }
 0xf05   : > { %9760 = vmatpush3.xpose.msk.msra.mxu1 %vm834_vm1, %v4190_v25 }
 0xf08   : > { %9762 = vmatmul.mubr.msk.f32.vlgmr.msra.gmra.mxu1 %vm834_vm1, %v4073_v9  ;;  %v4103_v9 = vadd.f32 %v9688_v45, %v12091_v27  ;;  %v8017_v27 = vld [vmem:[%s13185_s6 + $0x128] sm:$0xff] }
 0xf09   : > { %9764 = vmatprep.mubr.msk.f32.mxu1 %vm834_vm1, %v4078_v10  ;;  %9721 = vmatprep.subr.mxu0 %v8017_v27 }
 0xf0a   : > { %9722 = vmatpush3.msra.mxu0 %v8017_v27  ;;  %v8021_v27 = vld [vmem:[%s13186_s7 + $0x4] ss:$0 sm:$0xff] }
 0xf0b   : > { %9723 = vmatprep.subr.mxu0 %v8016_v30 }
 0xf0c   : > { %9765 = vmatmul.mubr.msk.f32.gmra.mxu1 %vm834_vm1, %v4083_v14  ;;  %9724 = vmatpush3.msra.mxu0 %v8016_v30 }
 0xf0d   : > { %9767 = vmatprep.mubr.msk.f32.mxu1 %vm834_vm1, %v4088_v11  ;;  %9725 = vmatprep.subr.mxu0 %v8015_v38 }
 0xf0e   : > { %9726 = vmatpush3.msra.mxu0 %v8015_v38 }
 0xf0f   : > { %9727 = vmatprep.subr.mxu0 %v8014_v46 }
 0xf10   : > { %9768 = vmatmul.mubr.msk.f32.gmra.mxu1 %vm834_vm1, %v4093_v58  ;;  %9728 = vmatpush3.msra.mxu0 %v8014_v46 }
 0xf11   : > { %9770 = vmatprep.mubr.msk.f32.mxu1 %vm834_vm1, %v4098_v57  ;;  %9729 = vmatprep.subr.mxu0 %v8013_v29 }
 0xf12   : > { %9730 = vmatpush3.msra.mxu0 %v8013_v29 }
 0xf13   : > { %9731 = vmatprep.subr.mxu0 %v8012_v17 }
 0xf14   : > { %9771 = vmatmul.mubr.msk.f32.gmra.mxu1 %vm834_vm1, %v4103_v9  ;;  %9732 = vmatpush3.msra.mxu0 %v8012_v17 }
 0xf15   : > { %9831 = vmatprep.mubr.msk.f32.mxu1 %vm440_vm0, %v12149_v2  ;;  %9734 = vmatmul.mubr.msk.f32.vlgmr.msra.gmra.mxu0 %vm440_vm0, %v11880_v4 }
 0xf16   : > { %9736 = vmatprep.mubr.msk.f32.mxu0 %vm440_vm0, %v11885_v61 }
 0xf19   : > { %9737 = vmatmul.mubr.msk.f32.gmra.mxu0 %vm440_vm0, %v11890_v62 }
 0xf1a   : > { %9739 = vmatprep.mubr.msk.f32.mxu0 %vm440_vm0, %v11895_v19 }
 0xf1d   : > { %9740 = vmatmul.mubr.msk.f32.gmra.mxu0 %vm440_vm0, %v11900_v20 }
 0xf1e   : > { %9742 = vmatprep.mubr.msk.f32.mxu0 %vm440_vm0, %v11905_v31 }
 0xf21   : > { %9743 = vmatmul.mubr.msk.f32.gmra.mxu0 %vm440_vm0, %v11910_v6 }
 0xfc8   : > { %v9763_v23 = vpop.f32.mrf.mxu1 }
 0xfc9   : > { %v12191_v4 = vmul.f32 0.35355338, %v9763_v23 }
 0xfca   : > { %v4464_v50 = vpop.f32.mrf.mxu1 }
 0xfcb   : > { %v12193_v61 = vmul.f32 0.35355338, %v4464_v50  ;;  %v4514_v62 = vsel %vm440_vm0, %v12191_v4, -inf }
 0xfcc   : > { %4515 = vmax.xlane.f32.xlu1 %v4514_v62  ;;  %v9766_v19 = vpop.f32.mrf.mxu1 }
 0xfcd   : > { %v12197_v53 = vmul.f32 0.35355338, %v9766_v19  ;;  %v4511_v20 = vsel %vm440_vm0, %v12193_v61, -inf }
 0xfce   : > { %4512 = vmax.xlane.f32.xlu0 %v4511_v20  ;;  %v4474_v31 = vpop.f32.mrf.mxu1 }
 0xfcf   : > { %v12201_v42 = vmul.f32 0.35355338, %v4474_v31  ;;  %v4520_v6 = vsel %vm440_vm0, %v12197_v53, -inf }
 0xfd0   : > { %4521 = vmax.xlane.f32.xlu1 %v4520_v6  ;;  %v9769_v55 = vpop.f32.mrf.mxu1 }
 0xfd1   : > { %v12205_v54 = vmul.f32 0.35355338, %v9769_v55  ;;  %v4517_v44 = vsel %vm440_vm0, %v12201_v42, -inf }
 0xfd2   : > { %4518 = vmax.xlane.f32.xlu0 %v4517_v44  ;;  %v4484_v39 = vpop.f32.mrf.mxu1 }
 0xfd3   : > { %v12209_v41 = vmul.f32 0.35355338, %v4484_v39  ;;  %v4526_v59 = vsel %vm440_vm0, %v12205_v54, -inf }
 0xfd4   : > { %4527 = vmax.xlane.f32.xlu1 %v4526_v59  ;;  %v9772_v25 = vpop.f32.mrf.mxu1 }
 0xfd5   : > { %v12213_v60 = vmul.f32 0.35355338, %v9772_v25  ;;  %v4523_v10 = vsel %vm440_vm0, %v12209_v41, -inf  ;;  %v9735_v57 = vpop.f32.mrf.mxu0 }
 0xfd6   : > { %4524 = vmax.xlane.f32.xlu0 %v4523_v10  ;;  %v4494_v45 = vpop.f32.mrf.mxu1  ;;  %v4317_v20 = vadd.f32 %v9735_v57, %v8021_v27 }
 0xfd7   : > { %v12217_v11 = vmul.f32 0.35355338, %v4494_v45  ;;  %v4532_v14 = vsel %vm440_vm0, %v12213_v60, -inf  ;;  %v4311_v58 = vpop.f32.mrf.mxu0 }
 0xfd8   : > { %4533 = vmax.xlane.f32.xlu1 %v4532_v14  ;;  %v4312_v31 = vadd.f32 %v8021_v27, %v4311_v58 }
 0xfd9   : > { %v4529_v32 = vsel %vm440_vm0, %v12217_v11, -inf  ;;  %v9738_v9 = vpop.f32.mrf.mxu0 }
 0xfda   : > { %4530 = vmax.xlane.f32.xlu0 %v4529_v32  ;;  %v4327_v62 = vadd.f32 %v9738_v9, %v8021_v27 }
 0xfdb   : > { %v4321_v33 = vpop.f32.mrf.mxu0 }
 0xfdc   : > { %v4322_v19 = vadd.f32 %v8021_v27, %v4321_v33 }
 0xfdd   : > { %v9741_v36 = vpop.f32.mrf.mxu0 }
 0xfde   : > { %v4337_v17 = vadd.f32 %v9741_v36, %v8021_v27 }
 0xfdf   : > { %v4331_v30 = vpop.f32.mrf.mxu0 }
 0xfe0   : > { %v4332_v50 = vadd.f32 %v8021_v27, %v4331_v30 }
 0xfe1   : > { %v9744_v38 = vpop.f32.mrf.mxu0 }
 0xfe2   : > { %v4347_v46 = vadd.f32 %v9744_v38, %v8021_v27 }
 0xfe3   : > { %v4341_v29 = vpop.f32.mrf.mxu0 }
 0xfe4   : > { %v4342_v23 = vadd.f32 %v8021_v27, %v4341_v29  ;;  %9773 = vmatprep.subr.mxu0 %v4347_v46 }
 0xfe5   : > { %9774 = vmatpush3.msra.mxu0 %v4347_v46 }
 0xfe6   : > { %9775 = vmatprep.subr.mxu0 %v4342_v23 }
 0xfe7   : > { %9776 = vmatpush3.msra.mxu0 %v4342_v23 }
 0xfe8   : > { %9777 = vmatprep.subr.mxu0 %v4337_v17 }
 0xfe9   : > { %9778 = vmatpush3.msra.mxu0 %v4337_v17 }
 0xfea   : > { %9779 = vmatprep.subr.mxu0 %v4332_v50 }
 0xfeb   : > { %9780 = vmatpush3.msra.mxu0 %v4332_v50 }
 0xfec   : > { %9781 = vmatprep.subr.mxu0 %v4327_v62 }
 0xfed   : > { %9782 = vmatpush3.msra.mxu0 %v4327_v62 }
 0xfee   : > { %9783 = vmatprep.subr.mxu0 %v4322_v19 }
 0xfef   : > { %9784 = vmatpush3.msra.mxu0 %v4322_v19 }
 0xff0   : > { %9785 = vmatprep.subr.mxu0 %v4317_v20 }
 0xff1   : > { %9786 = vmatpush3.msra.mxu0 %v4317_v20 }
 0xff2   : > { %9787 = vmatprep.subr.mxu0 %v4312_v31 }
 0xff3   : > { %9788 = vmatpush3.msra.mxu0 %v4312_v31 }
0x1055   : > { %v4516_v6 = vpop.xlane.xlu1 %4515 }
0x1056   : > { %v4536_v55 = vsub.f32 %v12191_v4, %v4516_v6 }
0x1057   : > { %v4513_v44 = vpop.xlane.xlu0 %4512 }
0x1058   : > { %v4545_v39 = vmul.f32 1.442695, %v4536_v55  ;;  %v4535_v59 = vsub.f32 %v12193_v61, %v4513_v44 }
0x1059   : > { %v4522_v25 = vpop.xlane.xlu1 %4521 }
0x105a   : > { %10462 = vpow2.f32 %v4545_v39  ;;  %v4543_v10 = vmul.f32 1.442695, %v4535_v59  ;;  %v4538_v45 = vsub.f32 %v12197_v53, %v4522_v25  ;;  %v8054_v25 = vld [vmem:[%s13187_s8 + $0x20] sm:$0xff] }
0x105b   : > { %v4519_v14 = vpop.xlane.xlu0 %4518  ;;  %9801 = vmatprep.subr.mxu0 %v8054_v25 }
0x105c   : > { %10464 = vpow2.f32 %v4543_v10  ;;  %v4549_v32 = vmul.f32 1.442695, %v4538_v45  ;;  %v4537_v57 = vsub.f32 %v12201_v42, %v4519_v14 }
0x105d   : > { %v4528_v58 = vpop.xlane.xlu1 %4527 }
0x105e   : > { %10466 = vpow2.f32 %v4549_v32  ;;  %v4547_v9 = vmul.f32 1.442695, %v4537_v57  ;;  %v4540_v33 = vsub.f32 %v12205_v54, %v4528_v58 }
0x105f   : > { %v4525_v4 = vpop.xlane.xlu0 %4524 }
0x1060   : > { %10468 = vpow2.f32 %v4547_v9  ;;  %v4553_v36 = vmul.f32 1.442695, %v4540_v33  ;;  %v4539_v61 = vsub.f32 %v12209_v41, %v4525_v4 }
0x1061   : > { %v4534_v27 = vpop.xlane.xlu1 %4533 }
0x1062   : > { %10470 = vpow2.f32 %v4553_v36  ;;  %v4551_v30 = vmul.f32 1.442695, %v4539_v61  ;;  %v4542_v53 = vsub.f32 %v12213_v60, %v4534_v27 }
0x1063   : > { %v4531_v38 = vpop.xlane.xlu0 %4530 }
0x1064   : > { %10472 = vpow2.f32 %v4551_v30  ;;  %v4557_v46 = vmul.f32 1.442695, %v4542_v53  ;;  %v4541_v42 = vsub.f32 %v12217_v11, %v4531_v38 }
0x1066   : > { %10474 = vpow2.f32 %v4557_v46  ;;  %v4555_v29 = vmul.f32 1.442695, %v4541_v42 }
0x1067   : > { %v10463_v17 = vpop.eup %10462 }
0x1068   : > { %10476 = vpow2.f32 %v4555_v29  ;;  %v4562_v54 = vsel %vm440_vm0, %v10463_v17, 0.0 }
0x1069   : > { %v10465_v23 = vpop.eup %10464  ;;  %4563 = vadd.xlane.f32.xlu1 %v4562_v54 }
0x106a   : > { %v4559_v41 = vsel %vm440_vm0, %v10465_v23, 0.0 }
0x106b   : > { %v10467_v50 = vpop.eup %10466  ;;  %4560 = vadd.xlane.f32.xlu0 %v4559_v41 }
0x106c   : > { %v4568_v62 = vsel %vm440_vm0, %v10467_v50, 0.0 }
0x106d   : > { %v10469_v60 = vpop.eup %10468  ;;  %4569 = vadd.xlane.f32.xlu1 %v4568_v62 }
0x106e   : > { %v4565_v19 = vsel %vm440_vm0, %v10469_v60, 0.0 }
0x106f   : > { %v10471_v20 = vpop.eup %10470  ;;  %4566 = vadd.xlane.f32.xlu0 %v4565_v19 }
0x1070   : > { %v4574_v11 = vsel %vm440_vm0, %v10471_v20, 0.0 }
0x1071   : > { %v10473_v31 = vpop.eup %10472  ;;  %4575 = vadd.xlane.f32.xlu1 %v4574_v11  ;;  %v8068_v11 = vld [vmem:[%s13181_s2 + $0x168] sm:$0xff] }
0x1072   : > { %v4571_v6 = vsel %vm440_vm0, %v10473_v31, 0.0 }
0x1073   : > { %v10475_v55 = vpop.eup %10474  ;;  %4572 = vadd.xlane.f32.xlu0 %v4571_v6  ;;  %v8066_v6 = vld [vmem:[%s13181_s2 + $0x158] sm:$0xff] }
0x1074   : > { %v4580_v44 = vsel %vm440_vm0, %v10475_v55, 0.0 }
0x1075   : > { %v10477_v39 = vpop.eup %10476  ;;  %4581 = vadd.xlane.f32.xlu1 %v4580_v44  ;;  %v8064_v44 = vld [vmem:[%s13181_s2 + $0x148] sm:$0xff] }
0x1076   : > { %v4577_v59 = vsel %vm440_vm0, %v10477_v39, 0.0 }
0x1077   : > { %4578 = vadd.xlane.f32.xlu0 %v4577_v59 }
0x10f2   : > { %v4564_v10 = vpop.xlane.xlu1 %4563 }
0x10f3   : > { %10478 = vrcp.f32 %v4564_v10 }
0x10f4   : > { %v4561_v45 = vpop.xlane.xlu0 %4560 }
0x10f5   : > { %10480 = vrcp.f32 %v4561_v45  ;;  %v8083_v45 = vld [vmem:[%s13183_s4 + $0x150] sm:$0xff] }
0x10f6   : > { %v4570_v14 = vpop.xlane.xlu1 %4569 }
0x10f7   : > { %10482 = vrcp.f32 %v4570_v14 }
0x10f8   : > { %v4567_v32 = vpop.xlane.xlu0 %4566 }
0x10f9   : > { %10484 = vrcp.f32 %v4567_v32  ;;  %v8082_v32 = vld [vmem:[%s13183_s4 + $0x148] sm:$0xff] }
0x10fa   : > { %v4576_v57 = vpop.xlane.xlu1 %4575 }
0x10fb   : > { %10486 = vrcp.f32 %v4576_v57 }
0x10fc   : > { %v4573_v58 = vpop.xlane.xlu0 %4572 }
0x10fd   : > { %10488 = vrcp.f32 %v4573_v58  ;;  %v8081_v58 = vld [vmem:[%s13183_s4 + $0x140] sm:$0xff] }
0x10fe   : > { %v4582_v9 = vpop.xlane.xlu1 %4581 }
0x10ff   : > { %10490 = vrcp.f32 %v4582_v9  ;;  %v12328_v9 = vld [vmem:[%s10864_s20 + $0x8] sm:$0xff] }
0x1100   : > { %v4579_v33 = vpop.xlane.xlu0 %4578  ;;  %v10479_v4 = vpop.eup %10478 }
0x1101   : > { %10492 = vrcp.f32 %v4579_v33  ;;  %v4586_v27 = vmul.f32 %v10479_v4, %v10463_v17  ;;  %v12333_v33 = vld [vmem:[%s10864_s20 + $0x10] sm:$0xff]  ;;  %v12338_v4 = vld [vmem:[%s10864_s20 + $0x18] sm:$0xff] }
0x1102   : > { %v10481_v36 = vpop.eup %10480 }
0x1103   : > { %v4584_v61 = vmul.f32 %v10481_v36, %v10465_v23  ;;  %v12343_v36 = vld [vmem:[%s10864_s20 + $0x20] sm:$0xff] }
0x1104   : > { %v10483_v30 = vpop.eup %10482 }
0x1105   : > { %9789 = vmatprep.mubr.msk.f32.mxu0 %vm440_vm0, %v4584_v61  ;;  %v4590_v46 = vmul.f32 %v10483_v30, %v10467_v50  ;;  %v8088_v50 = vld [vmem:[%s13183_s4 + $0x178] sm:$0xff]  ;;  %v12353_v61 = vld [vmem:[%s10864_s20 + $0x30] sm:$0xff] }
0x1106   : > { %v10485_v53 = vpop.eup %10484  ;;  %9790 = vmatmul.mubr.msk.f32.vlgmr.msra.gmra.mxu0 %vm440_vm0, %v4586_v27  ;;  %v12358_v27 = vld [vmem:[%s10864_s20 + $0x38] sm:$0xff] }
0x1107   : > { %v4588_v38 = vmul.f32 %v10485_v53, %v10469_v60  ;;  %9802 = vmatpush3.msra.mxu0 %v8054_v25  ;;  %v8070_v60 = vld [vmem:[%s13181_s2 + $0x178] sm:$0xff]  ;;  %v12365_v53 = vld [vmem:[%s13182_s3 + $0x5] ss:$0 sm:$0xff] }
0x1108   : > { %v10487_v42 = vpop.eup %10486  ;;  %9843 = vmatprep.subr.mxu0 %v8088_v50  ;;  %9815 = vmatprep.subr.mxu1 %v8070_v60  ;;  %v8084_v25 = vld [vmem:[%s13183_s4 + $0x158] sm:$0xff] }
0x1109   : > { %9792 = vmatprep.mubr.msk.f32.mxu0 %vm440_vm0, %v4588_v38  ;;  %v4594_v41 = vmul.f32 %v10487_v42, %v10471_v20  ;;  %v8069_v20 = vld [vmem:[%s13181_s2 + $0x170] sm:$0xff]  ;;  %9816 = vmatpush3.msra.mxu1 %v8070_v60 }
0x110a   : > { %v10489_v29 = vpop.eup %10488  ;;  %9793 = vmatmul.mubr.msk.f32.gmra.mxu0 %vm440_vm0, %v4590_v46  ;;  %9817 = vmatprep.subr.mxu1 %v8069_v20 }
0x110b   : > { %v4592_v54 = vmul.f32 %v10489_v29, %v10473_v31  ;;  %9818 = vmatpush3.msra.mxu1 %v8069_v20  ;;  %v8067_v31 = vld [vmem:[%s13181_s2 + $0x160] sm:$0xff]  ;;  %v2180_v29 = vadd.f32 %v11465_v8, %v11574_v37  ;;  %v2200_v8 = vadd.f32 %v11473_v51, %v11582_v43 }
0x110c   : > { %v10491_v62 = vpop.eup %10490  ;;  %9819 = vmatprep.subr.mxu1 %v8068_v11 }
0x110d   : > { %9795 = vmatprep.mubr.msk.f32.mxu0 %vm440_vm0, %v4592_v54  ;;  %v4598_v19 = vmul.f32 %v10491_v62, %v10475_v55  ;;  %9820 = vmatpush3.msra.mxu1 %v8068_v11  ;;  %v8065_v55 = vld [vmem:[%s13181_s2 + $0x150] sm:$0xff]  ;;  %v3093_v54 = vadd.f32 %v11801_v22, %v2180_v29  ;;  %v2190_v62 = vadd.f32 %v11469_v49, %v11578_v40 }
0x110e   : > { %v10493_v17 = vpop.eup %10492  ;;  %9796 = vmatmul.mubr.msk.f32.gmra.mxu0 %vm440_vm0, %v4594_v41  ;;  %9821 = vmatprep.subr.mxu1 %v8067_v31  ;;  %v3097_v40 = vadd.f32 %v11813_v47, %v2200_v8 }
0x110f   : > { %v4596_v23 = vmul.f32 %v10493_v17, %v10477_v39  ;;  %9822 = vmatpush3.msra.mxu1 %v8067_v31  ;;  %v8063_v39 = vld [vmem:[%s13181_s2 + $0x140] sm:$0xff]  ;;  %v3976_v17 = vadd.f32 %v12099_v56, %v3093_v54 }
0x1110   : > { %9823 = vmatprep.subr.mxu1 %v8066_v6  ;;  %v3980_v11 = vadd.f32 %v12109_v0, %v3097_v40 }
0x1111   : > { %9798 = vmatprep.mubr.msk.f32.mxu0 %vm440_vm0, %v4596_v23  ;;  %9824 = vmatpush3.msra.mxu1 %v8066_v6 }
0x1112   : > { %9799 = vmatmul.mubr.msk.f32.gmra.mxu0 %vm440_vm0, %v4598_v19  ;;  %9825 = vmatprep.subr.mxu1 %v8065_v55 }
0x1113   : > { %9826 = vmatpush3.msra.mxu1 %v8065_v55 }
0x1114   : > { %9827 = vmatprep.subr.mxu1 %v8064_v44 }
0x1115   : > { %9828 = vmatpush3.msra.mxu1 %v8064_v44 }
0x1116   : > { %9829 = vmatprep.subr.mxu1 %v8063_v39 }
0x1117   : > { %9830 = vmatpush3.msra.mxu1 %v8063_v39 }
0x1118   : > { %9832 = vmatmul.mubr.msk.f32.vlgmr.msra.gmra.mxu1 %vm440_vm0, %v12004_v63 }
0x1119   : > { %9834 = vmatprep.mubr.msk.f32.mxu1 %vm440_vm0, %v12009_v1 }
0x111c   : > { %9835 = vmatmul.mubr.msk.f32.gmra.mxu1 %vm440_vm0, %v12014_v24  ;;  %v8087_v24 = vld [vmem:[%s13183_s4 + $0x170] sm:$0xff] }
0x111d   : > { %9837 = vmatprep.mubr.msk.f32.mxu1 %vm440_vm0, %v12019_v7 }
0x1120   : > { %9838 = vmatmul.mubr.msk.f32.gmra.mxu1 %vm440_vm0, %v12024_v5  ;;  %v8086_v5 = vld [vmem:[%s13183_s4 + $0x168] sm:$0xff] }
0x1121   : > { %9840 = vmatprep.mubr.msk.f32.mxu1 %vm440_vm0, %v12029_v26 }
0x1124   : > { %9841 = vmatmul.mubr.msk.f32.gmra.mxu1 %vm440_vm0, %v12034_v34  ;;  %v8085_v34 = vld [vmem:[%s13183_s4 + $0x160] sm:$0xff] }
0x1125   : > { %9887 = vmatprep.mubr.msk.f32.mxu1 %vm440_vm0, %v12039_v3 }
0x11c6   : > { %v9791_v63 = vpop.f32.mrf.mxu0 }
0x11c8   : > { %v4689_v1 = vpop.f32.mrf.mxu0 }
0x11c9   : > { %9803 = vmatprep.mubr.msk.f32.mxu0 %vm834_vm1, %v4689_v1 }
0x11ca   : > { %v9794_v7 = vpop.f32.mrf.mxu0  ;;  %9804 = vmatmul.mubr.msk.f32.vlgmr.msra.gmra.mxu0 %vm834_vm1, %v9791_v63 }
0x11cb   : > { %9844 = vmatpush3.msra.mxu0 %v8088_v50  ;;  %v3095_v50 = vadd.f32 %v11807_v21, %v2190_v62  ;;  %v2210_v21 = vadd.f32 %v11477_v16, %v11586_v48  ;;  %v8105_v62 = vld [vmem:[%s13185_s6 + $0x170] sm:$0xff] }
0x11cc   : > { %9845 = vmatprep.subr.mxu0 %v8087_v24  ;;  %v4699_v26 = vpop.f32.mrf.mxu0 }
0x11cd   : > { %9846 = vmatpush3.msra.mxu0 %v8087_v24  ;;  %9806 = vmatprep.mubr.msk.f32.mxu0 %vm834_vm1, %v4699_v26  ;;  %v3978_v37 = vadd.f32 %v12104_v52, %v3095_v50  ;;  %v3099_v43 = vadd.f32 %v11819_v13, %v2210_v21  ;;  %v8090_v13 = vld [vmem:[%s13184_s5 + $0x5] ss:$0 sm:$0xff]  ;;  %v8100_v50 = vld [vmem:[%s13185_s6 + $0x148] sm:$0xff] }
0x11ce   : > { %9847 = vmatprep.subr.mxu0 %v8086_v5  ;;  %v9797_v59 = vpop.f32.mrf.mxu0  ;;  %9807 = vmatmul.mubr.msk.f32.gmra.mxu0 %vm834_vm1, %v9794_v7 }
0x11cf   : > { %9848 = vmatpush3.msra.mxu0 %v8086_v5  ;;  %v3982_v6 = vadd.f32 %v12114_v28, %v3099_v43 }
0x11d0   : > { %9849 = vmatprep.subr.mxu0 %v8085_v34  ;;  %v4709_v10 = vpop.f32.mrf.mxu0 }
0x11d1   : > { %9850 = vmatpush3.msra.mxu0 %v8085_v34  ;;  %9809 = vmatprep.mubr.msk.f32.mxu0 %vm834_vm1, %v4709_v10 }
0x11d2   : > { %9851 = vmatprep.subr.mxu0 %v8084_v25  ;;  %v9800_v14 = vpop.f32.mrf.mxu0  ;;  %9810 = vmatmul.mubr.msk.f32.gmra.mxu0 %vm834_vm1, %v9797_v59 }
0x11d3   : > { %9852 = vmatpush3.msra.mxu0 %v8084_v25 }
0x11d4   : > { %9853 = vmatprep.subr.mxu0 %v8083_v45  ;;  %v4719_v57 = vpop.f32.mrf.mxu0 }
0x11d5   : > { %9854 = vmatpush3.msra.mxu0 %v8083_v45  ;;  %9812 = vmatprep.mubr.msk.f32.mxu0 %vm834_vm1, %v4719_v57 }
0x11d6   : > { %9855 = vmatprep.subr.mxu0 %v8082_v32  ;;  %9813 = vmatmul.mubr.msk.f32.gmra.mxu0 %vm834_vm1, %v9800_v14 }
0x11d7   : > { %9856 = vmatpush3.msra.mxu0 %v8082_v32  ;;  %9859 = vmatprep.mubr.msk.f32.mxu0 %vm440_vm0, %v12039_v3  ;;  %v12348_v3 = vld [vmem:[%s10864_s20 + $0x28] sm:$0xff] }
0x11d8   : > { %9857 = vmatprep.subr.mxu0 %v8081_v58  ;;  %v9833_v30 = vpop.f32.mrf.mxu1 }
0x11d9   : > { %9858 = vmatpush3.msra.mxu0 %v8081_v58  ;;  %v12368_v38 = vadd.f32 %v9833_v30, %v12365_v53 }
0x11da   : > { %9860 = vmatmul.mubr.msk.f32.vlgmr.msra.gmra.mxu0 %vm440_vm0, %v12328_v9  ;;  %v4950_v46 = vpop.f32.mrf.mxu1 }
0x11db   : > { %9862 = vmatprep.mubr.msk.f32.mxu0 %vm440_vm0, %v12333_v33  ;;  %v4951_v42 = vadd.f32 %v12365_v53, %v4950_v46 }
0x11dc   : > { %v9836_v34 = vpop.f32.mrf.mxu1 }
0x11dd   : > { %v4966_v46 = vadd.f32 %v9836_v34, %v12365_v53 }
0x11de   : > { %9863 = vmatmul.mubr.msk.f32.gmra.mxu0 %vm440_vm0, %v12338_v4  ;;  %v4960_v25 = vpop.f32.mrf.mxu1 }
0x11df   : > { %9865 = vmatprep.mubr.msk.f32.mxu0 %vm440_vm0, %v12343_v36  ;;  %v4961_v57 = vadd.f32 %v12365_v53, %v4960_v25 }
0x11e0   : > { %v9839_v45 = vpop.f32.mrf.mxu1 }
0x11e1   : > { %v4976_v54 = vadd.f32 %v9839_v45, %v12365_v53 }
0x11e2   : > { %9866 = vmatmul.mubr.msk.f32.gmra.mxu0 %vm440_vm0, %v12348_v3  ;;  %v4970_v32 = vpop.f32.mrf.mxu1 }
0x11e3   : > { %9868 = vmatprep.mubr.msk.f32.mxu0 %vm440_vm0, %v12353_v61  ;;  %v4971_v30 = vadd.f32 %v12365_v53, %v4970_v32 }
0x11e4   : > { %v9842_v58 = vpop.f32.mrf.mxu1 }
0x11e6   : > { %9869 = vmatmul.mubr.msk.f32.gmra.mxu0 %vm440_vm0, %v12358_v27 }
0x11e7   : > { %9915 = vmatprep.mubr.msk.f32.mxu0 %vm834_vm1, %v4951_v42  ;;  %v4980_v42 = vpop.f32.mrf.mxu1 }
0x11e8   : > { %v4981_v29 = vadd.f32 %v12365_v53, %v4980_v42 }
0x128a   : > { %v9805_v41 = vpop.f32.mrf.mxu0 }
0x128b   : > { %v12379_v23 = vadd.f32 %v9805_v41, %v12097_v12  ;;  %v8106_v41 = vld [vmem:[%s13185_s6 + $0x178] sm:$0xff] }
0x128c   : > { %v4820_v19 = vpop.f32.mrf.mxu0  ;;  %9871 = vmatprep.subr.mxu1 %v8106_v41 }
0x128d   : > { %v12382_v60 = vadd.f32 %v4820_v19, %v3976_v17  ;;  %9872 = vmatpush3.msra.mxu1 %v8106_v41  ;;  %v8104_v17 = vld [vmem:[%s13185_s6 + $0x168] sm:$0xff]  ;;  %v8101_v19 = vld [vmem:[%s13185_s6 + $0x150] sm:$0xff] }
0x128e   : > { %v9808_v20 = vpop.f32.mrf.mxu0  ;;  %9873 = vmatprep.subr.mxu1 %v8105_v62 }
0x128f   : > { %v12388_v22 = vadd.f32 %v9808_v20, %v12102_v18  ;;  %9874 = vmatpush3.msra.mxu1 %v8105_v62  ;;  %v8099_v20 = vld [vmem:[%s13185_s6 + $0x140] sm:$0xff] }
0x1290   : > { %v4830_v49 = vpop.f32.mrf.mxu0  ;;  %9875 = vmatprep.subr.mxu1 %v8104_v17 }
0x1291   : > { %v12391_v56 = vadd.f32 %v4830_v49, %v3978_v37  ;;  %9876 = vmatpush3.msra.mxu1 %v8104_v17 }
0x1292   : > { %v9811_v12 = vpop.f32.mrf.mxu0 }
0x1293   : > { %v12397_v31 = vadd.f32 %v9811_v12, %v12107_v15 }
0x1294   : > { %v4840_v51 = vpop.f32.mrf.mxu0 }
0x1295   : > { %v12400_v52 = vadd.f32 %v4840_v51, %v3980_v11 }
0x1296   : > { %v9814_v18 = vpop.f32.mrf.mxu0 }
0x1297   : > { %v12404_v47 = vadd.f32 %v9814_v18, %v12112_v35 }
0x1298   : > { %v4850_v55 = vpop.f32.mrf.mxu0 }
0x1299   : > { %v12406_v44 = vadd.f32 %v4850_v55, %v3982_v6 }
0x129a   : > { %v9861_v16 = vpop.f32.mrf.mxu0 }
0x129b   : > { %v5078_v10 = vadd.f32 %v9861_v16, %v8090_v13 }
0x129c   : > { %v5072_v48 = vpop.f32.mrf.mxu0 }
0x129d   : > { %v5073_v14 = vadd.f32 %v8090_v13, %v5072_v48 }
0x129e   : > { %v9864_v0 = vpop.f32.mrf.mxu0 }
0x129f   : > { %v5088_v26 = vadd.f32 %v9864_v0, %v8090_v13 }
0x12a0   : > { %v5082_v39 = vpop.f32.mrf.mxu0 }
0x12a1   : > { %v5083_v59 = vadd.f32 %v8090_v13, %v5082_v39 }
0x12a2   : > { %v9867_v15 = vpop.f32.mrf.mxu0 }
0x12a3   : > { %v5098_v35 = vadd.f32 %v9867_v15, %v8090_v13 }
0x12a4   : > { %v5092_v63 = vpop.f32.mrf.mxu0 }
0x12a5   : > { %v5093_v5 = vadd.f32 %v8090_v13, %v5092_v63 }
0x12a6   : > { %v9870_v1 = vpop.f32.mrf.mxu0 }
0x12a7   : > { %v5108_v24 = vadd.f32 %v9870_v1, %v8090_v13 }
0x12a8   : > { %v5102_v7 = vpop.f32.mrf.mxu0 }
0x12a9   : > { %v5103_v28 = vadd.f32 %v8090_v13, %v5102_v7  ;;  %9899 = vmatprep.subr.msk.mxu0 %vm834_vm1, %v5108_v24 }
0x12aa   : > { %9900 = vmatpush3.xpose.msk.msra.mxu0 %vm834_vm1, %v5108_v24 }
0x12ab   : > { %9901 = vmatprep.subr.msk.mxu0 %vm834_vm1, %v5103_v28 }
0x12ae   : > { %9902 = vmatpush3.xpose.msk.msra.mxu0 %vm834_vm1, %v5103_v28 }
0x12af   : > { %9903 = vmatprep.subr.msk.mxu0 %vm834_vm1, %v5098_v35 }
0x12b2   : > { %9904 = vmatpush3.xpose.msk.msra.mxu0 %vm834_vm1, %v5098_v35 }
0x12b3   : > { %9905 = vmatprep.subr.msk.mxu0 %vm834_vm1, %v5093_v5 }
0x12b6   : > { %9906 = vmatpush3.xpose.msk.msra.mxu0 %vm834_vm1, %v5093_v5 }
0x12b7   : > { %9907 = vmatprep.subr.msk.mxu0 %vm834_vm1, %v5088_v26 }
0x12ba   : > { %9908 = vmatpush3.xpose.msk.msra.mxu0 %vm834_vm1, %v5088_v26 }
0x12bb   : > { %9909 = vmatprep.subr.msk.mxu0 %vm834_vm1, %v5083_v59 }
0x12be   : > { %9910 = vmatpush3.xpose.msk.msra.mxu0 %vm834_vm1, %v5083_v59 }
0x12bf   : > { %9911 = vmatprep.subr.msk.mxu0 %vm834_vm1, %v5078_v10 }
0x12c2   : > { %9912 = vmatpush3.xpose.msk.msra.mxu0 %vm834_vm1, %v5078_v10  ;;  %v8108_v10 = vld [vmem:[%s13186_s7 + $0x5] ss:$0 sm:$0xff] }
0x12c3   : > { %9913 = vmatprep.subr.msk.mxu0 %vm834_vm1, %v5073_v14 }
0x12c6   : > { %9914 = vmatpush3.xpose.msk.msra.mxu0 %vm834_vm1, %v5073_v14 }
0x12c9   : > { %9916 = vmatmul.mubr.msk.f32.vlgmr.msra.gmra.mxu0 %vm834_vm1, %v12368_v38  ;;  %v4986_v38 = vadd.f32 %v9842_v58, %v12365_v53  ;;  %v8102_v53 = vld [vmem:[%s13185_s6 + $0x158] sm:$0xff] }
0x12ca   : > { %9918 = vmatprep.mubr.msk.f32.mxu0 %vm834_vm1, %v4961_v57 }
0x12cd   : > { %9919 = vmatmul.mubr.msk.f32.gmra.mxu0 %vm834_vm1, %v4966_v46 }
0x12ce   : > { %9921 = vmatprep.mubr.msk.f32.mxu0 %vm834_vm1, %v4971_v30 }
0x12d1   : > { %9922 = vmatmul.mubr.msk.f32.gmra.mxu0 %vm834_vm1, %v4976_v54 }
0x12d2   : > { %9924 = vmatprep.mubr.msk.f32.mxu0 %vm834_vm1, %v4981_v29 }
0x12d5   : > { %9925 = vmatmul.mubr.msk.f32.gmra.mxu0 %vm834_vm1, %v4986_v38 }
0x12d6   : > { %9985 = vmatprep.mubr.msk.f32.mxu0 %vm440_vm0, %v12149_v2  ;;  %v8103_v2 = vld [vmem:[%s13185_s6 + $0x160] sm:$0xff] }
0x12d7   : > { %9877 = vmatprep.subr.mxu1 %v8103_v2 }
0x12d8   : > { %9878 = vmatpush3.msra.mxu1 %v8103_v2 }
0x12d9   : > { %9879 = vmatprep.subr.mxu1 %v8102_v53 }
0x12da   : > { %9880 = vmatpush3.msra.mxu1 %v8102_v53 }
0x12db   : > { %9881 = vmatprep.subr.mxu1 %v8101_v19 }
0x12dc   : > { %9882 = vmatpush3.msra.mxu1 %v8101_v19 }
0x12dd   : > { %9883 = vmatprep.subr.mxu1 %v8100_v50 }
0x12de   : > { %9884 = vmatpush3.msra.mxu1 %v8100_v50 }
0x12df   : > { %9885 = vmatprep.subr.mxu1 %v8099_v20 }
0x12e0   : > { %9886 = vmatpush3.msra.mxu1 %v8099_v20 }
0x12e1   : > { %9888 = vmatmul.mubr.msk.f32.vlgmr.msra.gmra.mxu1 %vm440_vm0, %v12328_v9 }
0x12e2   : > { %9890 = vmatprep.mubr.msk.f32.mxu1 %vm440_vm0, %v12333_v33 }
0x12e5   : > { %9891 = vmatmul.mubr.msk.f32.gmra.mxu1 %vm440_vm0, %v12338_v4 }
0x12e6   : > { %9893 = vmatprep.mubr.msk.f32.mxu1 %vm440_vm0, %v12343_v36 }
0x12e9   : > { %9894 = vmatmul.mubr.msk.f32.gmra.mxu1 %vm440_vm0, %v12348_v3 }
0x12ea   : > { %9896 = vmatprep.mubr.msk.f32.mxu1 %vm440_vm0, %v12353_v61 }
0x12ed   : > { %9897 = vmatmul.mubr.msk.f32.gmra.mxu1 %vm440_vm0, %v12358_v27 }
0x1389   : > { %v9917_v8 = vpop.f32.mrf.mxu0 }
0x138a   : > { %v12481_v37 = vmul.f32 0.35355338, %v9917_v8 }
0x138b   : > { %v5347_v49 = vpop.f32.mrf.mxu0 }
0x138c   : > { %v12483_v40 = vmul.f32 0.35355338, %v5347_v49  ;;  %v5397_v12 = vsel %vm440_vm0, %v12481_v37, -inf }
0x138d   : > { %5398 = vmax.xlane.f32.xlu1 %v5397_v12  ;;  %v9920_v21 = vpop.f32.mrf.mxu0 }
0x138e   : > { %v12487_v11 = vmul.f32 0.35355338, %v9920_v21  ;;  %v5394_v51 = vsel %vm440_vm0, %v12483_v40, -inf }
0x138f   : > { %5395 = vmax.xlane.f32.xlu0 %v5394_v51  ;;  %v5357_v43 = vpop.f32.mrf.mxu0 }
0x1390   : > { %v12491_v18 = vmul.f32 0.35355338, %v5357_v43  ;;  %v5403_v6 = vsel %vm440_vm0, %v12487_v11, -inf }
0x1391   : > { %5404 = vmax.xlane.f32.xlu1 %v5403_v6  ;;  %v9923_v55 = vpop.f32.mrf.mxu0 }
0x1392   : > { %v12495_v16 = vmul.f32 0.35355338, %v9923_v55  ;;  %v5400_v48 = vsel %vm440_vm0, %v12491_v18, -inf }
0x1393   : > { %5401 = vmax.xlane.f32.xlu0 %v5400_v48  ;;  %v5367_v0 = vpop.f32.mrf.mxu0 }
0x1394   : > { %v12499_v39 = vmul.f32 0.35355338, %v5367_v0  ;;  %v5409_v15 = vsel %vm440_vm0, %v12495_v16, -inf }
0x1395   : > { %5410 = vmax.xlane.f32.xlu1 %v5409_v15  ;;  %v9926_v63 = vpop.f32.mrf.mxu0 }
0x1396   : > { %v12503_v13 = vmul.f32 0.35355338, %v9926_v63  ;;  %v5406_v1 = vsel %vm440_vm0, %v12499_v39, -inf }
0x1397   : > { %5407 = vmax.xlane.f32.xlu0 %v5406_v1  ;;  %v5377_v24 = vpop.f32.mrf.mxu0 }
0x1398   : > { %v12507_v7 = vmul.f32 0.35355338, %v5377_v24  ;;  %v5415_v28 = vsel %vm440_vm0, %v12503_v13, -inf }
0x1399   : > { %5416 = vmax.xlane.f32.xlu1 %v5415_v28 }
0x139a   : > { %v5412_v35 = vsel %vm440_vm0, %v12507_v7, -inf }
0x139b   : > { %5413 = vmax.xlane.f32.xlu0 %v5412_v35 }
0x13a1   : > { %v9889_v5 = vpop.f32.mrf.mxu1 }
0x13a2   : > { %v5200_v54 = vadd.f32 %v9889_v5, %v8108_v10 }
0x13a3   : > { %v5194_v26 = vpop.f32.mrf.mxu1 }
0x13a4   : > { %v5195_v38 = vadd.f32 %v8108_v10, %v5194_v26 }
0x13a5   : > { %v9892_v34 = vpop.f32.mrf.mxu1 }
0x13a6   : > { %v5210_v42 = vadd.f32 %v9892_v34, %v8108_v10 }
0x13a7   : > { %v5204_v59 = vpop.f32.mrf.mxu1 }
0x13a8   : > { %v5205_v29 = vadd.f32 %v8108_v10, %v5204_v59 }
0x13a9   : > { %v9895_v25 = vpop.f32.mrf.mxu1 }
0x13aa   : > { %v5220_v58 = vadd.f32 %v9895_v25, %v8108_v10 }
0x13ab   : > { %v5214_v45 = vpop.f32.mrf.mxu1 }
0x13ac   : > { %v5215_v46 = vadd.f32 %v8108_v10, %v5214_v45 }
0x13ad   : > { %v9898_v14 = vpop.f32.mrf.mxu1 }
0x13ae   : > { %v5230_v32 = vadd.f32 %v9898_v14, %v8108_v10 }
0x13af   : > { %v5224_v57 = vpop.f32.mrf.mxu1 }
0x13b0   : > { %v5225_v30 = vadd.f32 %v8108_v10, %v5224_v57  ;;  %9927 = vmatprep.subr.mxu1 %v5230_v32 }
0x13b1   : > { %9928 = vmatpush3.msra.mxu1 %v5230_v32  ;;  %v8141_v32 = vld [vmem:[%s13187_s8 + $0x28] sm:$0xff] }
0x13b2   : > { %9929 = vmatprep.subr.mxu1 %v5225_v30 }
0x13b3   : > { %9930 = vmatpush3.msra.mxu1 %v5225_v30 }
0x13b4   : > { %9931 = vmatprep.subr.mxu1 %v5220_v58 }
0x13b5   : > { %9932 = vmatpush3.msra.mxu1 %v5220_v58 }
0x13b6   : > { %9933 = vmatprep.subr.mxu1 %v5215_v46 }
0x13b7   : > { %9934 = vmatpush3.msra.mxu1 %v5215_v46 }
0x13b8   : > { %9935 = vmatprep.subr.mxu1 %v5210_v42 }
0x13b9   : > { %9936 = vmatpush3.msra.mxu1 %v5210_v42 }
0x13ba   : > { %9937 = vmatprep.subr.mxu1 %v5205_v29 }
0x13bb   : > { %9938 = vmatpush3.msra.mxu1 %v5205_v29 }
0x13bc   : > { %9939 = vmatprep.subr.mxu1 %v5200_v54 }
0x13bd   : > { %9940 = vmatpush3.msra.mxu1 %v5200_v54 }
0x13be   : > { %9941 = vmatprep.subr.mxu1 %v5195_v38 }
0x13bf   : > { %9942 = vmatpush3.msra.mxu1 %v5195_v38 }
0x13c0   : > { %9955 = vmatprep.subr.mxu1 %v8141_v32 }
0x1416   : > { %v5399_v41 = vpop.xlane.xlu1 %5398 }
0x1417   : > { %v5419_v62 = vsub.f32 %v12481_v37, %v5399_v41 }
0x1418   : > { %v5396_v17 = vpop.xlane.xlu0 %5395 }
0x1419   : > { %v5428_v2 = vmul.f32 1.442695, %v5419_v62  ;;  %v5418_v53 = vsub.f32 %v12483_v40, %v5396_v17 }
0x141a   : > { %v5405_v19 = vpop.xlane.xlu1 %5404 }
0x141b   : > { %10494 = vpow2.f32 %v5428_v2  ;;  %v5426_v50 = vmul.f32 1.442695, %v5418_v53  ;;  %v5421_v20 = vsub.f32 %v12487_v11, %v5405_v19 }
0x141c   : > { %v5402_v8 = vpop.xlane.xlu0 %5401 }
0x141d   : > { %10496 = vpow2.f32 %v5426_v50  ;;  %v5432_v49 = vmul.f32 1.442695, %v5421_v20  ;;  %v5420_v12 = vsub.f32 %v12491_v18, %v5402_v8 }
0x141e   : > { %v5411_v21 = vpop.xlane.xlu1 %5410 }
0x141f   : > { %10498 = vpow2.f32 %v5432_v49  ;;  %v5430_v51 = vmul.f32 1.442695, %v5420_v12  ;;  %v5423_v43 = vsub.f32 %v12495_v16, %v5411_v21 }
0x1420   : > { %v5408_v37 = vpop.xlane.xlu0 %5407 }
0x1421   : > { %10500 = vpow2.f32 %v5430_v51  ;;  %v5436_v6 = vmul.f32 1.442695, %v5423_v43  ;;  %v5422_v40 = vsub.f32 %v12499_v39, %v5408_v37 }
0x1422   : > { %v5417_v55 = vpop.xlane.xlu1 %5416 }
0x1423   : > { %10502 = vpow2.f32 %v5436_v6  ;;  %v5434_v48 = vmul.f32 1.442695, %v5422_v40  ;;  %v5425_v11 = vsub.f32 %v12503_v13, %v5417_v55  ;;  %v8175_v40 = vld [vmem:[%s13183_s4 + $0x1b8] sm:$0xff] }
0x1424   : > { %v5414_v0 = vpop.xlane.xlu0 %5413  ;;  %v8157_v55 = vld [vmem:[%s13181_s2 + $0x1b8] sm:$0xff] }
0x1425   : > { %10504 = vpow2.f32 %v5434_v48  ;;  %v5440_v15 = vmul.f32 1.442695, %v5425_v11  ;;  %v5424_v18 = vsub.f32 %v12507_v7, %v5414_v0  ;;  %v8156_v48 = vld [vmem:[%s13181_s2 + $0x1b0] sm:$0xff]  ;;  %9969 = vmatprep.subr.mxu0 %v8157_v55  ;;  %v8155_v11 = vld [vmem:[%s13181_s2 + $0x1a8] sm:$0xff]  ;;  %v8154_v0 = vld [vmem:[%s13181_s2 + $0x1a0] sm:$0xff] }
0x1426   : > { %9970 = vmatpush3.msra.mxu0 %v8157_v55 }
0x1427   : > { %10506 = vpow2.f32 %v5440_v15  ;;  %v5438_v63 = vmul.f32 1.442695, %v5424_v18  ;;  %9971 = vmatprep.subr.mxu0 %v8156_v48  ;;  %v8153_v15 = vld [vmem:[%s13181_s2 + $0x198] sm:$0xff]  ;;  %v8152_v18 = vld [vmem:[%s13181_s2 + $0x190] sm:$0xff] }
0x1428   : > { %v10495_v1 = vpop.eup %10494  ;;  %9972 = vmatpush3.msra.mxu0 %v8156_v48 }
0x1429   : > { %10508 = vpow2.f32 %v5438_v63  ;;  %v5445_v16 = vsel %vm440_vm0, %v10495_v1, 0.0  ;;  %9973 = vmatprep.subr.mxu0 %v8155_v11  ;;  %v8151_v63 = vld [vmem:[%s13181_s2 + $0x188] sm:$0xff] }
0x142a   : > { %v10497_v24 = vpop.eup %10496  ;;  %5446 = vadd.xlane.f32.xlu1 %v5445_v16  ;;  %9974 = vmatpush3.msra.mxu0 %v8155_v11  ;;  %v12571_v16 = vld [vmem:[%s10903_s21 + $0x8] sm:$0xff] }
0x142b   : > { %v5442_v39 = vsel %vm440_vm0, %v10497_v24, 0.0  ;;  %9975 = vmatprep.subr.mxu0 %v8154_v0 }
0x142c   : > { %v10499_v28 = vpop.eup %10498  ;;  %5443 = vadd.xlane.f32.xlu0 %v5442_v39  ;;  %9976 = vmatpush3.msra.mxu0 %v8154_v0  ;;  %v12581_v39 = vld [vmem:[%s10903_s21 + $0x18] sm:$0xff] }
0x142d   : > { %v5451_v35 = vsel %vm440_vm0, %v10499_v28, 0.0  ;;  %9977 = vmatprep.subr.mxu0 %v8153_v15 }
0x142e   : > { %v10501_v13 = vpop.eup %10500  ;;  %5452 = vadd.xlane.f32.xlu1 %v5451_v35  ;;  %9978 = vmatpush3.msra.mxu0 %v8153_v15  ;;  %v12591_v35 = vld [vmem:[%s10903_s21 + $0x28] sm:$0xff] }
0x142f   : > { %v5448_v5 = vsel %vm440_vm0, %v10501_v13, 0.0  ;;  %9979 = vmatprep.subr.mxu0 %v8152_v18 }
0x1430   : > { %v10503_v26 = vpop.eup %10502  ;;  %5449 = vadd.xlane.f32.xlu0 %v5448_v5  ;;  %9980 = vmatpush3.msra.mxu0 %v8152_v18  ;;  %v12601_v5 = vld [vmem:[%s10903_s21 + $0x38] sm:$0xff] }
0x1431   : > { %v5457_v7 = vsel %vm440_vm0, %v10503_v26, 0.0  ;;  %9981 = vmatprep.subr.mxu0 %v8151_v63 }
0x1432   : > { %v10505_v34 = vpop.eup %10504  ;;  %5458 = vadd.xlane.f32.xlu1 %v5457_v7  ;;  %9982 = vmatpush3.msra.mxu0 %v8151_v63 }
0x1433   : > { %v5454_v59 = vsel %vm440_vm0, %v10505_v34, 0.0 }
0x1434   : > { %v10507_v25 = vpop.eup %10506  ;;  %5455 = vadd.xlane.f32.xlu0 %v5454_v59  ;;  %v8174_v59 = vld [vmem:[%s13183_s4 + $0x1b0] sm:$0xff] }
0x1435   : > { %v5463_v10 = vsel %vm440_vm0, %v10507_v25, 0.0 }
0x1436   : > { %v10509_v45 = vpop.eup %10508  ;;  %5464 = vadd.xlane.f32.xlu1 %v5463_v10  ;;  %v8173_v10 = vld [vmem:[%s13183_s4 + $0x1a8] sm:$0xff] }
0x1437   : > { %v5460_v14 = vsel %vm440_vm0, %v10509_v45, 0.0 }
0x1438   : > { %5461 = vadd.xlane.f32.xlu0 %v5460_v14  ;;  %v8172_v14 = vld [vmem:[%s13183_s4 + $0x1a0] sm:$0xff] }
0x14b3   : > { %v5447_v57 = vpop.xlane.xlu1 %5446 }
0x14b4   : > { %10510 = vrcp.f32 %v5447_v57  ;;  %v8171_v57 = vld [vmem:[%s13183_s4 + $0x198] sm:$0xff] }
0x14b5   : > { %v5444_v58 = vpop.xlane.xlu0 %5443 }
0x14b6   : > { %10512 = vrcp.f32 %v5444_v58 }
0x14b7   : > { %v5453_v30 = vpop.xlane.xlu1 %5452 }
0x14b8   : > { %10514 = vrcp.f32 %v5453_v30  ;;  %v8170_v30 = vld [vmem:[%s13183_s4 + $0x190] sm:$0xff] }
0x14b9   : > { %v5450_v46 = vpop.xlane.xlu0 %5449 }
0x14ba   : > { %10516 = vrcp.f32 %v5450_v46 }
0x14bb   : > { %v5459_v42 = vpop.xlane.xlu1 %5458 }
0x14bc   : > { %10518 = vrcp.f32 %v5459_v42  ;;  %v8169_v42 = vld [vmem:[%s13183_s4 + $0x188] sm:$0xff] }
0x14bd   : > { %v5456_v29 = vpop.xlane.xlu0 %5455 }
0x14be   : > { %10520 = vrcp.f32 %v5456_v29 }
0x14bf   : > { %v5465_v54 = vpop.xlane.xlu1 %5464 }
0x14c0   : > { %10522 = vrcp.f32 %v5465_v54  ;;  %v8168_v54 = vld [vmem:[%s13183_s4 + $0x180] sm:$0xff] }
0x14c1   : > { %v5462_v38 = vpop.xlane.xlu0 %5461  ;;  %v10511_v41 = vpop.eup %10510 }
0x14c2   : > { %10524 = vrcp.f32 %v5462_v38  ;;  %v5469_v2 = vmul.f32 %v10511_v41, %v10495_v1  ;;  %v8150_v1 = vld [vmem:[%s13181_s2 + $0x180] sm:$0xff] }
0x14c3   : > { %v10513_v62 = vpop.eup %10512  ;;  %9983 = vmatprep.subr.mxu0 %v8150_v1  ;;  %v12658_v41 = vld [vmem:[%s13182_s3 + $0x6] ss:$0 sm:$0xff] }
0x14c4   : > { %v5467_v17 = vmul.f32 %v10513_v62, %v10497_v24  ;;  %9984 = vmatpush3.msra.mxu0 %v8150_v1  ;;  %v12576_v24 = vld [vmem:[%s10903_s21 + $0x10] sm:$0xff] }
0x14c5   : > { %v10515_v53 = vpop.eup %10514  ;;  %9986 = vmatmul.mubr.msk.f32.vlgmr.msra.gmra.mxu0 %vm440_vm0, %v12571_v16 }
0x14c6   : > { %9943 = vmatprep.mubr.msk.f32.mxu1 %vm440_vm0, %v5467_v17  ;;  %v5473_v20 = vmul.f32 %v10515_v53, %v10499_v28  ;;  %9988 = vmatprep.mubr.msk.f32.mxu0 %vm440_vm0, %v12576_v24  ;;  %v12586_v28 = vld [vmem:[%s10903_s21 + $0x20] sm:$0xff] }
0x14c7   : > { %v10517_v19 = vpop.eup %10516  ;;  %9944 = vmatmul.mubr.msk.f32.vlgmr.msra.gmra.mxu1 %vm440_vm0, %v5469_v2 }
0x14c8   : > { %v5471_v50 = vmul.f32 %v10517_v19, %v10501_v13  ;;  %9956 = vmatpush3.msra.mxu1 %v8141_v32  ;;  %v12596_v13 = vld [vmem:[%s10903_s21 + $0x30] sm:$0xff] }
0x14c9   : > { %v10519_v8 = vpop.eup %10518  ;;  %9997 = vmatprep.subr.mxu1 %v8175_v40  ;;  %9989 = vmatmul.mubr.msk.f32.gmra.mxu0 %vm440_vm0, %v12581_v39 }
0x14ca   : > { %9946 = vmatprep.mubr.msk.f32.mxu1 %vm440_vm0, %v5471_v50  ;;  %v5477_v21 = vmul.f32 %v10519_v8, %v10503_v26  ;;  %9991 = vmatprep.mubr.msk.f32.mxu0 %vm440_vm0, %v12586_v28  ;;  %v12606_v26 = vld [vmem:[%s10864_s20] sm:$0xff] }
0x14cb   : > { %v10521_v49 = vpop.eup %10520  ;;  %9947 = vmatmul.mubr.msk.f32.gmra.mxu1 %vm440_vm0, %v5473_v20 }
0x14cc   : > { %v5475_v12 = vmul.f32 %v10521_v49, %v10505_v34 }
0x14cd   : > { %v10523_v51 = vpop.eup %10522  ;;  %9992 = vmatmul.mubr.msk.f32.gmra.mxu0 %vm440_vm0, %v12591_v35 }
0x14ce   : > { %9949 = vmatprep.mubr.msk.f32.mxu1 %vm440_vm0, %v5475_v12  ;;  %v5481_v6 = vmul.f32 %v10523_v51, %v10507_v25  ;;  %9994 = vmatprep.mubr.msk.f32.mxu0 %vm440_vm0, %v12596_v13 }
0x14cf   : > { %v10525_v43 = vpop.eup %10524  ;;  %9950 = vmatmul.mubr.msk.f32.gmra.mxu1 %vm440_vm0, %v5477_v21 }
0x14d0   : > { %v5479_v37 = vmul.f32 %v10525_v43, %v10509_v45 }
0x14d1   : > { %9995 = vmatmul.mubr.msk.f32.gmra.mxu0 %vm440_vm0, %v12601_v5 }
0x14d2   : > { %9952 = vmatprep.mubr.msk.f32.mxu1 %vm440_vm0, %v5479_v37  ;;  %10041 = vmatprep.mubr.msk.f32.mxu0 %vm440_vm0, %v12606_v26 }
0x14d3   : > { %9953 = vmatmul.mubr.msk.f32.gmra.mxu1 %vm440_vm0, %v5481_v6 }
0x1585   : > { %v9987_v38 = vpop.f32.mrf.mxu0 }
0x1586   : > { %v5839_v62 = vadd.f32 %v9987_v38, %v12658_v41 }
0x1587   : > { %v9945_v7 = vpop.f32.mrf.mxu1  ;;  %v5833_v17 = vpop.f32.mrf.mxu0 }
0x1588   : > { %v5834_v2 = vadd.f32 %v12658_v41, %v5833_v17  ;;  %v8193_v17 = vld [vmem:[%s13185_s6 + $0x1b8] sm:$0xff] }
0x1589   : > { %v5572_v34 = vpop.f32.mrf.mxu1  ;;  %10025 = vmatprep.subr.mxu0 %v8193_v17 }
0x158a   : > { %9957 = vmatprep.mubr.msk.f32.mxu1 %vm834_vm1, %v5572_v34  ;;  %v9990_v34 = vpop.f32.mrf.mxu0  ;;  %10026 = vmatpush3.msra.mxu0 %v8193_v17 }
0x158b   : > { %v9948_v25 = vpop.f32.mrf.mxu1  ;;  %9958 = vmatmul.mubr.msk.f32.vlgmr.msra.gmra.mxu1 %vm834_vm1, %v9945_v7 }
0x158c   : > { %9998 = vmatpush3.msra.mxu1 %v8175_v40 }
0x158d   : > { %9999 = vmatprep.subr.mxu1 %v8174_v59  ;;  %v5582_v45 = vpop.f32.mrf.mxu1 }
0x158e   : > { %10000 = vmatpush3.msra.mxu1 %v8174_v59  ;;  %9960 = vmatprep.mubr.msk.f32.mxu1 %vm834_vm1, %v5582_v45 }
0x158f   : > { %10001 = vmatprep.subr.mxu1 %v8173_v10  ;;  %v9951_v32 = vpop.f32.mrf.mxu1  ;;  %9961 = vmatmul.mubr.msk.f32.gmra.mxu1 %vm834_vm1, %v9948_v25  ;;  %v5843_v25 = vpop.f32.mrf.mxu0 }
0x1590   : > { %10002 = vmatpush3.msra.mxu1 %v8173_v10 }
0x1591   : > { %10003 = vmatprep.subr.mxu1 %v8172_v14  ;;  %v5592_v58 = vpop.f32.mrf.mxu1  ;;  %v9993_v45 = vpop.f32.mrf.mxu0 }
0x1592   : > { %10004 = vmatpush3.msra.mxu1 %v8172_v14  ;;  %9963 = vmatprep.mubr.msk.f32.mxu1 %vm834_vm1, %v5592_v58 }
0x1593   : > { %10005 = vmatprep.subr.mxu1 %v8171_v57  ;;  %v9954_v46 = vpop.f32.mrf.mxu1  ;;  %9964 = vmatmul.mubr.msk.f32.gmra.mxu1 %vm834_vm1, %v9951_v32  ;;  %v5853_v32 = vpop.f32.mrf.mxu0 }
0x1594   : > { %10006 = vmatpush3.msra.mxu1 %v8171_v57  ;;  %v5844_v57 = vadd.f32 %v12658_v41, %v5843_v25 }
0x1595   : > { %10007 = vmatprep.subr.mxu1 %v8170_v30  ;;  %v5602_v29 = vpop.f32.mrf.mxu1  ;;  %v9996_v58 = vpop.f32.mrf.mxu0 }
0x1596   : > { %10008 = vmatpush3.msra.mxu1 %v8170_v30  ;;  %9966 = vmatprep.mubr.msk.f32.mxu1 %vm834_vm1, %v5602_v29  ;;  %v5854_v30 = vadd.f32 %v12658_v41, %v5853_v32  ;;  %v5869_v38 = vadd.f32 %v9996_v58, %v12658_v41 }
0x1597   : > { %10009 = vmatprep.subr.mxu1 %v8169_v42  ;;  %9967 = vmatmul.mubr.msk.f32.gmra.mxu1 %vm834_vm1, %v9954_v46  ;;  %v5849_v46 = vadd.f32 %v9990_v34, %v12658_v41 }
0x1598   : > { %10010 = vmatpush3.msra.mxu1 %v8169_v42  ;;  %10013 = vmatprep.mubr.msk.f32.mxu1 %vm440_vm0, %v12606_v26  ;;  %v5863_v42 = vpop.f32.mrf.mxu0 }
0x1599   : > { %10011 = vmatprep.subr.mxu1 %v8168_v54  ;;  %v5864_v29 = vadd.f32 %v12658_v41, %v5863_v42 }
0x159a   : > { %10012 = vmatpush3.msra.mxu1 %v8168_v54  ;;  %v5859_v54 = vadd.f32 %v9993_v45, %v12658_v41  ;;  %v8190_v41 = vld [vmem:[%s13185_s6 + $0x1a0] sm:$0xff] }
0x159b   : > { %10014 = vmatmul.mubr.msk.f32.vlgmr.msra.gmra.mxu1 %vm440_vm0, %v12328_v9 }
0x159c   : > { %10016 = vmatprep.mubr.msk.f32.mxu1 %vm440_vm0, %v12333_v33 }
0x159f   : > { %10017 = vmatmul.mubr.msk.f32.gmra.mxu1 %vm440_vm0, %v12338_v4 }
0x15a0   : > { %10019 = vmatprep.mubr.msk.f32.mxu1 %vm440_vm0, %v12343_v36 }
0x15a3   : > { %10020 = vmatmul.mubr.msk.f32.gmra.mxu1 %vm440_vm0, %v12348_v3 }
0x15a4   : > { %10022 = vmatprep.mubr.msk.f32.mxu1 %vm440_vm0, %v12353_v61 }
0x15a7   : > { %10023 = vmatmul.mubr.msk.f32.gmra.mxu1 %vm440_vm0, %v12358_v27 }
0x15a8   : > { %10069 = vmatprep.mubr.msk.f32.mxu1 %vm834_vm1, %v5834_v2  ;;  %v8192_v2 = vld [vmem:[%s13185_s6 + $0x1b0] sm:$0xff] }
0x15a9   : > { %10027 = vmatprep.subr.mxu0 %v8192_v2 }
0x15aa   : > { %10028 = vmatpush3.msra.mxu0 %v8192_v2 }
0x164b   : > { %v9959_v53 = vpop.f32.mrf.mxu1 }
0x164c   : > { %v12664_v19 = vadd.f32 %v9959_v53, %v12379_v23  ;;  %v8191_v53 = vld [vmem:[%s13185_s6 + $0x1a8] sm:$0xff] }
0x164d   : > { %v5703_v50 = vpop.f32.mrf.mxu1  ;;  %10029 = vmatprep.subr.mxu0 %v8191_v53 }
0x164e   : > { %v12667_v20 = vadd.f32 %v5703_v50, %v12382_v60  ;;  %10030 = vmatpush3.msra.mxu0 %v8191_v53  ;;  %v8189_v50 = vld [vmem:[%s13185_s6 + $0x198] sm:$0xff] }
0x164f   : > { %v9962_v8 = vpop.f32.mrf.mxu1  ;;  %10031 = vmatprep.subr.mxu0 %v8190_v41 }
0x1650   : > { %v12670_v49 = vadd.f32 %v9962_v8, %v12388_v22  ;;  %10032 = vmatpush3.msra.mxu0 %v8190_v41  ;;  %v8188_v8 = vld [vmem:[%s13185_s6 + $0x190] sm:$0xff] }
0x1651   : > { %v5713_v12 = vpop.f32.mrf.mxu1  ;;  %10033 = vmatprep.subr.mxu0 %v8189_v50 }
0x1652   : > { %v12673_v21 = vadd.f32 %v5713_v12, %v12391_v56  ;;  %10034 = vmatpush3.msra.mxu0 %v8189_v50  ;;  %v8187_v12 = vld [vmem:[%s13185_s6 + $0x188] sm:$0xff] }
0x1653   : > { %v9965_v51 = vpop.f32.mrf.mxu1  ;;  %10035 = vmatprep.subr.mxu0 %v8188_v8 }
0x1654   : > { %v12676_v43 = vadd.f32 %v9965_v51, %v12397_v31  ;;  %v8177_v31 = vld [vmem:[%s13184_s5 + $0x6] ss:$0 sm:$0xff]  ;;  %10036 = vmatpush3.msra.mxu0 %v8188_v8 }
0x1655   : > { %v5723_v37 = vpop.f32.mrf.mxu1  ;;  %v8186_v51 = vld [vmem:[%s13185_s6 + $0x180] sm:$0xff]  ;;  %10037 = vmatprep.subr.mxu0 %v8187_v12 }
0x1656   : > { %v12679_v23 = vadd.f32 %v5723_v37, %v12400_v52  ;;  %10038 = vmatpush3.msra.mxu0 %v8187_v12 }
0x1657   : > { %v9968_v6 = vpop.f32.mrf.mxu1  ;;  %10039 = vmatprep.subr.mxu0 %v8186_v51 }
0x1658   : > { %v12682_v60 = vadd.f32 %v9968_v6, %v12404_v47  ;;  %10040 = vmatpush3.msra.mxu0 %v8186_v51 }
0x1659   : > { %v5733_v40 = vpop.f32.mrf.mxu1  ;;  %10042 = vmatmul.mubr.msk.f32.vlgmr.msra.gmra.mxu0 %vm440_vm0, %v12328_v9 }
0x165a   : > { %v12685_v22 = vadd.f32 %v5733_v40, %v12406_v44  ;;  %10044 = vmatprep.mubr.msk.f32.mxu0 %vm440_vm0, %v12333_v33 }
0x165b   : > { %v10015_v55 = vpop.f32.mrf.mxu1 }
0x165c   : > { %v5961_v10 = vadd.f32 %v10015_v55, %v8177_v31 }
0x165d   : > { %v5955_v48 = vpop.f32.mrf.mxu1  ;;  %10045 = vmatmul.mubr.msk.f32.gmra.mxu0 %vm440_vm0, %v12338_v4 }
0x165e   : > { %v5956_v14 = vadd.f32 %v8177_v31, %v5955_v48  ;;  %10047 = vmatprep.mubr.msk.f32.mxu0 %vm440_vm0, %v12343_v36 }
0x165f   : > { %v10018_v56 = vpop.f32.mrf.mxu1 }
0x1660   : > { %v5971_v7 = vadd.f32 %v10018_v56, %v8177_v31 }
0x1661   : > { %v5965_v11 = vpop.f32.mrf.mxu1  ;;  %10048 = vmatmul.mubr.msk.f32.gmra.mxu0 %vm440_vm0, %v12348_v3 }
0x1662   : > { %v5966_v59 = vadd.f32 %v8177_v31, %v5965_v11  ;;  %10050 = vmatprep.mubr.msk.f32.mxu0 %vm440_vm0, %v12353_v61 }
0x1663   : > { %v10021_v0 = vpop.f32.mrf.mxu1 }
0x1664   : > { %v5981_v47 = vadd.f32 %v10021_v0, %v8177_v31 }
0x1665   : > { %v5975_v15 = vpop.f32.mrf.mxu1  ;;  %10051 = vmatmul.mubr.msk.f32.gmra.mxu0 %vm440_vm0, %v12358_v27 }
0x1666   : > { %v5976_v44 = vadd.f32 %v8177_v31, %v5975_v15 }
0x1667   : > { %v10024_v52 = vpop.f32.mrf.mxu1 }
0x1668   : > { %v5991_v18 = vadd.f32 %v10024_v52, %v8177_v31 }
0x1669   : > { %v5985_v63 = vpop.f32.mrf.mxu1 }
0x166a   : > { %v5986_v1 = vadd.f32 %v8177_v31, %v5985_v63  ;;  %10053 = vmatprep.subr.msk.mxu1 %vm834_vm1, %v5991_v18 }
0x166b   : > { %10054 = vmatpush3.xpose.msk.msra.mxu1 %vm834_vm1, %v5991_v18 }
0x166c   : > { %10055 = vmatprep.subr.msk.mxu1 %vm834_vm1, %v5986_v1 }
0x166f   : > { %10056 = vmatpush3.xpose.msk.msra.mxu1 %vm834_vm1, %v5986_v1 }
0x1670   : > { %10057 = vmatprep.subr.msk.mxu1 %vm834_vm1, %v5981_v47 }
0x1673   : > { %10058 = vmatpush3.xpose.msk.msra.mxu1 %vm834_vm1, %v5981_v47 }
0x1674   : > { %10059 = vmatprep.subr.msk.mxu1 %vm834_vm1, %v5976_v44 }
0x1677   : > { %10060 = vmatpush3.xpose.msk.msra.mxu1 %vm834_vm1, %v5976_v44 }
0x1678   : > { %10061 = vmatprep.subr.msk.mxu1 %vm834_vm1, %v5971_v7 }
0x167b   : > { %10062 = vmatpush3.xpose.msk.msra.mxu1 %vm834_vm1, %v5971_v7 }
0x167c   : > { %10063 = vmatprep.subr.msk.mxu1 %vm834_vm1, %v5966_v59 }
0x167f   : > { %10064 = vmatpush3.xpose.msk.msra.mxu1 %vm834_vm1, %v5966_v59 }
0x1680   : > { %10065 = vmatprep.subr.msk.mxu1 %vm834_vm1, %v5961_v10 }
0x1683   : > { %10066 = vmatpush3.xpose.msk.msra.mxu1 %vm834_vm1, %v5961_v10 }
0x1684   : > { %10067 = vmatprep.subr.msk.mxu1 %vm834_vm1, %v5956_v14 }
0x1687   : > { %10068 = vmatpush3.xpose.msk.msra.mxu1 %vm834_vm1, %v5956_v14  ;;  %v8195_v14 = vld [vmem:[%s13186_s7 + $0x6] ss:$0 sm:$0xff] }
0x168a   : > { %10070 = vmatmul.mubr.msk.f32.vlgmr.msra.gmra.mxu1 %vm834_vm1, %v5839_v62  ;;  %v10637_v62 = vld [vmem:[%s10903_s21] sm:$0xff]  ;;  %s10723_s21 = smov [#allocation2]  }
0x168b   : > { %10072 = vmatprep.mubr.msk.f32.mxu1 %vm834_vm1, %v5844_v57  ;;  %s10649_s29 = sshll.u32 %s10723_s21, 4  ;;  %s10650_s29 = int_to_ptr.vmem [resolvable:$false] %s10649_s29 }
0x168c   : > { %p10652_p1 = scmp.lt.s32.totalorder %s13128_s12, %s10650_s29 }
0x168e   : > { %10073 = vmatmul.mubr.msk.f32.gmra.mxu1 %vm834_vm1, %v5849_v46 }
0x168f   : > { %10075 = vmatprep.mubr.msk.f32.mxu1 %vm834_vm1, %v5854_v30 }
0x1692   : > { %10076 = vmatmul.mubr.msk.f32.gmra.mxu1 %vm834_vm1, %v5859_v54 }
0x1693   : > { %10078 = vmatprep.mubr.msk.f32.mxu1 %vm834_vm1, %v5864_v29 }
0x1696   : > { %10079 = vmatmul.mubr.msk.f32.gmra.mxu1 %vm834_vm1, %v5869_v38 }
0x1697   : > { %10139 = vmatprep.mubr.msk.f32.mxu1 %vm440_vm0, %v10637_v62 }
0x1719   : > { %v10043_v34 = vpop.f32.mrf.mxu0 }
0x171a   : > { %v6083_v62 = vadd.f32 %v10043_v34, %v8195_v14 }
0x171b   : > { %v6077_v59 = vpop.f32.mrf.mxu0 }
0x171c   : > { %v6078_v17 = vadd.f32 %v8195_v14, %v6077_v59 }
0x171d   : > { %v10046_v25 = vpop.f32.mrf.mxu0 }
0x171e   : > { %v6093_v54 = vadd.f32 %v10046_v25, %v8195_v14 }
0x171f   : > { %v6087_v10 = vpop.f32.mrf.mxu0 }
0x1720   : > { %v6088_v38 = vadd.f32 %v8195_v14, %v6087_v10 }
0x1721   : > { %v10049_v45 = vpop.f32.mrf.mxu0 }
0x1722   : > { %v6103_v46 = vadd.f32 %v10049_v45, %v8195_v14 }
0x1723   : > { %v6097_v32 = vpop.f32.mrf.mxu0 }
0x1724   : > { %v6098_v29 = vadd.f32 %v8195_v14, %v6097_v32 }
0x1725   : > { %v10052_v57 = vpop.f32.mrf.mxu0 }
0x1726   : > { %v6113_v58 = vadd.f32 %v10052_v57, %v8195_v14 }
0x1727   : > { %v6107_v30 = vpop.f32.mrf.mxu0 }
0x1728   : > { %v6108_v42 = vadd.f32 %v8195_v14, %v6107_v30  ;;  %10081 = vmatprep.subr.mxu0 %v6113_v58  ;;  %v8228_v30 = vld [vmem:[%s13187_s8 + $0x30] sm:$0xff] }
0x1729   : > { %10082 = vmatpush3.msra.mxu0 %v6113_v58 }
0x172a   : > { %10083 = vmatprep.subr.mxu0 %v6108_v42 }
0x172b   : > { %10084 = vmatpush3.msra.mxu0 %v6108_v42 }
0x172c   : > { %10085 = vmatprep.subr.mxu0 %v6103_v46 }
0x172d   : > { %10086 = vmatpush3.msra.mxu0 %v6103_v46 }
0x172e   : > { %10087 = vmatprep.subr.mxu0 %v6098_v29 }
0x172f   : > { %10088 = vmatpush3.msra.mxu0 %v6098_v29 }
0x1730   : > { %10089 = vmatprep.subr.mxu0 %v6093_v54 }
0x1731   : > { %10090 = vmatpush3.msra.mxu0 %v6093_v54 }
0x1732   : > { %10091 = vmatprep.subr.mxu0 %v6088_v38 }
0x1733   : > { %10092 = vmatpush3.msra.mxu0 %v6088_v38 }
0x1734   : > { %10093 = vmatprep.subr.mxu0 %v6083_v62 }
0x1735   : > { %10094 = vmatpush3.msra.mxu0 %v6083_v62 }
0x1736   : > { %10095 = vmatprep.subr.mxu0 %v6078_v17 }
0x1737   : > { %10096 = vmatpush3.msra.mxu0 %v6078_v17 }
0x1738   : > { %10109 = vmatprep.subr.mxu0 %v8228_v30 }
0x174a   : > { %v10071_v37 = vpop.f32.mrf.mxu1 }
0x174b   : > { %v12759_v9 = vmul.f32 0.35355338, %v10071_v37 }
0x174c   : > { %v6230_v6 = vpop.f32.mrf.mxu1 }
0x174d   : > { %v12761_v33 = vmul.f32 0.35355338, %v6230_v6  ;;  %v6280_v4 = vsel %vm440_vm0, %v12759_v9, -inf }
0x174e   : > { %6281 = vmax.xlane.f32.xlu1 %v6280_v4  ;;  %v10074_v36 = vpop.f32.mrf.mxu1 }
0x174f   : > { %v12765_v40 = vmul.f32 0.35355338, %v10074_v36  ;;  %v6277_v3 = vsel %vm440_vm0, %v12761_v33, -inf }
0x1750   : > { %6278 = vmax.xlane.f32.xlu0 %v6277_v3  ;;  %v6240_v61 = vpop.f32.mrf.mxu1 }
0x1751   : > { %v12769_v55 = vmul.f32 0.35355338, %v6240_v61  ;;  %v6286_v27 = vsel %vm440_vm0, %v12765_v40, -inf }
0x1752   : > { %6287 = vmax.xlane.f32.xlu1 %v6286_v27  ;;  %v10077_v48 = vpop.f32.mrf.mxu1 }
0x1753   : > { %v12773_v56 = vmul.f32 0.35355338, %v10077_v48  ;;  %v6283_v11 = vsel %vm440_vm0, %v12769_v55, -inf }
0x1754   : > { %6284 = vmax.xlane.f32.xlu0 %v6283_v11  ;;  %v6250_v0 = vpop.f32.mrf.mxu1 }
0x1755   : > { %v12777_v15 = vmul.f32 0.35355338, %v6250_v0  ;;  %v6292_v31 = vsel %vm440_vm0, %v12773_v56, -inf }
0x1756   : > { %6293 = vmax.xlane.f32.xlu1 %v6292_v31  ;;  %v10080_v52 = vpop.f32.mrf.mxu1 }
0x1757   : > { %v12781_v18 = vmul.f32 0.35355338, %v10080_v52  ;;  %v6289_v63 = vsel %vm440_vm0, %v12777_v15, -inf }
0x1758   : > { %6290 = vmax.xlane.f32.xlu0 %v6289_v63  ;;  %v6260_v1 = vpop.f32.mrf.mxu1 }
0x1759   : > { %v12785_v47 = vmul.f32 0.35355338, %v6260_v1  ;;  %v6298_v44 = vsel %vm440_vm0, %v12781_v18, -inf }
0x175a   : > { %6299 = vmax.xlane.f32.xlu1 %v6298_v44 }
0x175b   : > { %v6295_v7 = vsel %vm440_vm0, %v12785_v47, -inf }
0x175c   : > { %6296 = vmax.xlane.f32.xlu0 %v6295_v7 }
0x17d7   : > { %v6282_v2 = vpop.xlane.xlu1 %6281 }
0x17d8   : > { %v6302_v53 = vsub.f32 %v12759_v9, %v6282_v2 }
0x17d9   : > { %v6279_v41 = vpop.xlane.xlu0 %6278 }
0x17da   : > { %v6311_v50 = vmul.f32 1.442695, %v6302_v53  ;;  %v6301_v8 = vsub.f32 %v12761_v33, %v6279_v41 }
0x17db   : > { %v6288_v12 = vpop.xlane.xlu1 %6287 }
0x17dc   : > { %10526 = vpow2.f32 %v6311_v50  ;;  %v6309_v51 = vmul.f32 1.442695, %v6301_v8  ;;  %v6304_v37 = vsub.f32 %v12765_v40, %v6288_v12 }
0x17dd   : > { %v6285_v6 = vpop.xlane.xlu0 %6284 }
0x17de   : > { %10528 = vpow2.f32 %v6309_v51  ;;  %v6315_v4 = vmul.f32 1.442695, %v6304_v37  ;;  %v6303_v36 = vsub.f32 %v12769_v55, %v6285_v6 }
0x17df   : > { %v6294_v3 = vpop.xlane.xlu1 %6293 }
0x17e0   : > { %10530 = vpow2.f32 %v6315_v4  ;;  %v6313_v61 = vmul.f32 1.442695, %v6303_v36  ;;  %v6306_v27 = vsub.f32 %v12773_v56, %v6294_v3 }
0x17e1   : > { %v6291_v9 = vpop.xlane.xlu0 %6290 }
0x17e2   : > { %10532 = vpow2.f32 %v6313_v61  ;;  %v6319_v48 = vmul.f32 1.442695, %v6306_v27  ;;  %v6305_v33 = vsub.f32 %v12777_v15, %v6291_v9 }
0x17e3   : > { %v6300_v11 = vpop.xlane.xlu1 %6299 }
0x17e4   : > { %10534 = vpow2.f32 %v6319_v48  ;;  %v6317_v0 = vmul.f32 1.442695, %v6305_v33  ;;  %v6308_v40 = vsub.f32 %v12781_v18, %v6300_v11  ;;  %v8262_v11 = vld [vmem:[%s13183_s4 + $0x1f8] sm:$0xff] }
0x17e5   : > { %v6297_v31 = vpop.xlane.xlu0 %6296 }
0x17e6   : > { %10536 = vpow2.f32 %v6317_v0  ;;  %v6323_v52 = vmul.f32 1.442695, %v6308_v40  ;;  %v6307_v55 = vsub.f32 %v12785_v47, %v6297_v31  ;;  %v8244_v0 = vld [vmem:[%s13181_s2 + $0x1f8] sm:$0xff]  ;;  %v8243_v40 = vld [vmem:[%s13181_s2 + $0x1f0] sm:$0xff]  ;;  %v8242_v31 = vld [vmem:[%s13181_s2 + $0x1e8] sm:$0xff] }
0x17e7   : > { %10123 = vmatprep.subr.mxu1 %v8244_v0 }
0x17e8   : > { %10538 = vpow2.f32 %v6323_v52  ;;  %v6321_v63 = vmul.f32 1.442695, %v6307_v55  ;;  %10124 = vmatpush3.msra.mxu1 %v8244_v0  ;;  %v8241_v52 = vld [vmem:[%s13181_s2 + $0x1e0] sm:$0xff]  ;;  %v8240_v55 = vld [vmem:[%s13181_s2 + $0x1d8] sm:$0xff] }
0x17e9   : > { %v10527_v1 = vpop.eup %10526  ;;  %10125 = vmatprep.subr.mxu1 %v8243_v40 }
0x17ea   : > { %10540 = vpow2.f32 %v6321_v63  ;;  %v6328_v56 = vsel %vm440_vm0, %v10527_v1, 0.0  ;;  %10126 = vmatpush3.msra.mxu1 %v8243_v40  ;;  %v8239_v63 = vld [vmem:[%s13181_s2 + $0x1d0] sm:$0xff] }
0x17eb   : > { %v10529_v44 = vpop.eup %10528  ;;  %6329 = vadd.xlane.f32.xlu1 %v6328_v56  ;;  %10127 = vmatprep.subr.mxu1 %v8242_v31  ;;  %v8237_v56 = vld [vmem:[%s13181_s2 + $0x1c0] sm:$0xff] }
0x17ec   : > { %v6325_v15 = vsel %vm440_vm0, %v10529_v44, 0.0  ;;  %10128 = vmatpush3.msra.mxu1 %v8242_v31 }
0x17ed   : > { %v10531_v7 = vpop.eup %10530  ;;  %6326 = vadd.xlane.f32.xlu0 %v6325_v15  ;;  %10129 = vmatprep.subr.mxu1 %v8241_v52  ;;  %v8258_v15 = vld [vmem:[%s13183_s4 + $0x1d8] sm:$0xff] }
0x17ee   : > { %v6334_v34 = vsel %vm440_vm0, %v10531_v7, 0.0  ;;  %10130 = vmatpush3.msra.mxu1 %v8241_v52 }
0x17ef   : > { %v10533_v18 = vpop.eup %10532  ;;  %6335 = vadd.xlane.f32.xlu1 %v6334_v34  ;;  %10131 = vmatprep.subr.mxu1 %v8240_v55  ;;  %v8257_v34 = vld [vmem:[%s13183_s4 + $0x1d0] sm:$0xff] }
0x17f0   : > { %v6331_v59 = vsel %vm440_vm0, %v10533_v18, 0.0  ;;  %10132 = vmatpush3.msra.mxu1 %v8240_v55 }
0x17f1   : > { %v10535_v25 = vpop.eup %10534  ;;  %6332 = vadd.xlane.f32.xlu0 %v6331_v59  ;;  %10133 = vmatprep.subr.mxu1 %v8239_v63  ;;  %v8256_v59 = vld [vmem:[%s13183_s4 + $0x1c8] sm:$0xff] }
0x17f2   : > { %v6340_v47 = vsel %vm440_vm0, %v10535_v25, 0.0  ;;  %10134 = vmatpush3.msra.mxu1 %v8239_v63 }
0x17f3   : > { %v10537_v10 = vpop.eup %10536  ;;  %6341 = vadd.xlane.f32.xlu1 %v6340_v47  ;;  %v8255_v47 = vld [vmem:[%s13183_s4 + $0x1c0] sm:$0xff] }
0x17f4   : > { %v6337_v45 = vsel %vm440_vm0, %v10537_v10, 0.0 }
0x17f5   : > { %v10539_v14 = vpop.eup %10538  ;;  %6338 = vadd.xlane.f32.xlu0 %v6337_v45  ;;  %v12901_v45 = vld [vmem:[%s10864_s20 + $0x10] sm:$0xff] }
0x17f6   : > { %v6346_v32 = vsel %vm440_vm0, %v10539_v14, 0.0 }
0x17f7   : > { %v10541_v57 = vpop.eup %10540  ;;  %6347 = vadd.xlane.f32.xlu1 %v6346_v32  ;;  %v12911_v32 = vld [vmem:[%s10864_s20 + $0x20] sm:$0xff] }
0x17f8   : > { %v6343_v58 = vsel %vm440_vm0, %v10541_v57, 0.0 }
0x17f9   : > { %6344 = vadd.xlane.f32.xlu0 %v6343_v58  ;;  %v12926_v58 = vld [vmem:[%s10864_s20 + $0x38] sm:$0xff] }
0x1874   : > { %v6330_v46 = vpop.xlane.xlu1 %6329 }
0x1875   : > { %10542 = vrcp.f32 %v6330_v46  ;;  %v12933_v46 = vld [vmem:[%s13182_s3 + $0x7] ss:$0 sm:$0xff] }
0x1876   : > { %v6327_v42 = vpop.xlane.xlu0 %6326 }
0x1877   : > { %10544 = vrcp.f32 %v6327_v42 }
0x1878   : > { %v6336_v29 = vpop.xlane.xlu1 %6335 }
0x1879   : > { %10546 = vrcp.f32 %v6336_v29 }
0x187a   : > { %v6333_v54 = vpop.xlane.xlu0 %6332 }
0x187b   : > { %10548 = vrcp.f32 %v6333_v54 }
0x187c   : > { %v6342_v38 = vpop.xlane.xlu1 %6341 }
0x187d   : > { %10550 = vrcp.f32 %v6342_v38 }
0x187e   : > { %v6339_v62 = vpop.xlane.xlu0 %6338 }
0x187f   : > { %10552 = vrcp.f32 %v6339_v62 }
0x1880   : > { %v6348_v17 = vpop.xlane.xlu1 %6347 }
0x1881   : > { %10554 = vrcp.f32 %v6348_v17 }
0x1882   : > { %v6345_v2 = vpop.xlane.xlu0 %6344  ;;  %v10543_v53 = vpop.eup %10542 }
0x1883   : > { %10556 = vrcp.f32 %v6345_v2  ;;  %v6352_v8 = vmul.f32 %v10543_v53, %v10527_v1  ;;  %v8238_v1 = vld [vmem:[%s13181_s2 + $0x1c8] sm:$0xff] }
0x1884   : > { %v10545_v41 = vpop.eup %10544  ;;  %10135 = vmatprep.subr.mxu1 %v8238_v1 }
0x1885   : > { %v6350_v50 = vmul.f32 %v10545_v41, %v10529_v44  ;;  %10136 = vmatpush3.msra.mxu1 %v8238_v1 }
0x1886   : > { %v10547_v12 = vpop.eup %10546  ;;  %10137 = vmatprep.subr.mxu1 %v8237_v56 }
0x1887   : > { %10097 = vmatprep.mubr.msk.f32.mxu0 %vm440_vm0, %v6350_v50  ;;  %v6356_v6 = vmul.f32 %v10547_v12, %v10531_v7  ;;  %10138 = vmatpush3.msra.mxu1 %v8237_v56 }
0x1888   : > { %v10549_v51 = vpop.eup %10548  ;;  %10098 = vmatmul.mubr.msk.f32.vlgmr.msra.gmra.mxu0 %vm440_vm0, %v6352_v8  ;;  %10140 = vmatmul.mubr.msk.f32.vlgmr.msra.gmra.mxu1 %vm440_vm0, %v12571_v16 }
0x1889   : > { %v6354_v37 = vmul.f32 %v10549_v51, %v10533_v18  ;;  %10110 = vmatpush3.msra.mxu0 %v8228_v30  ;;  %10142 = vmatprep.mubr.msk.f32.mxu1 %vm440_vm0, %v12576_v24 }
0x188a   : > { %v10551_v4 = vpop.eup %10550  ;;  %10151 = vmatprep.subr.mxu0 %v8262_v11 }
0x188b   : > { %10100 = vmatprep.mubr.msk.f32.mxu0 %vm440_vm0, %v6354_v37  ;;  %v6360_v61 = vmul.f32 %v10551_v4, %v10535_v25 }
0x188c   : > { %v10553_v36 = vpop.eup %10552  ;;  %10101 = vmatmul.mubr.msk.f32.gmra.mxu0 %vm440_vm0, %v6356_v6  ;;  %10143 = vmatmul.mubr.msk.f32.gmra.mxu1 %vm440_vm0, %v12581_v39  ;;  %v8261_v39 = vld [vmem:[%s13183_s4 + $0x1f0] sm:$0xff] }
0x188d   : > { %v6358_v3 = vmul.f32 %v10553_v36, %v10537_v10  ;;  %10145 = vmatprep.mubr.msk.f32.mxu1 %vm440_vm0, %v12586_v28  ;;  %v12896_v10 = vld [vmem:[%s10864_s20 + $0x8] sm:$0xff] }
0x188e   : > { %v10555_v27 = vpop.eup %10554 }
0x188f   : > { %10103 = vmatprep.mubr.msk.f32.mxu0 %vm440_vm0, %v6358_v3  ;;  %v6364_v33 = vmul.f32 %v10555_v27, %v10539_v14  ;;  %v12906_v14 = vld [vmem:[%s10864_s20 + $0x18] sm:$0xff] }
0x1890   : > { %v10557_v9 = vpop.eup %10556  ;;  %10104 = vmatmul.mubr.msk.f32.gmra.mxu0 %vm440_vm0, %v6360_v61  ;;  %10146 = vmatmul.mubr.msk.f32.gmra.mxu1 %vm440_vm0, %v12591_v35  ;;  %v8260_v35 = vld [vmem:[%s13183_s4 + $0x1e8] sm:$0xff] }
0x1891   : > { %v6362_v48 = vmul.f32 %v10557_v9, %v10541_v57  ;;  %10148 = vmatprep.mubr.msk.f32.mxu1 %vm440_vm0, %v12596_v13  ;;  %v12921_v57 = vld [vmem:[%s10864_s20 + $0x30] sm:$0xff] }
0x1893   : > { %10106 = vmatprep.mubr.msk.f32.mxu0 %vm440_vm0, %v6362_v48 }
0x1894   : > { %10107 = vmatmul.mubr.msk.f32.gmra.mxu0 %vm440_vm0, %v6364_v33  ;;  %10149 = vmatmul.mubr.msk.f32.gmra.mxu1 %vm440_vm0, %v12601_v5  ;;  %v8259_v5 = vld [vmem:[%s13183_s4 + $0x1e0] sm:$0xff] }
0x1895   : > { %10195 = vmatprep.mubr.msk.f32.mxu1 %vm440_vm0, %v12606_v26 }
0x1948   : > { %v10099_v16 = vpop.f32.mrf.mxu0  ;;  %v10141_v30 = vpop.f32.mrf.mxu1 }
0x1949   : > { %v6722_v42 = vadd.f32 %v10141_v30, %v12933_v46  ;;  %v8273_v30 = vld [vmem:[%s13185_s6 + $0x1c0] sm:$0xff] }
0x194a   : > { %v6455_v24 = vpop.f32.mrf.mxu0  ;;  %v6716_v29 = vpop.f32.mrf.mxu1 }
0x194b   : > { %10111 = vmatprep.mubr.msk.f32.mxu0 %vm834_vm1, %v6455_v24  ;;  %v6717_v54 = vadd.f32 %v12933_v46, %v6716_v29 }
0x194c   : > { %v10102_v28 = vpop.f32.mrf.mxu0  ;;  %10112 = vmatmul.mubr.msk.f32.vlgmr.msra.gmra.mxu0 %vm834_vm1, %v10099_v16  ;;  %v10144_v40 = vpop.f32.mrf.mxu1 }
0x194d   : > { %10152 = vmatpush3.msra.mxu0 %v8262_v11 }
0x194e   : > { %10153 = vmatprep.subr.mxu0 %v8261_v39  ;;  %v6465_v13 = vpop.f32.mrf.mxu0  ;;  %v6726_v52 = vpop.f32.mrf.mxu1 }
0x194f   : > { %10154 = vmatpush3.msra.mxu0 %v8261_v39  ;;  %10114 = vmatprep.mubr.msk.f32.mxu0 %vm834_vm1, %v6465_v13  ;;  %v6727_v16 = vadd.f32 %v12933_v46, %v6726_v52 }
0x1950   : > { %10155 = vmatprep.subr.mxu0 %v8260_v35  ;;  %v10105_v44 = vpop.f32.mrf.mxu0  ;;  %10115 = vmatmul.mubr.msk.f32.gmra.mxu0 %vm834_vm1, %v10102_v28  ;;  %v10147_v63 = vpop.f32.mrf.mxu1  ;;  %v6732_v28 = vadd.f32 %v10144_v40, %v12933_v46 }
0x1951   : > { %10156 = vmatpush3.msra.mxu0 %v8260_v35 }
0x1952   : > { %10157 = vmatprep.subr.mxu0 %v8259_v5  ;;  %v6475_v7 = vpop.f32.mrf.mxu0  ;;  %v6736_v56 = vpop.f32.mrf.mxu1 }
0x1953   : > { %10158 = vmatpush3.msra.mxu0 %v8259_v5  ;;  %10117 = vmatprep.mubr.msk.f32.mxu0 %vm834_vm1, %v6475_v7  ;;  %v6737_v39 = vadd.f32 %v12933_v46, %v6736_v56  ;;  %v6742_v5 = vadd.f32 %v10147_v63, %v12933_v46  ;;  %v8279_v7 = vld [vmem:[%s13185_s6 + $0x1f0] sm:$0xff] }
0x1954   : > { %10159 = vmatprep.subr.mxu0 %v8258_v15  ;;  %v10108_v18 = vpop.f32.mrf.mxu0  ;;  %10118 = vmatmul.mubr.msk.f32.gmra.mxu0 %vm834_vm1, %v10105_v44  ;;  %v10150_v24 = vpop.f32.mrf.mxu1 }
0x1955   : > { %10160 = vmatpush3.msra.mxu0 %v8258_v15  ;;  %v6752_v44 = vadd.f32 %v10150_v24, %v12933_v46  ;;  %v8280_v15 = vld [vmem:[%s13185_s6 + $0x1f8] sm:$0xff] }
0x1956   : > { %10161 = vmatprep.subr.mxu0 %v8257_v34  ;;  %v6485_v25 = vpop.f32.mrf.mxu0  ;;  %v6746_v35 = vpop.f32.mrf.mxu1  ;;  %10179 = vmatprep.subr.mxu1 %v8280_v15 }
0x1957   : > { %10162 = vmatpush3.msra.mxu0 %v8257_v34  ;;  %10120 = vmatprep.mubr.msk.f32.mxu0 %vm834_vm1, %v6485_v25  ;;  %v6747_v13 = vadd.f32 %v12933_v46, %v6746_v35  ;;  %v8278_v34 = vld [vmem:[%s13185_s6 + $0x1e8] sm:$0xff]  ;;  %v8275_v25 = vld [vmem:[%s13185_s6 + $0x1d0] sm:$0xff] }
0x1958   : > { %10163 = vmatprep.subr.mxu0 %v8256_v59  ;;  %10121 = vmatmul.mubr.msk.f32.gmra.mxu0 %vm834_vm1, %v10108_v18  ;;  %v8277_v18 = vld [vmem:[%s13185_s6 + $0x1e0] sm:$0xff] }
0x1959   : > { %10164 = vmatpush3.msra.mxu0 %v8256_v59  ;;  %10167 = vmatprep.mubr.msk.f32.mxu0 %vm440_vm0, %v12606_v26  ;;  %v12916_v26 = vld [vmem:[%s10864_s20 + $0x28] sm:$0xff]  ;;  %v8276_v59 = vld [vmem:[%s13185_s6 + $0x1d8] sm:$0xff]  ;;  %s10651_s20 = scalar_lea.vmem %s10650_s29, 2048 }
0x195a   : > { %10165 = vmatprep.subr.mxu0 %v8255_v47  ;;  %10180 = vmatpush3.msra.mxu1 %v8280_v15  ;;  %p10653_p2 = scmp.lt.s32.totalorder %s10651_s20, %s10645_s30 }
0x195b   : > { %10166 = vmatpush3.msra.mxu0 %v8255_v47  ;;  %10181 = vmatprep.subr.mxu1 %v8279_v7  ;;  %v8274_v47 = vld [vmem:[%s13185_s6 + $0x1c8] sm:$0xff] }
0x195c   : > { %10168 = vmatmul.mubr.msk.f32.vlgmr.msra.gmra.mxu0 %vm440_vm0, %v12896_v10  ;;  %10182 = vmatpush3.msra.mxu1 %v8279_v7  ;;  %p10654_p3 = por %p10653_p2, %p10652_p1 }
0x195d   : > { %10170 = vmatprep.mubr.msk.f32.mxu0 %vm440_vm0, %v12901_v45  ;;  %10183 = vmatprep.subr.mxu1 %v8278_v34 }
0x195e   : > { %10184 = vmatpush3.msra.mxu1 %v8278_v34  ;;  %p10655_p5 = pnand %p10654_p3, %p10648_p0 }
0x195f   : > { %10185 = vmatprep.subr.mxu1 %v8277_v18 }
0x1960   : > { %10171 = vmatmul.mubr.msk.f32.gmra.mxu0 %vm440_vm0, %v12906_v14  ;;  %10186 = vmatpush3.msra.mxu1 %v8277_v18 }
0x1961   : > { %10173 = vmatprep.mubr.msk.f32.mxu0 %vm440_vm0, %v12911_v32  ;;  %10187 = vmatprep.subr.mxu1 %v8276_v59 }
0x1962   : > { %10188 = vmatpush3.msra.mxu1 %v8276_v59 }
0x1963   : > { %10189 = vmatprep.subr.mxu1 %v8275_v25 }
0x1964   : > { %10174 = vmatmul.mubr.msk.f32.gmra.mxu0 %vm440_vm0, %v12916_v26  ;;  %10190 = vmatpush3.msra.mxu1 %v8275_v25 }
0x1965   : > { %10176 = vmatprep.mubr.msk.f32.mxu0 %vm440_vm0, %v12921_v57  ;;  %10191 = vmatprep.subr.mxu1 %v8274_v47 }
0x1966   : > { %10192 = vmatpush3.msra.mxu1 %v8274_v47 }
0x1967   : > { %10193 = vmatprep.subr.mxu1 %v8273_v30 }
0x1968   : > { %10177 = vmatmul.mubr.msk.f32.gmra.mxu0 %vm440_vm0, %v12926_v58  ;;  %10194 = vmatpush3.msra.mxu1 %v8273_v30 }
0x1969   : > { %10223 = vmatprep.mubr.msk.f32.mxu0 %vm834_vm1, %v6717_v54  ;;  %10196 = vmatmul.mubr.msk.f32.vlgmr.msra.gmra.mxu1 %vm440_vm0, %v12896_v10 }
0x196a   : > { %10198 = vmatprep.mubr.msk.f32.mxu1 %vm440_vm0, %v12901_v45 }
0x196d   : > { %10199 = vmatmul.mubr.msk.f32.gmra.mxu1 %vm440_vm0, %v12906_v14 }
0x196e   : > { %10201 = vmatprep.mubr.msk.f32.mxu1 %vm440_vm0, %v12911_v32 }
0x1971   : > { %10202 = vmatmul.mubr.msk.f32.gmra.mxu1 %vm440_vm0, %v12916_v26 }
0x1972   : > { %10204 = vmatprep.mubr.msk.f32.mxu1 %vm440_vm0, %v12921_v57 }
0x1975   : > { %10205 = vmatmul.mubr.msk.f32.gmra.mxu1 %vm440_vm0, %v12926_v58 }
0x1a0c   : > { %v10113_v38 = vpop.f32.mrf.mxu0 }
0x1a0d   : > { %v12939_v62 = vadd.f32 %v10113_v38, %v12664_v19 }
0x1a0e   : > { %v6586_v17 = vpop.f32.mrf.mxu0 }
0x1a0f   : > { %v12942_v2 = vadd.f32 %v6586_v17, %v12667_v20 }
0x1a10   : > { %v10116_v53 = vpop.f32.mrf.mxu0 }
0x1a11   : > { %v12945_v41 = vadd.f32 %v10116_v53, %v12670_v49 }
0x1a12   : > { %v6596_v50 = vpop.f32.mrf.mxu0 }
0x1a13   : > { %v12948_v8 = vadd.f32 %v6596_v50, %v12673_v21 }
0x1a14   : > { %v10119_v12 = vpop.f32.mrf.mxu0 }
0x1a15   : > { %v12951_v51 = vadd.f32 %v10119_v12, %v12676_v43  ;;  %v8264_v43 = vld [vmem:[%s13184_s5 + $0x7] ss:$0 sm:$0xff] }
0x1a16   : > { %v6606_v37 = vpop.f32.mrf.mxu0 }
0x1a17   : > { %v12954_v19 = vadd.f32 %v6606_v37, %v12679_v23 }
0x1a18   : > { %v10122_v6 = vpop.f32.mrf.mxu0 }
0x1a19   : > { %v12957_v20 = vadd.f32 %v10122_v6, %v12682_v60 }
0x1a1a   : > { %v6616_v4 = vpop.f32.mrf.mxu0 }
0x1a1b   : > { %v12960_v49 = vadd.f32 %v6616_v4, %v12685_v22 }
0x1a1c   : > { %v10169_v36 = vpop.f32.mrf.mxu0 }
0x1a1d   : > { %v6844_v55 = vadd.f32 %v10169_v36, %v8264_v43 }
0x1a1e   : > { %v6838_v3 = vpop.f32.mrf.mxu0 }
0x1a1f   : > { %v6839_v1 = vadd.f32 %v8264_v43, %v6838_v3 }
0x1a20   : > { %v10172_v21 = vpop.f32.mrf.mxu0 }
0x1a21   : > { %v6854_v0 = vadd.f32 %v10172_v21, %v8264_v43 }
0x1a22   : > { %v6848_v61 = vpop.f32.mrf.mxu0 }
0x1a23   : > { %v6849_v31 = vadd.f32 %v8264_v43, %v6848_v61 }
0x1a24   : > { %v10175_v27 = vpop.f32.mrf.mxu0 }
0x1a25   : > { %v6864_v60 = vadd.f32 %v10175_v27, %v8264_v43 }
0x1a26   : > { %v6858_v9 = vpop.f32.mrf.mxu0 }
0x1a27   : > { %v6859_v22 = vadd.f32 %v8264_v43, %v6858_v9 }
0x1a28   : > { %v10178_v23 = vpop.f32.mrf.mxu0 }
0x1a29   : > { %v6874_v48 = vadd.f32 %v10178_v23, %v8264_v43  ;;  %v10197_v9 = vpop.f32.mrf.mxu1 }
0x1a2a   : > { %v6868_v33 = vpop.f32.mrf.mxu0 }
0x1a2b   : > { %v6869_v11 = vadd.f32 %v8264_v43, %v6868_v33  ;;  %10207 = vmatprep.subr.msk.mxu0 %vm834_vm1, %v6874_v48  ;;  %v6960_v43 = vpop.f32.mrf.mxu1 }
0x1a2c   : > { %10208 = vmatpush3.xpose.msk.msra.mxu0 %vm834_vm1, %v6874_v48 }
0x1a2d   : > { %10209 = vmatprep.subr.msk.mxu0 %vm834_vm1, %v6869_v11  ;;  %v10200_v23 = vpop.f32.mrf.mxu1 }
0x1a2f   : > { %v6970_v48 = vpop.f32.mrf.mxu1 }
0x1a30   : > { %10210 = vmatpush3.xpose.msk.msra.mxu0 %vm834_vm1, %v6869_v11  ;;  %v8282_v11 = vld [vmem:[%s13186_s7 + $0x7] ss:$0 sm:$0xff] }
0x1a31   : > { %10211 = vmatprep.subr.msk.mxu0 %vm834_vm1, %v6864_v60  ;;  %v10203_v33 = vpop.f32.mrf.mxu1  ;;  %v6976_v63 = vadd.f32 %v10200_v23, %v8282_v11  ;;  %v6966_v56 = vadd.f32 %v10197_v9, %v8282_v11 }
0x1a34   : > { %10212 = vmatpush3.xpose.msk.msra.mxu0 %vm834_vm1, %v6864_v60  ;;  %v6980_v60 = vpop.f32.mrf.mxu1 }
0x1a35   : > { %10213 = vmatprep.subr.msk.mxu0 %vm834_vm1, %v6859_v22 }
0x1a38   : > { %10214 = vmatpush3.xpose.msk.msra.mxu0 %vm834_vm1, %v6859_v22  ;;  %v10206_v22 = vpop.f32.mrf.mxu1 }
0x1a39   : > { %10215 = vmatprep.subr.msk.mxu0 %vm834_vm1, %v6854_v0 }
0x1a3a   : > { %v6990_v40 = vpop.f32.mrf.mxu1 }
0x1a3b   : > { %v6991_v52 = vadd.f32 %v8282_v11, %v6990_v40 }
0x1a3c   : > { %10216 = vmatpush3.xpose.msk.msra.mxu0 %vm834_vm1, %v6854_v0  ;;  %v6996_v0 = vadd.f32 %v10206_v22, %v8282_v11 }
0x1a3d   : > { %10217 = vmatprep.subr.msk.mxu0 %vm834_vm1, %v6849_v31 }
0x1a3e   : > { %10235 = vmatprep.subr.mxu1 %v6996_v0 }
0x1a3f   : > { %10236 = vmatpush3.msra.mxu1 %v6996_v0 }
0x1a40   : > { %10218 = vmatpush3.xpose.msk.msra.mxu0 %vm834_vm1, %v6849_v31  ;;  %v6986_v31 = vadd.f32 %v10203_v33, %v8282_v11  ;;  %10237 = vmatprep.subr.mxu1 %v6991_v52 }
0x1a41   : > { %10219 = vmatprep.subr.msk.mxu0 %vm834_vm1, %v6844_v55  ;;  %10238 = vmatpush3.msra.mxu1 %v6991_v52 }
0x1a42   : > { %10239 = vmatprep.subr.mxu1 %v6986_v31 }
0x1a43   : > { %10240 = vmatpush3.msra.mxu1 %v6986_v31 }
0x1a44   : > { %10220 = vmatpush3.xpose.msk.msra.mxu0 %vm834_vm1, %v6844_v55  ;;  %v6981_v55 = vadd.f32 %v8282_v11, %v6980_v60 }
0x1a45   : > { %10221 = vmatprep.subr.msk.mxu0 %vm834_vm1, %v6839_v1 }
0x1a46   : > { %10241 = vmatprep.subr.mxu1 %v6981_v55 }
0x1a47   : > { %10242 = vmatpush3.msra.mxu1 %v6981_v55 }
0x1a48   : > { %10222 = vmatpush3.xpose.msk.msra.mxu0 %vm834_vm1, %v6839_v1  ;;  %v6971_v1 = vadd.f32 %v8282_v11, %v6970_v48  ;;  %10243 = vmatprep.subr.mxu1 %v6976_v63 }
0x1a49   : > { %10244 = vmatpush3.msra.mxu1 %v6976_v63 }
0x1a4a   : > { %10245 = vmatprep.subr.mxu1 %v6971_v1 }
0x1a4b   : > { %10224 = vmatmul.mubr.msk.f32.vlgmr.msra.gmra.mxu0 %vm834_vm1, %v6722_v42  ;;  %10246 = vmatpush3.msra.mxu1 %v6971_v1 }
0x1a4c   : > { %10226 = vmatprep.mubr.msk.f32.mxu0 %vm834_vm1, %v6727_v16  ;;  %v6961_v16 = vadd.f32 %v8282_v11, %v6960_v43  ;;  %10247 = vmatprep.subr.mxu1 %v6966_v56  ;;  %v8315_v43 = vld [vmem:[%s13187_s8 + $0x38] sm:$0xff] }
0x1a4d   : > { %10248 = vmatpush3.msra.mxu1 %v6966_v56 }
0x1a4e   : > { %10249 = vmatprep.subr.mxu1 %v6961_v16 }
0x1a4f   : > { %10227 = vmatmul.mubr.msk.f32.gmra.mxu0 %vm834_vm1, %v6732_v28  ;;  %10250 = vmatpush3.msra.mxu1 %v6961_v16 }
0x1a50   : > { %10229 = vmatprep.mubr.msk.f32.mxu0 %vm834_vm1, %v6737_v39  ;;  %10263 = vmatprep.subr.mxu1 %v8315_v43 }
0x1a53   : > { %10230 = vmatmul.mubr.msk.f32.gmra.mxu0 %vm834_vm1, %v6742_v5 }
0x1a54   : > { %10232 = vmatprep.mubr.msk.f32.mxu0 %vm834_vm1, %v6747_v13 }
0x1a57   : > { %10233 = vmatmul.mubr.msk.f32.gmra.mxu0 %vm834_vm1, %v6752_v44 }
0x1b0b   : > { %v10225_v46 = vpop.f32.mrf.mxu0 }
0x1b0c   : > { %v13032_v10 = vmul.f32 0.35355338, %v10225_v46 }
0x1b0d   : > { %v7113_v42 = vpop.f32.mrf.mxu0 }
0x1b0e   : > { %v13034_v45 = vmul.f32 0.35355338, %v7113_v42  ;;  %v7163_v14 = vsel %vm440_vm0, %v13032_v10, -inf }
0x1b0f   : > { %7164 = vmax.xlane.f32.xlu1 %v7163_v14  ;;  %v10228_v32 = vpop.f32.mrf.mxu0 }
0x1b10   : > { %v13038_v29 = vmul.f32 0.35355338, %v10228_v32  ;;  %v7160_v26 = vsel %vm440_vm0, %v13034_v45, -inf }
0x1b11   : > { %7161 = vmax.xlane.f32.xlu0 %v7160_v26  ;;  %v7123_v57 = vpop.f32.mrf.mxu0 }
0x1b12   : > { %v13042_v54 = vmul.f32 0.35355338, %v7123_v57  ;;  %v7169_v58 = vsel %vm440_vm0, %v13038_v29, -inf }
0x1b13   : > { %7170 = vmax.xlane.f32.xlu1 %v7169_v58  ;;  %v10231_v38 = vpop.f32.mrf.mxu0 }
0x1b14   : > { %v13046_v17 = vmul.f32 0.35355338, %v10231_v38  ;;  %v7166_v53 = vsel %vm440_vm0, %v13042_v54, -inf }
0x1b15   : > { %7167 = vmax.xlane.f32.xlu0 %v7166_v53  ;;  %v7133_v50 = vpop.f32.mrf.mxu0 }
0x1b16   : > { %v13050_v12 = vmul.f32 0.35355338, %v7133_v50  ;;  %v7175_v37 = vsel %vm440_vm0, %v13046_v17, -inf }
0x1b17   : > { %7176 = vmax.xlane.f32.xlu1 %v7175_v37  ;;  %v10234_v6 = vpop.f32.mrf.mxu0 }
0x1b18   : > { %v13054_v4 = vmul.f32 0.35355338, %v10234_v6  ;;  %v7172_v36 = vsel %vm440_vm0, %v13050_v12, -inf }
0x1b19   : > { %7173 = vmax.xlane.f32.xlu0 %v7172_v36  ;;  %v7143_v3 = vpop.f32.mrf.mxu0 }
0x1b1a   : > { %v13058_v21 = vmul.f32 0.35355338, %v7143_v3  ;;  %v7181_v61 = vsel %vm440_vm0, %v13054_v4, -inf }
0x1b1b   : > { %7182 = vmax.xlane.f32.xlu1 %v7181_v61 }
0x1b1c   : > { %v7178_v27 = vsel %vm440_vm0, %v13058_v21, -inf }
0x1b1d   : > { %7179 = vmax.xlane.f32.xlu0 %v7178_v27 }
0x1b98   : > { %v7165_v24 = vpop.xlane.xlu1 %7164 }
0x1b99   : > { %v7185_v39 = vsub.f32 %v13032_v10, %v7165_v24 }
0x1b9a   : > { %v7162_v28 = vpop.xlane.xlu0 %7161 }
0x1b9b   : > { %v7194_v35 = vmul.f32 1.442695, %v7185_v39  ;;  %v7184_v13 = vsub.f32 %v13034_v45, %v7162_v28 }
0x1b9c   : > { %v7171_v5 = vpop.xlane.xlu1 %7170 }
0x1b9d   : > { %10558 = vpow2.f32 %v7194_v35  ;;  %v7192_v44 = vmul.f32 1.442695, %v7184_v13  ;;  %v7187_v15 = vsub.f32 %v13038_v29, %v7171_v5 }
0x1b9e   : > { %v7168_v7 = vpop.xlane.xlu0 %7167 }
0x1b9f   : > { %10560 = vpow2.f32 %v7192_v44  ;;  %v7198_v34 = vmul.f32 1.442695, %v7187_v15  ;;  %v7186_v18 = vsub.f32 %v13042_v54, %v7168_v7 }
0x1ba0   : > { %v7177_v59 = vpop.xlane.xlu1 %7176 }
0x1ba1   : > { %10562 = vpow2.f32 %v7198_v34  ;;  %v7196_v25 = vmul.f32 1.442695, %v7186_v18  ;;  %v7189_v47 = vsub.f32 %v13046_v17, %v7177_v59 }
0x1ba2   : > { %v7174_v30 = vpop.xlane.xlu0 %7173 }
0x1ba3   : > { %10564 = vpow2.f32 %v7196_v25  ;;  %v7202_v46 = vmul.f32 1.442695, %v7189_v47  ;;  %v7188_v10 = vsub.f32 %v13050_v12, %v7174_v30 }
0x1ba4   : > { %v7183_v42 = vpop.xlane.xlu1 %7182 }
0x1ba5   : > { %10566 = vpow2.f32 %v7202_v46  ;;  %v7200_v45 = vmul.f32 1.442695, %v7188_v10  ;;  %v7191_v14 = vsub.f32 %v13054_v4, %v7183_v42 }
0x1ba6   : > { %v7180_v32 = vpop.xlane.xlu0 %7179 }
0x1ba7   : > { %10568 = vpow2.f32 %v7200_v45  ;;  %v7206_v29 = vmul.f32 1.442695, %v7191_v14  ;;  %v7190_v26 = vsub.f32 %v13058_v21, %v7180_v32  ;;  %v8324_v45 = vld [vmem:[%s13188_s9] ss:$0 sm:$0xff] }
0x1ba9   : > { %10570 = vpow2.f32 %v7206_v29  ;;  %v7204_v57 = vmul.f32 1.442695, %v7190_v26 }
0x1baa   : > { %v10559_v54 = vpop.eup %10558 }
0x1bab   : > { %10572 = vpow2.f32 %v7204_v57  ;;  %v7211_v58 = vsel %vm440_vm0, %v10559_v54, 0.0 }
0x1bac   : > { %v10561_v38 = vpop.eup %10560  ;;  %7212 = vadd.xlane.f32.xlu1 %v7211_v58 }
0x1bad   : > { %v7208_v17 = vsel %vm440_vm0, %v10561_v38, 0.0 }
0x1bae   : > { %v10563_v53 = vpop.eup %10562  ;;  %7209 = vadd.xlane.f32.xlu0 %v7208_v17 }
0x1baf   : > { %v7217_v50 = vsel %vm440_vm0, %v10563_v53, 0.0 }
0x1bb0   : > { %v10565_v12 = vpop.eup %10564  ;;  %7218 = vadd.xlane.f32.xlu1 %v7217_v50 }
0x1bb1   : > { %v7214_v37 = vsel %vm440_vm0, %v10565_v12, 0.0 }
0x1bb2   : > { %v10567_v6 = vpop.eup %10566  ;;  %7215 = vadd.xlane.f32.xlu0 %v7214_v37 }
0x1bb3   : > { %v7223_v4 = vsel %vm440_vm0, %v10567_v6, 0.0 }
0x1bb4   : > { %v10569_v36 = vpop.eup %10568  ;;  %7224 = vadd.xlane.f32.xlu1 %v7223_v4 }
0x1bb5   : > { %v7220_v3 = vsel %vm440_vm0, %v10569_v36, 0.0 }
0x1bb6   : > { %v10571_v21 = vpop.eup %10570  ;;  %7221 = vadd.xlane.f32.xlu0 %v7220_v3 }
0x1bb7   : > { %v7229_v61 = vsel %vm440_vm0, %v10571_v21, 0.0 }
0x1bb8   : > { %v10573_v27 = vpop.eup %10572  ;;  %7230 = vadd.xlane.f32.xlu1 %v7229_v61 }
0x1bb9   : > { %v7226_v9 = vsel %vm440_vm0, %v10573_v27, 0.0 }
0x1bba   : > { %7227 = vadd.xlane.f32.xlu0 %v7226_v9 }
0x1c35   : > { %v7213_v23 = vpop.xlane.xlu1 %7212 }
0x1c36   : > { %10574 = vrcp.f32 %v7213_v23 }
0x1c37   : > { %v7210_v48 = vpop.xlane.xlu0 %7209 }
0x1c38   : > { %10576 = vrcp.f32 %v7210_v48 }
0x1c39   : > { %v7219_v33 = vpop.xlane.xlu1 %7218 }
0x1c3a   : > { %10578 = vrcp.f32 %v7219_v33 }
0x1c3b   : > { %v7216_v11 = vpop.xlane.xlu0 %7215 }
0x1c3c   : > { %10580 = vrcp.f32 %v7216_v11 }
0x1c3d   : > { %v7225_v60 = vpop.xlane.xlu1 %7224 }
0x1c3e   : > { %10582 = vrcp.f32 %v7225_v60 }
0x1c3f   : > { %v7222_v22 = vpop.xlane.xlu0 %7221 }
0x1c40   : > { %10584 = vrcp.f32 %v7222_v22 }
0x1c41   : > { %v7231_v0 = vpop.xlane.xlu1 %7230 }
0x1c42   : > { %10586 = vrcp.f32 %v7231_v0 }
0x1c43   : > { %v7228_v40 = vpop.xlane.xlu0 %7227  ;;  %v10575_v31 = vpop.eup %10574 }
0x1c44   : > { %10588 = vrcp.f32 %v7228_v40  ;;  %v7235_v63 = vmul.f32 %v10575_v31, %v10559_v54 }
0x1c45   : > { %v10577_v52 = vpop.eup %10576 }
0x1c46   : > { %v7233_v55 = vmul.f32 %v10577_v52, %v10561_v38 }
0x1c47   : > { %v10579_v1 = vpop.eup %10578 }
0x1c48   : > { %10251 = vmatprep.mubr.msk.f32.mxu1 %vm440_vm0, %v7233_v55  ;;  %v7239_v24 = vmul.f32 %v10579_v1, %v10563_v53 }
0x1c49   : > { %v10581_v56 = vpop.eup %10580  ;;  %10252 = vmatmul.mubr.msk.f32.vlgmr.msra.gmra.mxu1 %vm440_vm0, %v7235_v63 }
0x1c4a   : > { %v7237_v16 = vmul.f32 %v10581_v56, %v10565_v12  ;;  %10264 = vmatpush3.msra.mxu1 %v8315_v43 }
0x1c4b   : > { %v10583_v39 = vpop.eup %10582 }
0x1c4c   : > { %10254 = vmatprep.mubr.msk.f32.mxu1 %vm440_vm0, %v7237_v16  ;;  %v7243_v13 = vmul.f32 %v10583_v39, %v10567_v6 }
0x1c4d   : > { %v10585_v28 = vpop.eup %10584  ;;  %10255 = vmatmul.mubr.msk.f32.gmra.mxu1 %vm440_vm0, %v7239_v24 }
0x1c4e   : > { %v7241_v35 = vmul.f32 %v10585_v28, %v10569_v36 }
0x1c4f   : > { %v10587_v5 = vpop.eup %10586 }
0x1c50   : > { %10257 = vmatprep.mubr.msk.f32.mxu1 %vm440_vm0, %v7241_v35  ;;  %v7247_v7 = vmul.f32 %v10587_v5, %v10571_v21 }
0x1c51   : > { %v10589_v44 = vpop.eup %10588  ;;  %10258 = vmatmul.mubr.msk.f32.gmra.mxu1 %vm440_vm0, %v7243_v13 }
0x1c52   : > { %v7245_v15 = vmul.f32 %v10589_v44, %v10573_v27 }
0x1c54   : > { %10260 = vmatprep.mubr.msk.f32.mxu1 %vm440_vm0, %v7245_v15 }
0x1c55   : > { %10261 = vmatmul.mubr.msk.f32.gmra.mxu1 %vm440_vm0, %v7247_v7 }
0x1d09   : > { %v10253_v34 = vpop.f32.mrf.mxu1 }
0x1d0b   : > { %v7338_v18 = vpop.f32.mrf.mxu1 }
0x1d0c   : > { %10265 = vmatprep.mubr.msk.f32.mxu1 %vm834_vm1, %v7338_v18 }
0x1d0d   : > { %v10256_v59 = vpop.f32.mrf.mxu1  ;;  %10266 = vmatmul.mubr.msk.f32.vlgmr.msra.gmra.mxu1 %vm834_vm1, %v10253_v34 }
0x1d0f   : > { %v7348_v25 = vpop.f32.mrf.mxu1 }
0x1d10   : > { %10268 = vmatprep.mubr.msk.f32.mxu1 %vm834_vm1, %v7348_v25 }
0x1d11   : > { %v10259_v47 = vpop.f32.mrf.mxu1  ;;  %10269 = vmatmul.mubr.msk.f32.gmra.mxu1 %vm834_vm1, %v10256_v59 }
0x1d13   : > { %v7358_v30 = vpop.f32.mrf.mxu1 }
0x1d14   : > { %10271 = vmatprep.mubr.msk.f32.mxu1 %vm834_vm1, %v7358_v30 }
0x1d15   : > { %v10262_v46 = vpop.f32.mrf.mxu1  ;;  %10272 = vmatmul.mubr.msk.f32.gmra.mxu1 %vm834_vm1, %v10259_v47 }
0x1d17   : > { %v7368_v10 = vpop.f32.mrf.mxu1 }
0x1d18   : > { %10274 = vmatprep.mubr.msk.f32.mxu1 %vm834_vm1, %v7368_v10 }
0x1d19   : > { %10275 = vmatmul.mubr.msk.f32.gmra.mxu1 %vm834_vm1, %v10262_v46 }
0x1dcd   : > { %v10267_v42 = vpop.f32.mrf.mxu1 }
0x1dce   : > { %v7509_v14 = vadd.f32 %v10267_v42, %v12939_v62 }
0x1dcf   : > { %v7469_v32 = vpop.f32.mrf.mxu1 }
0x1dd0   : > { %v7524_v29 = vadd.f32 %v8324_v45, %v7509_v14  ;;  %v7508_v26 = vadd.f32 %v7469_v32, %v12942_v2 }
0x1dd1   : > { %v10270_v57 = vpop.f32.mrf.mxu1 }
0x1dd2   : > { %7532 = vst.msk [vmem:[%s392_s1 + $0x8] sm:$0xff] %vm440_vm0, %v7524_v29  ;;  %v7523_v54 = vadd.f32 %v8324_v45, %v7508_v26  ;;  %v7511_v58 = vadd.f32 %v10270_v57, %v12945_v41 }
0x1dd3   : > { %v7479_v38 = vpop.f32.mrf.mxu1 }
0x1dd4   : > { %7531 = vst.msk [vmem:[%s392_s1] sm:$0xff] %vm440_vm0, %v7523_v54  ;;  %v7526_v17 = vadd.f32 %v8324_v45, %v7511_v58  ;;  %v7510_v53 = vadd.f32 %v7479_v38, %v12948_v8 }
0x1dd5   : > { %v10273_v50 = vpop.f32.mrf.mxu1 }
0x1dd6   : > { %7534 = vst.msk [vmem:[%s392_s1 + $0x18] sm:$0xff] %vm440_vm0, %v7526_v17  ;;  %v7525_v62 = vadd.f32 %v8324_v45, %v7510_v53  ;;  %v7513_v2 = vadd.f32 %v10273_v50, %v12951_v51 }
0x1dd7   : > { %v7489_v12 = vpop.f32.mrf.mxu1 }
0x1dd8   : > { %7533 = vst.msk [vmem:[%s392_s1 + $0x10] sm:$0xff] %vm440_vm0, %v7525_v62  ;;  %v7528_v37 = vadd.f32 %v8324_v45, %v7513_v2  ;;  %v7512_v6 = vadd.f32 %v7489_v12, %v12954_v19 }
0x1dd9   : > { %v10276_v41 = vpop.f32.mrf.mxu1 }
0x1dda   : > { %7536 = vst.msk [vmem:[%s392_s1 + $0x28] sm:$0xff] %vm440_vm0, %v7528_v37  ;;  %v7527_v4 = vadd.f32 %v8324_v45, %v7512_v6  ;;  %v7515_v8 = vadd.f32 %v10276_v41, %v12957_v20 }
0x1ddb   : > { %v7499_v36 = vpop.f32.mrf.mxu1 }
0x1ddc   : > { %7535 = vst.msk [vmem:[%s392_s1 + $0x20] sm:$0xff] %vm440_vm0, %v7527_v4  ;;  %v7530_v51 = vadd.f32 %v8324_v45, %v7515_v8  ;;  %v7514_v3 = vadd.f32 %v7499_v36, %v12960_v49 }
0x1dde   : > { %7538 = vst.msk [vmem:[%s392_s1 + $0x38] sm:$0xff] %vm440_vm0, %v7530_v51  ;;  %v7529_v19 = vadd.f32 %v8324_v45, %v7514_v3 }
0x1de0   : > { %7537 = vst.msk [vmem:[%s392_s1 + $0x30] sm:$0xff] %vm440_vm0, %v7529_v19 }
0x1de1   : > { %10658 = shalt.err (!%p10655_p5)
}
0x1de2   : > { %s10659_s28 = scalar_lea.hbm %s13126_s27, 1024  ;;  %s10663_s11 = scalar_lea.hbm %s13189_s10, 2048 }
0x1de3   : > { %p10660_p6 = scmp.ne.s32.totalorder %s13126_s27, %s10659_s28  ;;  %p10664_p10 = scmp.lt.s32.totalorder %s13126_s27, %s13189_s10 }
0x1de4   : > { %p10665_p11 = scmp.lt.s32.totalorder %s10663_s11, %s10659_s28 }
0x1de5   : > { %p10661_p7 = pnand %p10660_p6, %p10821_p4 }
0x1de6   : > { %p10666_p12 = por %p10665_p11, %p10664_p10 }
0x1de7   : > { %p10662_p9 = pneg %p10661_p7 }
0x1de9   : > { %p10667_p13 = pnand %p10666_p12, %p10662_p9 }
0x1deb   : > { %10670 = shalt.err (!%p10667_p13)
}
0x1dec   : > { %s10724_s30 = smov 128   ;;  %s10725_s21 = smov 8  }
0x1ded   : > { %10277 = dma.vmem_to_hbm [thread:$0]  (%p10821_p4), %s13128_s12, 1024, %s13126_s27, %s13134_s16, %s10724_s30, %s10724_s30, %s10725_s21  }
0x1dee PF: > { %p10283_p0 = scmp.ge.s32.totalorder %s10721_s18, 2  ;;  %s7570_s29 = sand.u32 1, %s10701_s13  }
0x1def   : > { %s7571_s20 = scalar_lea.sflag [#allocation3], %s7570_s29 }
0x1df0   : > { %p10280_p1 = pnand %p10283_p0, %p10828_p8 }
0x1df2   : > { %p10281_p2 = pneg %p10280_p1 }
0x1df4   : > { %10696 = dma.done.wait (%p10281_p2), %s7571_s20, 1024  }
0x1df5   : > { %10698 = vsyncadd (%p10281_p2), %s7571_s20, 4294966272  ;;  %s23_s18 = sadd.s32 1, %s10721_s18   ;;  %s13198_s23 = sld [smem:[#allocation5_spill]] }
0x1df6   : > { %p20_p3 = scmp.ge.s32.totalorder %s23_s18, 4   ;;  %s13199_s13 = smov %s10705_s14 }
0x1df7   : > { %s13200_s14 = smov %s10709_s15  ;;  %s13201_s15 = smov %s10834_s26 }
0x1df8   : > { %s13202_s16 = smov %s10717_s17  ;;  %22 = sbr.rel (!%p20_p3) target bundleno = 6 (0x6), region = 147 }
0x1dfb   : > { %s13203_s17 = smov %s13198_s23 }
0x1dfd   :  { %7576 = vsyncpa [#allocation3], 1 }
0x1dfe   :  { %7578 = vsyncpa [#allocation3 + $0x1], 1 }

</bundles_post_ra>
